<compile_context>
chip_gen: v5e
topology: v5e:2x2
jax: 0.10.0
libtpu: 0.0.40
codegen_flags: <defaults>
</compile_context>

<pallas_src>
import functools

import jax
import jax.numpy as jnp
from jax import lax
from jax.experimental import pallas as pl
from jax.experimental.pallas import tpu as pltpu


# Column offset of the activation inside the padded VMEM scratch.  A
# sublane-tile-aligned offset (8) keeps the interior scratch *stores* aligned;
# the 3x3-window *reads* at columns _COL0-1+kw may be unaligned (cheap).
_COL0 = 8


def _zero_border(pad_ref, H, W):
    """Zero only the 1-pixel conv border around the interior.

    The interior (rows [1, H], cols [_COL0, _COL0+W)) is fully overwritten by
    `set_interior` before every conv, and the conv windows only ever read
    rows [0, H+1] x cols [_COL0-1, _COL0+W], so it suffices to zero the
    top/bottom rows of that window plus the single left/right border columns.
    """
    C = pad_ref.shape[-1]
    row_zeros = jnp.zeros((1, W + 2, C), pad_ref.dtype)
    col_zeros = jnp.zeros((H, 1, C), pad_ref.dtype)
    pad_ref[pl.ds(0, 1), pl.ds(_COL0 - 1, W + 2), :] = row_zeros
    pad_ref[pl.ds(H + 1, 1), pl.ds(_COL0 - 1, W + 2), :] = row_zeros
    pad_ref[pl.ds(1, H), pl.ds(_COL0 - 1, 1), :] = col_zeros
    pad_ref[pl.ds(1, H), pl.ds(_COL0 + W, 1), :] = col_zeros


def _conv3x3(pad_ref, w, H, W, *, stride=1):
    """3x3 conv tap accumulation, reading windows directly from the padded
    VMEM scratch ref (strided windows for stride=2, i.e. the conv is only
    evaluated at its stride-2 output positions).

    pad_ref: (H+2, W+2*_COL0, Cin) scratch ref; activation lives at rows
             [1:H+1], cols [_COL0:_COL0+W] with a zero border around it.
    w:       (3, 3, Cin, Cout) value (bf16).
    Returns (Ho*Wo, Cout) float32, Ho/Wo = output spatial dims for `stride`.
    """
    Cin = pad_ref.shape[-1]
    Cout = w.shape[-1]
    Ho = (H + stride - 1) // stride   # kernel=3, padding=1 => ceil(H/stride)
    Wo = (W + stride - 1) // stride
    acc = jnp.zeros((Ho * Wo, Cout), jnp.float32)
    for kh in range(3):
        for kw in range(3):
            c0 = _COL0 - 1 + kw
            if stride == 1:
                patch = pad_ref[pl.ds(kh, Ho), pl.ds(c0, Wo), :]
            else:
                patch = pad_ref[pl.ds(kh, Ho, stride=stride),
                                pl.ds(c0, Wo, stride=stride), :]
            # bf16 MXU operands, f32 accumulate.
            patch = patch.reshape(Ho * Wo, Cin).astype(jnp.bfloat16)
            acc = acc + jnp.dot(patch, w[kh, kw],
                                preferred_element_type=jnp.float32)
    return acc


def _residual_block_kernel(H, W, C, C3, residual, last_layer, *refs):
    if last_layer:
        x_ref, w1_ref, b1_ref, w2_ref, b2_ref, o_ref, pad_ref = refs
    else:
        (x_ref, w1_ref, b1_ref, w2_ref, b2_ref, w3_ref, b3_ref,
         o_ref, pad_ref) = refs

    def set_interior(v_hwc):
        # Tile-aligned store of the current activation into the padded scratch.
        pad_ref[pl.ds(1, H), pl.ds(_COL0, W), :] = v_hwc.astype(pad_ref.dtype)

    # Zero only the 1-pixel border (interior is overwritten before every conv).
    _zero_border(pad_ref, H, W)

    # ---- conv1 + bias + relu (+ residual) --------------------------------
    x0 = x_ref[0].astype(jnp.float32)                     # (H, W, C)
    set_interior(x0)
    y = _conv3x3(pad_ref, w1_ref[...], H, W)              # (H*W, C) f32
    y = jnp.maximum(y + b1_ref[...], 0.0)
    if residual:
        y = y + x0.reshape(H * W, C)                      # add AFTER relu

    # ---- conv2 + bias + relu (+ residual) --------------------------------
    set_interior(y.reshape(H, W, C))
    y2 = _conv3x3(pad_ref, w2_ref[...], H, W)
    y2 = jnp.maximum(y2 + b2_ref[...], 0.0)
    if residual:
        y2 = y2 + y

    if last_layer:
        o_ref[0] = y2.reshape(H, W, C).astype(o_ref.dtype)
        return

    # ---- conv3 (stride 2) + bias + relu ----------------------------------
    # Evaluated only at stride-2 output positions via strided tap reads; the
    # writeback is (Ho, Wo, C3) and no dense (H, W, C3) intermediate exists.
    Ho, Wo = (H + 1) // 2, (W + 1) // 2
    set_interior(y2.reshape(H, W, C))
    y3 = _conv3x3(pad_ref, w3_ref[...], H, W, stride=2)   # (Ho*Wo, C3)
    y3 = jnp.maximum(y3 + b3_ref[...], 0.0)
    o_ref[0] = y3.reshape(Ho, Wo, C3).astype(o_ref.dtype)


# ---------------------------------------------------------------------------
# Wrappers
# ---------------------------------------------------------------------------
def residual_block_forward_nhwc(x_nhwc, params, *, residual, last_layer):
    """Fused ResidualBlock forward in NHWC layout (single pallas_call)."""
    N, H, W, C = x_nhwc.shape

    # Weights are fed to the MXU in bf16 (cast once here, halves weight DMA);
    # biases stay f32 (added to the f32 accumulator).
    w1 = params["w1"].astype(jnp.bfloat16)
    w2 = params["w2"].astype(jnp.bfloat16)
    b1 = params["b1"].reshape(1, C).astype(jnp.float32)
    b2 = params["b2"].reshape(1, C).astype(jnp.float32)

    in_specs = [
        pl.BlockSpec((1, H, W, C), lambda n: (n, 0, 0, 0)),
        pl.BlockSpec((3, 3, C, C), lambda n: (0, 0, 0, 0)),
        pl.BlockSpec((1, C), lambda n: (0, 0)),
        pl.BlockSpec((3, 3, C, C), lambda n: (0, 0, 0, 0)),
        pl.BlockSpec((1, C), lambda n: (0, 0)),
    ]
    args = [x_nhwc, w1, b1, w2, b2]

    if last_layer:
        C3 = C
        out_shape = jax.ShapeDtypeStruct((N, H, W, C), x_nhwc.dtype)
        out_spec = pl.BlockSpec((1, H, W, C), lambda n: (n, 0, 0, 0))
    else:
        C3 = params["w3"].shape[-1]
        Ho, Wo = (H + 1) // 2, (W + 1) // 2
        w3 = params["w3"].astype(jnp.bfloat16)
        b3 = params["b3"].reshape(1, C3).astype(jnp.float32)
        in_specs += [
            pl.BlockSpec((3, 3, C, C3), lambda n: (0, 0, 0, 0)),
            pl.BlockSpec((1, C3), lambda n: (0, 0)),
        ]
        args += [w3, b3]
        out_shape = jax.ShapeDtypeStruct((N, Ho, Wo, C3), x_nhwc.dtype)
        out_spec = pl.BlockSpec((1, Ho, Wo, C3), lambda n: (n, 0, 0, 0))

    kernel = functools.partial(_residual_block_kernel, H, W, C, C3,
                               residual, last_layer)

    return pl.pallas_call(
        kernel,
        out_shape=out_shape,
        grid=(N,),
        in_specs=in_specs,
        out_specs=out_spec,
        # f32 padded scratch reused by all three convs (see header re: bf16).
        scratch_shapes=[pltpu.VMEM((H + 2, W + 2 * _COL0, C), jnp.float32)],
        compiler_params=pltpu.CompilerParams(
            dimension_semantics=("parallel",),
            # Tiny at these shapes; raise toward 64-96 MiB on v5e/v6e (cap
            # ~48 MiB on v7x) once the row-tiled grid lands.
            vmem_limit_bytes=32 * 1024 * 1024,
        ),
    )(*args)


def residual_block_forward(x_nchw, params, *, residual, last_layer):
    """Torch-compatible NCHW wrapper (layout transposed only at the boundary)."""
    x = jnp.transpose(x_nchw, (0, 2, 3, 1))
    y = residual_block_forward_nhwc(x, params, residual=residual,
                                    last_layer=last_layer)
    return jnp.transpose(y, (0, 3, 1, 2))


# ---------------------------------------------------------------------------
# Params init + pure-JAX reference (correctness check)
# ---------------------------------------------------------------------------
def init_residual_block_params(key, in_channel, linear_scaling, last_layer):
    ks = jax.random.split(key, 6)
    c = in_channel

    def winit(k, cin, cout):
        return jax.random.normal(k, (3, 3, cin, cout), jnp.float32) * 0.1

    params = {
        "w1": winit(ks[0], c, c),
        "b1": jax.random.normal(ks[1], (c,), jnp.float32) * 0.1,
        "w2": winit(ks[2], c, c),
        "b2": jax.random.normal(ks[3], (c,), jnp.float32) * 0.1,
    }
    if not last_layer:
        params["w3"] = winit(ks[4], c, c + linear_scaling)
        params["b3"] = jax.random.normal(ks[5], (c + linear_scaling,),
                                         jnp.float32) * 0.1
    return params


def _ref_conv(x_nchw, w_hwio, b, stride):
    w_oihw = jnp.transpose(w_hwio, (3, 2, 0, 1))
    y = lax.conv_general_dilated(
        x_nchw, w_oihw, window_strides=(stride, stride),
        padding=((1, 1), (1, 1)),
        dimension_numbers=("NCHW", "OIHW", "NCHW"),
        precision=lax.Precision.HIGHEST)
    return y + b.reshape(1, -1, 1, 1)


def residual_block_ref(x, params, *, residual, last_layer):
    if residual:
        res = x
    x = jnp.maximum(_ref_conv(x, params["w1"], params["b1"], 1), 0.0)
    if residual:
        x = x + res
        res = x
    x = jnp.maximum(_ref_conv(x, params["w2"], params["b2"], 1), 0.0)
    if residual:
        x = x + res
    if not last_layer:
        x = jnp.maximum(_ref_conv(x, params["w3"], params["b3"], 2), 0.0)
    return x


# ---------------------------------------------------------------------------
if __name__ == "__main__":
    key = jax.random.PRNGKey(0)
    k_x, k_p = jax.random.split(key)

    N, C, H, W = 2, 4, 16, 16
    linear_scaling = 4

    x = jax.random.normal(k_x, (N, C, H, W), jnp.float32)
    params = init_residual_block_params(k_p, C, linear_scaling, False)

    # Tolerances widened deliberately: the kernel feeds bf16 operands to the
    # MXU (f32 accumulate) while the reference is f32 Precision.HIGHEST.
    ATOL = RTOL = 5e-2

    # Main config: residual=True, last_layer=False (stride-2 conv3 path).
    out = residual_block_forward(x, params, residual=True, last_layer=False)
    out = jax.block_until_ready(out)
    ref = residual_block_ref(x, params, residual=True, last_layer=False)
    assert out.shape == (N, C + linear_scaling, H // 2, W // 2), out.shape
    assert jnp.allclose(out, ref, atol=ATOL, rtol=RTOL), (
        float(jnp.max(jnp.abs(out - ref))))

    # Also exercise the last_layer (no conv3) output path.
    out2 = residual_block_forward(x, params, residual=True, last_layer=True)
    out2 = jax.block_until_ready(out2)
    ref2 = residual_block_ref(x, params, residual=True, last_layer=True)
    assert out2.shape == (N, C, H, W), out2.shape
    assert jnp.allclose(out2, ref2, atol=ATOL, rtol=RTOL), (
        float(jnp.max(jnp.abs(out2 - ref2))))

    print("KERNEL_OK")
</pallas_src>

<mosaic_0001>
module attributes {stable_mosaic.version = 11 : i64} {
  func.func @_residual_block_kernel(%arg0: i32, %arg1: memref<1x16x16x4xf32, #tpu.memory_space<vmem>>, %arg2: memref<3x3x4x4xbf16, #tpu.memory_space<vmem>>, %arg3: memref<1x4xf32, #tpu.memory_space<vmem>>, %arg4: memref<3x3x4x4xbf16, #tpu.memory_space<vmem>>, %arg5: memref<1x4xf32, #tpu.memory_space<vmem>>, %arg6: memref<3x3x4x8xbf16, #tpu.memory_space<vmem>>, %arg7: memref<1x8xf32, #tpu.memory_space<vmem>>, %arg8: memref<1x8x8x8xf32, #tpu.memory_space<vmem>>, %arg9: memref<18x32x4xf32, #tpu.memory_space<vmem>>) attributes {dimension_semantics = [#tpu.dimension_semantics<parallel>], iteration_bounds = array<i64: 2>, scalar_prefetch = 0 : i64, scratch_operands = 1 : i64, tpu.core_type = #tpu.core_type<tc>, window_params = [{transform_indices = @transform_0, window_bounds = array<i64: 1, 16, 16, 4>}, {pipeline_mode = #tpu.pipeline_mode<synchronous>, transform_indices = @transform_1, window_bounds = array<i64: 3, 3, 4, 4>}, {pipeline_mode = #tpu.pipeline_mode<synchronous>, transform_indices = @transform_2, window_bounds = array<i64: 1, 4>}, {pipeline_mode = #tpu.pipeline_mode<synchronous>, transform_indices = @transform_3, window_bounds = array<i64: 3, 3, 4, 4>}, {pipeline_mode = #tpu.pipeline_mode<synchronous>, transform_indices = @transform_4, window_bounds = array<i64: 1, 4>}, {pipeline_mode = #tpu.pipeline_mode<synchronous>, transform_indices = @transform_5, window_bounds = array<i64: 3, 3, 4, 8>}, {pipeline_mode = #tpu.pipeline_mode<synchronous>, transform_indices = @transform_6, window_bounds = array<i64: 1, 8>}, {transform_indices = @transform_7, window_bounds = array<i64: 1, 8, 8, 8>}]} {
    %cst = arith.constant 0.000000e+00 : f32
    %0 = vector.broadcast %cst : f32 to vector<1x18x4xf32>
    %cst_0 = arith.constant 0.000000e+00 : f32
    %1 = vector.broadcast %cst_0 : f32 to vector<16x1x4xf32>
    %c0 = arith.constant 0 : index
    %c7 = arith.constant 7 : index
    %c0_1 = arith.constant 0 : index
    %2 = vector.load %arg9[%c0, %c7, %c0_1] : memref<18x32x4xf32, #tpu.memory_space<vmem>>, vector<1x18x4xf32>
    tpu.vector_store %arg9[%c0, %c7, %c0_1], %0 {strides = array<i32>} : memref<18x32x4xf32, #tpu.memory_space<vmem>>, vector<1x18x4xf32>,
    %c17 = arith.constant 17 : index
    %c7_2 = arith.constant 7 : index
    %c0_3 = arith.constant 0 : index
    %3 = vector.load %arg9[%c17, %c7_2, %c0_3] : memref<18x32x4xf32, #tpu.memory_space<vmem>>, vector<1x18x4xf32>
    tpu.vector_store %arg9[%c17, %c7_2, %c0_3], %0 {strides = array<i32>} : memref<18x32x4xf32, #tpu.memory_space<vmem>>, vector<1x18x4xf32>,
    %c1 = arith.constant 1 : index
    %c7_4 = arith.constant 7 : index
    %c0_5 = arith.constant 0 : index
    %4 = vector.load %arg9[%c1, %c7_4, %c0_5] : memref<18x32x4xf32, #tpu.memory_space<vmem>>, vector<16x1x4xf32>
    tpu.vector_store %arg9[%c1, %c7_4, %c0_5], %1 {strides = array<i32>} : memref<18x32x4xf32, #tpu.memory_space<vmem>>, vector<16x1x4xf32>,
    %c1_6 = arith.constant 1 : index
    %c24 = arith.constant 24 : index
    %c0_7 = arith.constant 0 : index
    %5 = vector.load %arg9[%c1_6, %c24, %c0_7] : memref<18x32x4xf32, #tpu.memory_space<vmem>>, vector<16x1x4xf32>
    tpu.vector_store %arg9[%c1_6, %c24, %c0_7], %1 {strides = array<i32>} : memref<18x32x4xf32, #tpu.memory_space<vmem>>, vector<16x1x4xf32>,
    %c0_8 = arith.constant 0 : index
    %c0_9 = arith.constant 0 : index
    %c0_10 = arith.constant 0 : index
    %c0_11 = arith.constant 0 : index
    %6 = vector.load %arg1[%c0_8, %c0_9, %c0_10, %c0_11] : memref<1x16x16x4xf32, #tpu.memory_space<vmem>>, vector<1x16x16x4xf32>
    %7 = vector.shape_cast %6 : vector<1x16x16x4xf32> to vector<16x16x4xf32>
    %c1_12 = arith.constant 1 : index
    %c8 = arith.constant 8 : index
    %c0_13 = arith.constant 0 : index
    %8 = vector.load %arg9[%c1_12, %c8, %c0_13] : memref<18x32x4xf32, #tpu.memory_space<vmem>>, vector<16x16x4xf32>
    tpu.vector_store %arg9[%c1_12, %c8, %c0_13], %7 {strides = array<i32>} : memref<18x32x4xf32, #tpu.memory_space<vmem>>, vector<16x16x4xf32>,
    %c0_14 = arith.constant 0 : index
    %c0_15 = arith.constant 0 : index
    %c0_16 = arith.constant 0 : index
    %c0_17 = arith.constant 0 : index
    %9 = vector.load %arg2[%c0_14, %c0_15, %c0_16, %c0_17] : memref<3x3x4x4xbf16, #tpu.memory_space<vmem>>, vector<3x3x4x4xbf16>
    %cst_18 = arith.constant 0.000000e+00 : f32
    %10 = vector.broadcast %cst_18 : f32 to vector<256x4xf32>
    %c0_19 = arith.constant 0 : index
    %c7_20 = arith.constant 7 : index
    %c0_21 = arith.constant 0 : index
    %11 = vector.load %arg9[%c0_19, %c7_20, %c0_21] : memref<18x32x4xf32, #tpu.memory_space<vmem>>, vector<16x16x4xf32>
    %12 = vector.shape_cast %11 : vector<16x16x4xf32> to vector<256x4xf32>
    %13 = arith.truncf %12 : vector<256x4xf32> to vector<256x4xbf16>
    %14 = vector.extract_strided_slice %9 {offsets = [0, 0, 0, 0], sizes = [1, 1, 4, 4], strides = [1, 1, 1, 1]} : vector<3x3x4x4xbf16> to vector<1x1x4x4xbf16>
    %15 = vector.shape_cast %14 : vector<1x1x4x4xbf16> to vector<4x4xbf16>
    %cst_22 = arith.constant dense<0.000000e+00> : vector<256x4xf32>
    %16 = tpu.matmul %13, %15, %cst_22 {dimension_numbers = #tpu.dot_dimension_numbers<[1], [0], [0], [1], [0, 0, 1, 1], [], []>} : vector<256x4xbf16>, vector<4x4xbf16>, vector<256x4xf32> -> vector<256x4xf32>
    %17 = arith.addf %10, %16 : vector<256x4xf32>
    %c0_23 = arith.constant 0 : index
    %c8_24 = arith.constant 8 : index
    %c0_25 = arith.constant 0 : index
    %18 = vector.load %arg9[%c0_23, %c8_24, %c0_25] : memref<18x32x4xf32, #tpu.memory_space<vmem>>, vector<16x16x4xf32>
    %19 = vector.shape_cast %18 : vector<16x16x4xf32> to vector<256x4xf32>
    %20 = arith.truncf %19 : vector<256x4xf32> to vector<256x4xbf16>
    %21 = vector.extract_strided_slice %9 {offsets = [0, 1, 0, 0], sizes = [1, 1, 4, 4], strides = [1, 1, 1, 1]} : vector<3x3x4x4xbf16> to vector<1x1x4x4xbf16>
    %22 = vector.shape_cast %21 : vector<1x1x4x4xbf16> to vector<4x4xbf16>
    %cst_26 = arith.constant dense<0.000000e+00> : vector<256x4xf32>
    %23 = tpu.matmul %20, %22, %cst_26 {dimension_numbers = #tpu.dot_dimension_numbers<[1], [0], [0], [1], [0, 0, 1, 1], [], []>} : vector<256x4xbf16>, vector<4x4xbf16>, vector<256x4xf32> -> vector<256x4xf32>
    %24 = arith.addf %17, %23 : vector<256x4xf32>
    %c0_27 = arith.constant 0 : index
    %c9 = arith.constant 9 : index
    %c0_28 = arith.constant 0 : index
    %25 = vector.load %arg9[%c0_27, %c9, %c0_28] : memref<18x32x4xf32, #tpu.memory_space<vmem>>, vector<16x16x4xf32>
    %26 = vector.shape_cast %25 : vector<16x16x4xf32> to vector<256x4xf32>
    %27 = arith.truncf %26 : vector<256x4xf32> to vector<256x4xbf16>
    %28 = vector.extract_strided_slice %9 {offsets = [0, 2, 0, 0], sizes = [1, 1, 4, 4], strides = [1, 1, 1, 1]} : vector<3x3x4x4xbf16> to vector<1x1x4x4xbf16>
    %29 = vector.shape_cast %28 : vector<1x1x4x4xbf16> to vector<4x4xbf16>
    %cst_29 = arith.constant dense<0.000000e+00> : vector<256x4xf32>
    %30 = tpu.matmul %27, %29, %cst_29 {dimension_numbers = #tpu.dot_dimension_numbers<[1], [0], [0], [1], [0, 0, 1, 1], [], []>} : vector<256x4xbf16>, vector<4x4xbf16>, vector<256x4xf32> -> vector<256x4xf32>
    %31 = arith.addf %24, %30 : vector<256x4xf32>
    %c1_30 = arith.constant 1 : index
    %c7_31 = arith.constant 7 : index
    %c0_32 = arith.constant 0 : index
    %32 = vector.load %arg9[%c1_30, %c7_31, %c0_32] : memref<18x32x4xf32, #tpu.memory_space<vmem>>, vector<16x16x4xf32>
    %33 = vector.shape_cast %32 : vector<16x16x4xf32> to vector<256x4xf32>
    %34 = arith.truncf %33 : vector<256x4xf32> to vector<256x4xbf16>
    %35 = vector.extract_strided_slice %9 {offsets = [1, 0, 0, 0], sizes = [1, 1, 4, 4], strides = [1, 1, 1, 1]} : vector<3x3x4x4xbf16> to vector<1x1x4x4xbf16>
    %36 = vector.shape_cast %35 : vector<1x1x4x4xbf16> to vector<4x4xbf16>
    %cst_33 = arith.constant dense<0.000000e+00> : vector<256x4xf32>
    %37 = tpu.matmul %34, %36, %cst_33 {dimension_numbers = #tpu.dot_dimension_numbers<[1], [0], [0], [1], [0, 0, 1, 1], [], []>} : vector<256x4xbf16>, vector<4x4xbf16>, vector<256x4xf32> -> vector<256x4xf32>
    %38 = arith.addf %31, %37 : vector<256x4xf32>
    %c1_34 = arith.constant 1 : index
    %c8_35 = arith.constant 8 : index
    %c0_36 = arith.constant 0 : index
    %39 = vector.load %arg9[%c1_34, %c8_35, %c0_36] : memref<18x32x4xf32, #tpu.memory_space<vmem>>, vector<16x16x4xf32>
    %40 = vector.shape_cast %39 : vector<16x16x4xf32> to vector<256x4xf32>
    %41 = arith.truncf %40 : vector<256x4xf32> to vector<256x4xbf16>
    %42 = vector.extract_strided_slice %9 {offsets = [1, 1, 0, 0], sizes = [1, 1, 4, 4], strides = [1, 1, 1, 1]} : vector<3x3x4x4xbf16> to vector<1x1x4x4xbf16>
    %43 = vector.shape_cast %42 : vector<1x1x4x4xbf16> to vector<4x4xbf16>
    %cst_37 = arith.constant dense<0.000000e+00> : vector<256x4xf32>
    %44 = tpu.matmul %41, %43, %cst_37 {dimension_numbers = #tpu.dot_dimension_numbers<[1], [0], [0], [1], [0, 0, 1, 1], [], []>} : vector<256x4xbf16>, vector<4x4xbf16>, vector<256x4xf32> -> vector<256x4xf32>
    %45 = arith.addf %38, %44 : vector<256x4xf32>
    %c1_38 = arith.constant 1 : index
    %c9_39 = arith.constant 9 : index
    %c0_40 = arith.constant 0 : index
    %46 = vector.load %arg9[%c1_38, %c9_39, %c0_40] : memref<18x32x4xf32, #tpu.memory_space<vmem>>, vector<16x16x4xf32>
    %47 = vector.shape_cast %46 : vector<16x16x4xf32> to vector<256x4xf32>
    %48 = arith.truncf %47 : vector<256x4xf32> to vector<256x4xbf16>
    %49 = vector.extract_strided_slice %9 {offsets = [1, 2, 0, 0], sizes = [1, 1, 4, 4], strides = [1, 1, 1, 1]} : vector<3x3x4x4xbf16> to vector<1x1x4x4xbf16>
    %50 = vector.shape_cast %49 : vector<1x1x4x4xbf16> to vector<4x4xbf16>
    %cst_41 = arith.constant dense<0.000000e+00> : vector<256x4xf32>
    %51 = tpu.matmul %48, %50, %cst_41 {dimension_numbers = #tpu.dot_dimension_numbers<[1], [0], [0], [1], [0, 0, 1, 1], [], []>} : vector<256x4xbf16>, vector<4x4xbf16>, vector<256x4xf32> -> vector<256x4xf32>
    %52 = arith.addf %45, %51 : vector<256x4xf32>
    %c2 = arith.constant 2 : index
    %c7_42 = arith.constant 7 : index
    %c0_43 = arith.constant 0 : index
    %53 = vector.load %arg9[%c2, %c7_42, %c0_43] : memref<18x32x4xf32, #tpu.memory_space<vmem>>, vector<16x16x4xf32>
    %54 = vector.shape_cast %53 : vector<16x16x4xf32> to vector<256x4xf32>
    %55 = arith.truncf %54 : vector<256x4xf32> to vector<256x4xbf16>
    %56 = vector.extract_strided_slice %9 {offsets = [2, 0, 0, 0], sizes = [1, 1, 4, 4], strides = [1, 1, 1, 1]} : vector<3x3x4x4xbf16> to vector<1x1x4x4xbf16>
    %57 = vector.shape_cast %56 : vector<1x1x4x4xbf16> to vector<4x4xbf16>
    %cst_44 = arith.constant dense<0.000000e+00> : vector<256x4xf32>
    %58 = tpu.matmul %55, %57, %cst_44 {dimension_numbers = #tpu.dot_dimension_numbers<[1], [0], [0], [1], [0, 0, 1, 1], [], []>} : vector<256x4xbf16>, vector<4x4xbf16>, vector<256x4xf32> -> vector<256x4xf32>
    %59 = arith.addf %52, %58 : vector<256x4xf32>
    %c2_45 = arith.constant 2 : index
    %c8_46 = arith.constant 8 : index
    %c0_47 = arith.constant 0 : index
    %60 = vector.load %arg9[%c2_45, %c8_46, %c0_47] : memref<18x32x4xf32, #tpu.memory_space<vmem>>, vector<16x16x4xf32>
    %61 = vector.shape_cast %60 : vector<16x16x4xf32> to vector<256x4xf32>
    %62 = arith.truncf %61 : vector<256x4xf32> to vector<256x4xbf16>
    %63 = vector.extract_strided_slice %9 {offsets = [2, 1, 0, 0], sizes = [1, 1, 4, 4], strides = [1, 1, 1, 1]} : vector<3x3x4x4xbf16> to vector<1x1x4x4xbf16>
    %64 = vector.shape_cast %63 : vector<1x1x4x4xbf16> to vector<4x4xbf16>
    %cst_48 = arith.constant dense<0.000000e+00> : vector<256x4xf32>
    %65 = tpu.matmul %62, %64, %cst_48 {dimension_numbers = #tpu.dot_dimension_numbers<[1], [0], [0], [1], [0, 0, 1, 1], [], []>} : vector<256x4xbf16>, vector<4x4xbf16>, vector<256x4xf32> -> vector<256x4xf32>
    %66 = arith.addf %59, %65 : vector<256x4xf32>
    %c2_49 = arith.constant 2 : index
    %c9_50 = arith.constant 9 : index
    %c0_51 = arith.constant 0 : index
    %67 = vector.load %arg9[%c2_49, %c9_50, %c0_51] : memref<18x32x4xf32, #tpu.memory_space<vmem>>, vector<16x16x4xf32>
    %68 = vector.shape_cast %67 : vector<16x16x4xf32> to vector<256x4xf32>
    %69 = arith.truncf %68 : vector<256x4xf32> to vector<256x4xbf16>
    %70 = vector.extract_strided_slice %9 {offsets = [2, 2, 0, 0], sizes = [1, 1, 4, 4], strides = [1, 1, 1, 1]} : vector<3x3x4x4xbf16> to vector<1x1x4x4xbf16>
    %71 = vector.shape_cast %70 : vector<1x1x4x4xbf16> to vector<4x4xbf16>
    %cst_52 = arith.constant dense<0.000000e+00> : vector<256x4xf32>
    %72 = tpu.matmul %69, %71, %cst_52 {dimension_numbers = #tpu.dot_dimension_numbers<[1], [0], [0], [1], [0, 0, 1, 1], [], []>} : vector<256x4xbf16>, vector<4x4xbf16>, vector<256x4xf32> -> vector<256x4xf32>
    %73 = arith.addf %66, %72 : vector<256x4xf32>
    %c0_53 = arith.constant 0 : index
    %c0_54 = arith.constant 0 : index
    %74 = vector.load %arg3[%c0_53, %c0_54] : memref<1x4xf32, #tpu.memory_space<vmem>>, vector<1x4xf32>
    %75 = vector.broadcast %74 : vector<1x4xf32> to vector<256x4xf32>
    %76 = arith.addf %73, %75 : vector<256x4xf32>
    %cst_55 = arith.constant 0.000000e+00 : f32
    %77 = vector.broadcast %cst_55 : f32 to vector<256x4xf32>
    %78 = arith.maximumf %76, %77 : vector<256x4xf32>
    %79 = vector.shape_cast %7 : vector<16x16x4xf32> to vector<256x4xf32>
    %80 = arith.addf %78, %79 : vector<256x4xf32>
    %81 = vector.shape_cast %80 : vector<256x4xf32> to vector<16x16x4xf32>
    %c1_56 = arith.constant 1 : index
    %c8_57 = arith.constant 8 : index
    %c0_58 = arith.constant 0 : index
    %82 = vector.load %arg9[%c1_56, %c8_57, %c0_58] : memref<18x32x4xf32, #tpu.memory_space<vmem>>, vector<16x16x4xf32>
    tpu.vector_store %arg9[%c1_56, %c8_57, %c0_58], %81 {strides = array<i32>} : memref<18x32x4xf32, #tpu.memory_space<vmem>>, vector<16x16x4xf32>,
    %c0_59 = arith.constant 0 : index
    %c0_60 = arith.constant 0 : index
    %c0_61 = arith.constant 0 : index
    %c0_62 = arith.constant 0 : index
    %83 = vector.load %arg4[%c0_59, %c0_60, %c0_61, %c0_62] : memref<3x3x4x4xbf16, #tpu.memory_space<vmem>>, vector<3x3x4x4xbf16>
    %cst_63 = arith.constant 0.000000e+00 : f32
    %84 = vector.broadcast %cst_63 : f32 to vector<256x4xf32>
    %c0_64 = arith.constant 0 : index
    %c7_65 = arith.constant 7 : index
    %c0_66 = arith.constant 0 : index
    %85 = vector.load %arg9[%c0_64, %c7_65, %c0_66] : memref<18x32x4xf32, #tpu.memory_space<vmem>>, vector<16x16x4xf32>
    %86 = vector.shape_cast %85 : vector<16x16x4xf32> to vector<256x4xf32>
    %87 = arith.truncf %86 : vector<256x4xf32> to vector<256x4xbf16>
    %88 = vector.extract_strided_slice %83 {offsets = [0, 0, 0, 0], sizes = [1, 1, 4, 4], strides = [1, 1, 1, 1]} : vector<3x3x4x4xbf16> to vector<1x1x4x4xbf16>
    %89 = vector.shape_cast %88 : vector<1x1x4x4xbf16> to vector<4x4xbf16>
    %cst_67 = arith.constant dense<0.000000e+00> : vector<256x4xf32>
    %90 = tpu.matmul %87, %89, %cst_67 {dimension_numbers = #tpu.dot_dimension_numbers<[1], [0], [0], [1], [0, 0, 1, 1], [], []>} : vector<256x4xbf16>, vector<4x4xbf16>, vector<256x4xf32> -> vector<256x4xf32>
    %91 = arith.addf %84, %90 : vector<256x4xf32>
    %c0_68 = arith.constant 0 : index
    %c8_69 = arith.constant 8 : index
    %c0_70 = arith.constant 0 : index
    %92 = vector.load %arg9[%c0_68, %c8_69, %c0_70] : memref<18x32x4xf32, #tpu.memory_space<vmem>>, vector<16x16x4xf32>
    %93 = vector.shape_cast %92 : vector<16x16x4xf32> to vector<256x4xf32>
    %94 = arith.truncf %93 : vector<256x4xf32> to vector<256x4xbf16>
    %95 = vector.extract_strided_slice %83 {offsets = [0, 1, 0, 0], sizes = [1, 1, 4, 4], strides = [1, 1, 1, 1]} : vector<3x3x4x4xbf16> to vector<1x1x4x4xbf16>
    %96 = vector.shape_cast %95 : vector<1x1x4x4xbf16> to vector<4x4xbf16>
    %cst_71 = arith.constant dense<0.000000e+00> : vector<256x4xf32>
    %97 = tpu.matmul %94, %96, %cst_71 {dimension_numbers = #tpu.dot_dimension_numbers<[1], [0], [0], [1], [0, 0, 1, 1], [], []>} : vector<256x4xbf16>, vector<4x4xbf16>, vector<256x4xf32> -> vector<256x4xf32>
    %98 = arith.addf %91, %97 : vector<256x4xf32>
    %c0_72 = arith.constant 0 : index
    %c9_73 = arith.constant 9 : index
    %c0_74 = arith.constant 0 : index
    %99 = vector.load %arg9[%c0_72, %c9_73, %c0_74] : memref<18x32x4xf32, #tpu.memory_space<vmem>>, vector<16x16x4xf32>
    %100 = vector.shape_cast %99 : vector<16x16x4xf32> to vector<256x4xf32>
    %101 = arith.truncf %100 : vector<256x4xf32> to vector<256x4xbf16>
    %102 = vector.extract_strided_slice %83 {offsets = [0, 2, 0, 0], sizes = [1, 1, 4, 4], strides = [1, 1, 1, 1]} : vector<3x3x4x4xbf16> to vector<1x1x4x4xbf16>
    %103 = vector.shape_cast %102 : vector<1x1x4x4xbf16> to vector<4x4xbf16>
    %cst_75 = arith.constant dense<0.000000e+00> : vector<256x4xf32>
    %104 = tpu.matmul %101, %103, %cst_75 {dimension_numbers = #tpu.dot_dimension_numbers<[1], [0], [0], [1], [0, 0, 1, 1], [], []>} : vector<256x4xbf16>, vector<4x4xbf16>, vector<256x4xf32> -> vector<256x4xf32>
    %105 = arith.addf %98, %104 : vector<256x4xf32>
    %c1_76 = arith.constant 1 : index
    %c7_77 = arith.constant 7 : index
    %c0_78 = arith.constant 0 : index
    %106 = vector.load %arg9[%c1_76, %c7_77, %c0_78] : memref<18x32x4xf32, #tpu.memory_space<vmem>>, vector<16x16x4xf32>
    %107 = vector.shape_cast %106 : vector<16x16x4xf32> to vector<256x4xf32>
    %108 = arith.truncf %107 : vector<256x4xf32> to vector<256x4xbf16>
    %109 = vector.extract_strided_slice %83 {offsets = [1, 0, 0, 0], sizes = [1, 1, 4, 4], strides = [1, 1, 1, 1]} : vector<3x3x4x4xbf16> to vector<1x1x4x4xbf16>
    %110 = vector.shape_cast %109 : vector<1x1x4x4xbf16> to vector<4x4xbf16>
    %cst_79 = arith.constant dense<0.000000e+00> : vector<256x4xf32>
    %111 = tpu.matmul %108, %110, %cst_79 {dimension_numbers = #tpu.dot_dimension_numbers<[1], [0], [0], [1], [0, 0, 1, 1], [], []>} : vector<256x4xbf16>, vector<4x4xbf16>, vector<256x4xf32> -> vector<256x4xf32>
    %112 = arith.addf %105, %111 : vector<256x4xf32>
    %c1_80 = arith.constant 1 : index
    %c8_81 = arith.constant 8 : index
    %c0_82 = arith.constant 0 : index
    %113 = vector.load %arg9[%c1_80, %c8_81, %c0_82] : memref<18x32x4xf32, #tpu.memory_space<vmem>>, vector<16x16x4xf32>
    %114 = vector.shape_cast %113 : vector<16x16x4xf32> to vector<256x4xf32>
    %115 = arith.truncf %114 : vector<256x4xf32> to vector<256x4xbf16>
    %116 = vector.extract_strided_slice %83 {offsets = [1, 1, 0, 0], sizes = [1, 1, 4, 4], strides = [1, 1, 1, 1]} : vector<3x3x4x4xbf16> to vector<1x1x4x4xbf16>
    %117 = vector.shape_cast %116 : vector<1x1x4x4xbf16> to vector<4x4xbf16>
    %cst_83 = arith.constant dense<0.000000e+00> : vector<256x4xf32>
    %118 = tpu.matmul %115, %117, %cst_83 {dimension_numbers = #tpu.dot_dimension_numbers<[1], [0], [0], [1], [0, 0, 1, 1], [], []>} : vector<256x4xbf16>, vector<4x4xbf16>, vector<256x4xf32> -> vector<256x4xf32>
    %119 = arith.addf %112, %118 : vector<256x4xf32>
    %c1_84 = arith.constant 1 : index
    %c9_85 = arith.constant 9 : index
    %c0_86 = arith.constant 0 : index
    %120 = vector.load %arg9[%c1_84, %c9_85, %c0_86] : memref<18x32x4xf32, #tpu.memory_space<vmem>>, vector<16x16x4xf32>
    %121 = vector.shape_cast %120 : vector<16x16x4xf32> to vector<256x4xf32>
    %122 = arith.truncf %121 : vector<256x4xf32> to vector<256x4xbf16>
    %123 = vector.extract_strided_slice %83 {offsets = [1, 2, 0, 0], sizes = [1, 1, 4, 4], strides = [1, 1, 1, 1]} : vector<3x3x4x4xbf16> to vector<1x1x4x4xbf16>
    %124 = vector.shape_cast %123 : vector<1x1x4x4xbf16> to vector<4x4xbf16>
    %cst_87 = arith.constant dense<0.000000e+00> : vector<256x4xf32>
    %125 = tpu.matmul %122, %124, %cst_87 {dimension_numbers = #tpu.dot_dimension_numbers<[1], [0], [0], [1], [0, 0, 1, 1], [], []>} : vector<256x4xbf16>, vector<4x4xbf16>, vector<256x4xf32> -> vector<256x4xf32>
    %126 = arith.addf %119, %125 : vector<256x4xf32>
    %c2_88 = arith.constant 2 : index
    %c7_89 = arith.constant 7 : index
    %c0_90 = arith.constant 0 : index
    %127 = vector.load %arg9[%c2_88, %c7_89, %c0_90] : memref<18x32x4xf32, #tpu.memory_space<vmem>>, vector<16x16x4xf32>
    %128 = vector.shape_cast %127 : vector<16x16x4xf32> to vector<256x4xf32>
    %129 = arith.truncf %128 : vector<256x4xf32> to vector<256x4xbf16>
    %130 = vector.extract_strided_slice %83 {offsets = [2, 0, 0, 0], sizes = [1, 1, 4, 4], strides = [1, 1, 1, 1]} : vector<3x3x4x4xbf16> to vector<1x1x4x4xbf16>
    %131 = vector.shape_cast %130 : vector<1x1x4x4xbf16> to vector<4x4xbf16>
    %cst_91 = arith.constant dense<0.000000e+00> : vector<256x4xf32>
    %132 = tpu.matmul %129, %131, %cst_91 {dimension_numbers = #tpu.dot_dimension_numbers<[1], [0], [0], [1], [0, 0, 1, 1], [], []>} : vector<256x4xbf16>, vector<4x4xbf16>, vector<256x4xf32> -> vector<256x4xf32>
    %133 = arith.addf %126, %132 : vector<256x4xf32>
    %c2_92 = arith.constant 2 : index
    %c8_93 = arith.constant 8 : index
    %c0_94 = arith.constant 0 : index
    %134 = vector.load %arg9[%c2_92, %c8_93, %c0_94] : memref<18x32x4xf32, #tpu.memory_space<vmem>>, vector<16x16x4xf32>
    %135 = vector.shape_cast %134 : vector<16x16x4xf32> to vector<256x4xf32>
    %136 = arith.truncf %135 : vector<256x4xf32> to vector<256x4xbf16>
    %137 = vector.extract_strided_slice %83 {offsets = [2, 1, 0, 0], sizes = [1, 1, 4, 4], strides = [1, 1, 1, 1]} : vector<3x3x4x4xbf16> to vector<1x1x4x4xbf16>
    %138 = vector.shape_cast %137 : vector<1x1x4x4xbf16> to vector<4x4xbf16>
    %cst_95 = arith.constant dense<0.000000e+00> : vector<256x4xf32>
    %139 = tpu.matmul %136, %138, %cst_95 {dimension_numbers = #tpu.dot_dimension_numbers<[1], [0], [0], [1], [0, 0, 1, 1], [], []>} : vector<256x4xbf16>, vector<4x4xbf16>, vector<256x4xf32> -> vector<256x4xf32>
    %140 = arith.addf %133, %139 : vector<256x4xf32>
    %c2_96 = arith.constant 2 : index
    %c9_97 = arith.constant 9 : index
    %c0_98 = arith.constant 0 : index
    %141 = vector.load %arg9[%c2_96, %c9_97, %c0_98] : memref<18x32x4xf32, #tpu.memory_space<vmem>>, vector<16x16x4xf32>
    %142 = vector.shape_cast %141 : vector<16x16x4xf32> to vector<256x4xf32>
    %143 = arith.truncf %142 : vector<256x4xf32> to vector<256x4xbf16>
    %144 = vector.extract_strided_slice %83 {offsets = [2, 2, 0, 0], sizes = [1, 1, 4, 4], strides = [1, 1, 1, 1]} : vector<3x3x4x4xbf16> to vector<1x1x4x4xbf16>
    %145 = vector.shape_cast %144 : vector<1x1x4x4xbf16> to vector<4x4xbf16>
    %cst_99 = arith.constant dense<0.000000e+00> : vector<256x4xf32>
    %146 = tpu.matmul %143, %145, %cst_99 {dimension_numbers = #tpu.dot_dimension_numbers<[1], [0], [0], [1], [0, 0, 1, 1], [], []>} : vector<256x4xbf16>, vector<4x4xbf16>, vector<256x4xf32> -> vector<256x4xf32>
    %147 = arith.addf %140, %146 : vector<256x4xf32>
    %c0_100 = arith.constant 0 : index
    %c0_101 = arith.constant 0 : index
    %148 = vector.load %arg5[%c0_100, %c0_101] : memref<1x4xf32, #tpu.memory_space<vmem>>, vector<1x4xf32>
    %149 = vector.broadcast %148 : vector<1x4xf32> to vector<256x4xf32>
    %150 = arith.addf %147, %149 : vector<256x4xf32>
    %cst_102 = arith.constant 0.000000e+00 : f32
    %151 = vector.broadcast %cst_102 : f32 to vector<256x4xf32>
    %152 = arith.maximumf %150, %151 : vector<256x4xf32>
    %153 = arith.addf %152, %80 : vector<256x4xf32>
    %154 = vector.shape_cast %153 : vector<256x4xf32> to vector<16x16x4xf32>
    %c1_103 = arith.constant 1 : index
    %c8_104 = arith.constant 8 : index
    %c0_105 = arith.constant 0 : index
    %155 = vector.load %arg9[%c1_103, %c8_104, %c0_105] : memref<18x32x4xf32, #tpu.memory_space<vmem>>, vector<16x16x4xf32>
    tpu.vector_store %arg9[%c1_103, %c8_104, %c0_105], %154 {strides = array<i32>} : memref<18x32x4xf32, #tpu.memory_space<vmem>>, vector<16x16x4xf32>,
    %c0_106 = arith.constant 0 : index
    %c0_107 = arith.constant 0 : index
    %c0_108 = arith.constant 0 : index
    %c0_109 = arith.constant 0 : index
    %156 = vector.load %arg6[%c0_106, %c0_107, %c0_108, %c0_109] : memref<3x3x4x8xbf16, #tpu.memory_space<vmem>>, vector<3x3x4x8xbf16>
    %cst_110 = arith.constant 0.000000e+00 : f32
    %157 = vector.broadcast %cst_110 : f32 to vector<64x8xf32>
    %c0_111 = arith.constant 0 : index
    %c7_112 = arith.constant 7 : index
    %c0_113 = arith.constant 0 : index
    %158 = tpu.strided_load %arg9[%c0_111, %c7_112, %c0_113] {strides = array<i32: 2, 2, 1>} : memref<18x32x4xf32, #tpu.memory_space<vmem>>, vector<8x8x4xf32>
    %159 = vector.shape_cast %158 : vector<8x8x4xf32> to vector<64x4xf32>
    %160 = arith.truncf %159 : vector<64x4xf32> to vector<64x4xbf16>
    %161 = vector.extract_strided_slice %156 {offsets = [0, 0, 0, 0], sizes = [1, 1, 4, 8], strides = [1, 1, 1, 1]} : vector<3x3x4x8xbf16> to vector<1x1x4x8xbf16>
    %162 = vector.shape_cast %161 : vector<1x1x4x8xbf16> to vector<4x8xbf16>
    %cst_114 = arith.constant dense<0.000000e+00> : vector<64x8xf32>
    %163 = tpu.matmul %160, %162, %cst_114 {dimension_numbers = #tpu.dot_dimension_numbers<[1], [0], [0], [1], [0, 0, 1, 1], [], []>} : vector<64x4xbf16>, vector<4x8xbf16>, vector<64x8xf32> -> vector<64x8xf32>
    %164 = arith.addf %157, %163 : vector<64x8xf32>
    %c0_115 = arith.constant 0 : index
    %c8_116 = arith.constant 8 : index
    %c0_117 = arith.constant 0 : index
    %165 = tpu.strided_load %arg9[%c0_115, %c8_116, %c0_117] {strides = array<i32: 2, 2, 1>} : memref<18x32x4xf32, #tpu.memory_space<vmem>>, vector<8x8x4xf32>
    %166 = vector.shape_cast %165 : vector<8x8x4xf32> to vector<64x4xf32>
    %167 = arith.truncf %166 : vector<64x4xf32> to vector<64x4xbf16>
    %168 = vector.extract_strided_slice %156 {offsets = [0, 1, 0, 0], sizes = [1, 1, 4, 8], strides = [1, 1, 1, 1]} : vector<3x3x4x8xbf16> to vector<1x1x4x8xbf16>
    %169 = vector.shape_cast %168 : vector<1x1x4x8xbf16> to vector<4x8xbf16>
    %cst_118 = arith.constant dense<0.000000e+00> : vector<64x8xf32>
    %170 = tpu.matmul %167, %169, %cst_118 {dimension_numbers = #tpu.dot_dimension_numbers<[1], [0], [0], [1], [0, 0, 1, 1], [], []>} : vector<64x4xbf16>, vector<4x8xbf16>, vector<64x8xf32> -> vector<64x8xf32>
    %171 = arith.addf %164, %170 : vector<64x8xf32>
    %c0_119 = arith.constant 0 : index
    %c9_120 = arith.constant 9 : index
    %c0_121 = arith.constant 0 : index
    %172 = tpu.strided_load %arg9[%c0_119, %c9_120, %c0_121] {strides = array<i32: 2, 2, 1>} : memref<18x32x4xf32, #tpu.memory_space<vmem>>, vector<8x8x4xf32>
    %173 = vector.shape_cast %172 : vector<8x8x4xf32> to vector<64x4xf32>
    %174 = arith.truncf %173 : vector<64x4xf32> to vector<64x4xbf16>
    %175 = vector.extract_strided_slice %156 {offsets = [0, 2, 0, 0], sizes = [1, 1, 4, 8], strides = [1, 1, 1, 1]} : vector<3x3x4x8xbf16> to vector<1x1x4x8xbf16>
    %176 = vector.shape_cast %175 : vector<1x1x4x8xbf16> to vector<4x8xbf16>
    %cst_122 = arith.constant dense<0.000000e+00> : vector<64x8xf32>
    %177 = tpu.matmul %174, %176, %cst_122 {dimension_numbers = #tpu.dot_dimension_numbers<[1], [0], [0], [1], [0, 0, 1, 1], [], []>} : vector<64x4xbf16>, vector<4x8xbf16>, vector<64x8xf32> -> vector<64x8xf32>
    %178 = arith.addf %171, %177 : vector<64x8xf32>
    %c1_123 = arith.constant 1 : index
    %c7_124 = arith.constant 7 : index
    %c0_125 = arith.constant 0 : index
    %179 = tpu.strided_load %arg9[%c1_123, %c7_124, %c0_125] {strides = array<i32: 2, 2, 1>} : memref<18x32x4xf32, #tpu.memory_space<vmem>>, vector<8x8x4xf32>
    %180 = vector.shape_cast %179 : vector<8x8x4xf32> to vector<64x4xf32>
    %181 = arith.truncf %180 : vector<64x4xf32> to vector<64x4xbf16>
    %182 = vector.extract_strided_slice %156 {offsets = [1, 0, 0, 0], sizes = [1, 1, 4, 8], strides = [1, 1, 1, 1]} : vector<3x3x4x8xbf16> to vector<1x1x4x8xbf16>
    %183 = vector.shape_cast %182 : vector<1x1x4x8xbf16> to vector<4x8xbf16>
    %cst_126 = arith.constant dense<0.000000e+00> : vector<64x8xf32>
    %184 = tpu.matmul %181, %183, %cst_126 {dimension_numbers = #tpu.dot_dimension_numbers<[1], [0], [0], [1], [0, 0, 1, 1], [], []>} : vector<64x4xbf16>, vector<4x8xbf16>, vector<64x8xf32> -> vector<64x8xf32>
    %185 = arith.addf %178, %184 : vector<64x8xf32>
    %c1_127 = arith.constant 1 : index
    %c8_128 = arith.constant 8 : index
    %c0_129 = arith.constant 0 : index
    %186 = tpu.strided_load %arg9[%c1_127, %c8_128, %c0_129] {strides = array<i32: 2, 2, 1>} : memref<18x32x4xf32, #tpu.memory_space<vmem>>, vector<8x8x4xf32>
    %187 = vector.shape_cast %186 : vector<8x8x4xf32> to vector<64x4xf32>
    %188 = arith.truncf %187 : vector<64x4xf32> to vector<64x4xbf16>
    %189 = vector.extract_strided_slice %156 {offsets = [1, 1, 0, 0], sizes = [1, 1, 4, 8], strides = [1, 1, 1, 1]} : vector<3x3x4x8xbf16> to vector<1x1x4x8xbf16>
    %190 = vector.shape_cast %189 : vector<1x1x4x8xbf16> to vector<4x8xbf16>
    %cst_130 = arith.constant dense<0.000000e+00> : vector<64x8xf32>
    %191 = tpu.matmul %188, %190, %cst_130 {dimension_numbers = #tpu.dot_dimension_numbers<[1], [0], [0], [1], [0, 0, 1, 1], [], []>} : vector<64x4xbf16>, vector<4x8xbf16>, vector<64x8xf32> -> vector<64x8xf32>
    %192 = arith.addf %185, %191 : vector<64x8xf32>
    %c1_131 = arith.constant 1 : index
    %c9_132 = arith.constant 9 : index
    %c0_133 = arith.constant 0 : index
    %193 = tpu.strided_load %arg9[%c1_131, %c9_132, %c0_133] {strides = array<i32: 2, 2, 1>} : memref<18x32x4xf32, #tpu.memory_space<vmem>>, vector<8x8x4xf32>
    %194 = vector.shape_cast %193 : vector<8x8x4xf32> to vector<64x4xf32>
    %195 = arith.truncf %194 : vector<64x4xf32> to vector<64x4xbf16>
    %196 = vector.extract_strided_slice %156 {offsets = [1, 2, 0, 0], sizes = [1, 1, 4, 8], strides = [1, 1, 1, 1]} : vector<3x3x4x8xbf16> to vector<1x1x4x8xbf16>
    %197 = vector.shape_cast %196 : vector<1x1x4x8xbf16> to vector<4x8xbf16>
    %cst_134 = arith.constant dense<0.000000e+00> : vector<64x8xf32>
    %198 = tpu.matmul %195, %197, %cst_134 {dimension_numbers = #tpu.dot_dimension_numbers<[1], [0], [0], [1], [0, 0, 1, 1], [], []>} : vector<64x4xbf16>, vector<4x8xbf16>, vector<64x8xf32> -> vector<64x8xf32>
    %199 = arith.addf %192, %198 : vector<64x8xf32>
    %c2_135 = arith.constant 2 : index
    %c7_136 = arith.constant 7 : index
    %c0_137 = arith.constant 0 : index
    %200 = tpu.strided_load %arg9[%c2_135, %c7_136, %c0_137] {strides = array<i32: 2, 2, 1>} : memref<18x32x4xf32, #tpu.memory_space<vmem>>, vector<8x8x4xf32>
    %201 = vector.shape_cast %200 : vector<8x8x4xf32> to vector<64x4xf32>
    %202 = arith.truncf %201 : vector<64x4xf32> to vector<64x4xbf16>
    %203 = vector.extract_strided_slice %156 {offsets = [2, 0, 0, 0], sizes = [1, 1, 4, 8], strides = [1, 1, 1, 1]} : vector<3x3x4x8xbf16> to vector<1x1x4x8xbf16>
    %204 = vector.shape_cast %203 : vector<1x1x4x8xbf16> to vector<4x8xbf16>
    %cst_138 = arith.constant dense<0.000000e+00> : vector<64x8xf32>
    %205 = tpu.matmul %202, %204, %cst_138 {dimension_numbers = #tpu.dot_dimension_numbers<[1], [0], [0], [1], [0, 0, 1, 1], [], []>} : vector<64x4xbf16>, vector<4x8xbf16>, vector<64x8xf32> -> vector<64x8xf32>
    %206 = arith.addf %199, %205 : vector<64x8xf32>
    %c2_139 = arith.constant 2 : index
    %c8_140 = arith.constant 8 : index
    %c0_141 = arith.constant 0 : index
    %207 = tpu.strided_load %arg9[%c2_139, %c8_140, %c0_141] {strides = array<i32: 2, 2, 1>} : memref<18x32x4xf32, #tpu.memory_space<vmem>>, vector<8x8x4xf32>
    %208 = vector.shape_cast %207 : vector<8x8x4xf32> to vector<64x4xf32>
    %209 = arith.truncf %208 : vector<64x4xf32> to vector<64x4xbf16>
    %210 = vector.extract_strided_slice %156 {offsets = [2, 1, 0, 0], sizes = [1, 1, 4, 8], strides = [1, 1, 1, 1]} : vector<3x3x4x8xbf16> to vector<1x1x4x8xbf16>
    %211 = vector.shape_cast %210 : vector<1x1x4x8xbf16> to vector<4x8xbf16>
    %cst_142 = arith.constant dense<0.000000e+00> : vector<64x8xf32>
    %212 = tpu.matmul %209, %211, %cst_142 {dimension_numbers = #tpu.dot_dimension_numbers<[1], [0], [0], [1], [0, 0, 1, 1], [], []>} : vector<64x4xbf16>, vector<4x8xbf16>, vector<64x8xf32> -> vector<64x8xf32>
    %213 = arith.addf %206, %212 : vector<64x8xf32>
    %c2_143 = arith.constant 2 : index
    %c9_144 = arith.constant 9 : index
    %c0_145 = arith.constant 0 : index
    %214 = tpu.strided_load %arg9[%c2_143, %c9_144, %c0_145] {strides = array<i32: 2, 2, 1>} : memref<18x32x4xf32, #tpu.memory_space<vmem>>, vector<8x8x4xf32>
    %215 = vector.shape_cast %214 : vector<8x8x4xf32> to vector<64x4xf32>
    %216 = arith.truncf %215 : vector<64x4xf32> to vector<64x4xbf16>
    %217 = vector.extract_strided_slice %156 {offsets = [2, 2, 0, 0], sizes = [1, 1, 4, 8], strides = [1, 1, 1, 1]} : vector<3x3x4x8xbf16> to vector<1x1x4x8xbf16>
    %218 = vector.shape_cast %217 : vector<1x1x4x8xbf16> to vector<4x8xbf16>
    %cst_146 = arith.constant dense<0.000000e+00> : vector<64x8xf32>
    %219 = tpu.matmul %216, %218, %cst_146 {dimension_numbers = #tpu.dot_dimension_numbers<[1], [0], [0], [1], [0, 0, 1, 1], [], []>} : vector<64x4xbf16>, vector<4x8xbf16>, vector<64x8xf32> -> vector<64x8xf32>
    %220 = arith.addf %213, %219 : vector<64x8xf32>
    %c0_147 = arith.constant 0 : index
    %c0_148 = arith.constant 0 : index
    %221 = vector.load %arg7[%c0_147, %c0_148] : memref<1x8xf32, #tpu.memory_space<vmem>>, vector<1x8xf32>
    %222 = vector.broadcast %221 : vector<1x8xf32> to vector<64x8xf32>
    %223 = arith.addf %220, %222 : vector<64x8xf32>
    %cst_149 = arith.constant 0.000000e+00 : f32
    %224 = vector.broadcast %cst_149 : f32 to vector<64x8xf32>
    %225 = arith.maximumf %223, %224 : vector<64x8xf32>
    %226 = vector.shape_cast %225 : vector<64x8xf32> to vector<8x8x8xf32>
    %c0_150 = arith.constant 0 : index
    %c0_151 = arith.constant 0 : index
    %c0_152 = arith.constant 0 : index
    %c0_153 = arith.constant 0 : index
    %227 = vector.load %arg8[%c0_150, %c0_151, %c0_152, %c0_153] : memref<1x8x8x8xf32, #tpu.memory_space<vmem>>, vector<1x8x8x8xf32>
    %228 = vector.shape_cast %227 : vector<1x8x8x8xf32> to vector<8x8x8xf32>
    %229 = vector.shape_cast %226 : vector<8x8x8xf32> to vector<1x8x8x8xf32>
    tpu.vector_store %arg8[%c0_150, %c0_151, %c0_152, %c0_153], %229 {strides = array<i32>} : memref<1x8x8x8xf32, #tpu.memory_space<vmem>>, vector<1x8x8x8xf32>,
    return
  }
  func.func @transform_0(%arg0: i32) -> (i32, i32, i32, i32) {
    %c0_i32 = arith.constant 0 : i32
    %c0_i32_0 = arith.constant 0 : i32
    %c0_i32_1 = arith.constant 0 : i32
    %c0_i32_2 = arith.constant 0 : i32
    return %arg0, %c0_i32, %c0_i32_0, %c0_i32_1 : i32, i32, i32, i32
  }
  func.func @transform_1(%arg0: i32) -> (i32, i32, i32, i32) {
    %c0_i32 = arith.constant 0 : i32
    %c0_i32_0 = arith.constant 0 : i32
    %c0_i32_1 = arith.constant 0 : i32
    %c0_i32_2 = arith.constant 0 : i32
    %c0_i32_3 = arith.constant 0 : i32
    return %c0_i32, %c0_i32_0, %c0_i32_1, %c0_i32_2 : i32, i32, i32, i32
  }
  func.func @transform_2(%arg0: i32) -> (i32, i32) {
    %c0_i32 = arith.constant 0 : i32
    %c0_i32_0 = arith.constant 0 : i32
    %c0_i32_1 = arith.constant 0 : i32
    return %c0_i32, %c0_i32_0 : i32, i32
  }
  func.func @transform_3(%arg0: i32) -> (i32, i32, i32, i32) {
    %c0_i32 = arith.constant 0 : i32
    %c0_i32_0 = arith.constant 0 : i32
    %c0_i32_1 = arith.constant 0 : i32
    %c0_i32_2 = arith.constant 0 : i32
    %c0_i32_3 = arith.constant 0 : i32
    return %c0_i32, %c0_i32_0, %c0_i32_1, %c0_i32_2 : i32, i32, i32, i32
  }
  func.func @transform_4(%arg0: i32) -> (i32, i32) {
    %c0_i32 = arith.constant 0 : i32
    %c0_i32_0 = arith.constant 0 : i32
    %c0_i32_1 = arith.constant 0 : i32
    return %c0_i32, %c0_i32_0 : i32, i32
  }
  func.func @transform_5(%arg0: i32) -> (i32, i32, i32, i32) {
    %c0_i32 = arith.constant 0 : i32
    %c0_i32_0 = arith.constant 0 : i32
    %c0_i32_1 = arith.constant 0 : i32
    %c0_i32_2 = arith.constant 0 : i32
    %c0_i32_3 = arith.constant 0 : i32
    return %c0_i32, %c0_i32_0, %c0_i32_1, %c0_i32_2 : i32, i32, i32, i32
  }
  func.func @transform_6(%arg0: i32) -> (i32, i32) {
    %c0_i32 = arith.constant 0 : i32
    %c0_i32_0 = arith.constant 0 : i32
    %c0_i32_1 = arith.constant 0 : i32
    return %c0_i32, %c0_i32_0 : i32, i32
  }
  func.func @transform_7(%arg0: i32) -> (i32, i32, i32, i32) {
    %c0_i32 = arith.constant 0 : i32
    %c0_i32_0 = arith.constant 0 : i32
    %c0_i32_1 = arith.constant 0 : i32
    %c0_i32_2 = arith.constant 0 : i32
    return %arg0, %c0_i32, %c0_i32_0, %c0_i32_1 : i32, i32, i32, i32
  }
}

</mosaic_0001>

<bundles_post_ra>
// kernel: tpu_custom_call.1
= control target key start
LH: loop header
LB: loop body
LE: loop exit
PB: predicated region body
PF: predicated region fallthrough
CT: control target
= control target key end

     0   :  { %12 = vsyncpa [#allocation4], 0  ;;  %s8287_s0 = inlined_call_operand.vmem [shape: f32[2,16,16,4], index: 0, kind: input, shape index: {}]   ;;  %s8288_s1 = inlined_call_operand.vmem [shape: bf16[3,3,4,4], index: 1, kind: input, shape index: {}]   ;;  %s8289_s2 = inlined_call_operand.vmem [shape: f32[1,4], index: 2, kind: input, shape index: {}]   ;;  %s8290_s3 = inlined_call_operand.vmem [shape: bf16[3,3,4,4], index: 3, kind: input, shape index: {}]   ;;  %s8291_s4 = inlined_call_operand.vmem [shape: f32[1,4], index: 4, kind: input, shape index: {}]   ;;  %s8292_s5 = inlined_call_operand.vmem [shape: bf16[3,3,4,8], index: 5, kind: input, shape index: {}]   ;;  %s8293_s6 = inlined_call_operand.vmem [shape: f32[1,8], index: 6, kind: input, shape index: {}]   ;;  %s8294_s7 = inlined_call_operand.hbm [shape: f32[2,8,8,8], index: 7, kind: output, shape index: {}]  }
   0x1   :  { %14 = vsyncpa [#allocation4 + $0x1], 0  ;;  %s5791_s24 = smov 0   ;;  %s5793_s25 = smov 0  }
   0x2   :  { %s5795_s26 = smov 0   ;;  %s5797_s27 = smov 0  }
   0x3 LB: > { %s5812_s28 = sadd.s32 4294967295, %s5746_s27   ;;  %s5297_s29 = sadd.s32 4294967294, %s5746_s27   ;;  %s5746_s27 = sphi %s5797_s27, %s8638_s27   ;;  %s5742_s26 = sphi %s5795_s26, %s8637_s26   ;;  %s5738_s25 = sphi %s5793_s25, %s8636_s25   ;;  %s5734_s24 = sphi %s5791_s24, %s8635_s24  }
   0x4   : > { %s5816_s30 = sadd.s32 1, %s5746_s27   ;;  %s179_s8 = sadd.s32 1, %s5742_s26 }
   0x5   : > { %s176_s9 = ssub.s32 %s5746_s27, %s5816_s30  ;;  %p189_p0 = scmp.ne.s32.totalorder %s5742_s26, %s5738_s25 }
   0x6   : > { %p177_p1 = scmp.eq.s32.totalorder %s176_s9, 0  ;;  %p190_p2 = scmp.eq.s32.totalorder %s5812_s28, 1 }
   0x7   : > { %p195_p3 = scmp.ne.s32.totalorder %s5738_s25, %s5734_s24  ;;  %p196_p4 = scmp.eq.s32.totalorder %s5297_s29, 1 }
   0x8   : > { %s5827_s10 = scalar_select %p177_p1, %s5742_s26, %s179_s8  }
   0x9   : > { %p5829_p5 = por %p190_p2, %p189_p0  ;;  %p5833_p6 = por %p196_p4, %p195_p3 }
   0xa   : > { %p5300_p7 = scmp.ge.s32.totalorder %s5746_s27, 1  ;;  %p240_p8 = scmp.lt.s32.totalorder %s5746_s27, 3 }
   0xc   : > { %p241_p9 = pnand %p5300_p7, %p240_p8 }
   0xe   : > { %244 = sbr.rel (%p241_p9) target bundleno = 1876 (0x754), region = 48 }
  0x13   : > { %v386_v0 = vld [vmem:[%s8288_s1 + $0x2] sm:$0x3]  ;;  %vm538_vm0 = vcmask 1041408   ;;  %vm278_vm1 = vcmask 31744   ;;  %vm281_vm2 = vcmask 25600   ;;  %v5748_v2 = vmov 0.0  }
  0x14   : > { %v540_v1 = vsel %vm538_vm0, %v386_v0, 0  ;;  %279 = vst.msk [vmem:[#allocation2 + $0x7] sm:$0xff] %vm278_vm1, %v5748_v2  ;;  %v389_v3 = vld [vmem:[%s8288_s1 + $0x8] sm:$0x3]  ;;  %p272_p10 = scmp.lt.s32.totalorder %s5812_s28, 1  ;;  %vm288_vm3 = vcmask 24576  }
  0x15   : > { %549 = vmatpush.bf16.msra.mxu0 %v540_v1  ;;  %280 = vst.msk [vmem:[#allocation2 + $0xf] sm:$0xff] %vm278_vm1, %v5748_v2  ;;  %v1308_v4 = vsel %vm538_vm0, %v389_v3, 0  ;;  %5635 = vmatpush.bf16.msra.mxu1 %v540_v1  ;;  %v385_v5 = vld [vmem:[%s8288_s1] sm:$0x3]  ;;  %v387_v6 = vld [vmem:[%s8288_s1 + $0x4] sm:$0x3] }
  0x16   : > { %282 = vst.msk [vmem:[#allocation2 + $0x17] sm:$0x3] %vm281_vm2, %v5748_v2  ;;  %5636 = vmatpush.bf16.msra.mxu2 %v540_v1  ;;  %s273_s21 = scalar_select %p272_p10, %s5812_s28, 1  ;;  %v680_v7 = vsel %vm538_vm0, %v385_v5, 0  ;;  %v868_v8 = vsel %vm538_vm0, %v387_v6, 0  ;;  %5637 = vmatpush.bf16.msra.mxu3 %v540_v1  ;;  %vm5162_vm4 = vcmask 64512  }
  0x17   : > { %286 = vst.msk [vmem:[#allocation2 + $0x237] sm:$0x3] %vm281_vm2, %v5748_v2  ;;  %v388_v9 = vld [vmem:[%s8288_s1 + $0x6] sm:$0x3]  ;;  %v390_v5 = vld [vmem:[%s8288_s1 + $0xa] sm:$0x3] }
  0x18   : > { %284 = vst.msk [vmem:[#allocation2 + $0x227] sm:$0xff] %vm278_vm1, %v5748_v2  ;;  %s5633_s29 = sshll.u32 %s273_s21, 8  ;;  %v1088_v10 = vsel %vm538_vm0, %v388_v9, 0  ;;  %s269_s22 = sand.u32 1, %s5738_s25  }
  0x19   : > { %1317 = vmatpush.bf16.msrb.mxu0 %v1308_v4  ;;  %689 = vmatpush.bf16.msrb.mxu1 %v680_v7  ;;  %285 = vst.msk [vmem:[#allocation2 + $0x22f] sm:$0xff] %vm278_vm1, %v5748_v2  ;;  %s5876_s13 = scalar_lea.vmem %s8287_s0, %s5633_s29  ;;  %v1528_v7 = vsel %vm538_vm0, %v390_v5, 0  ;;  %s5301_s8 = sshll.u32 %s269_s22, 6 }
  0x1a   : > { %877 = vmatpush.bf16.msrb.mxu2 %v868_v8  ;;  %1097 = vmatpush.bf16.msrb.mxu3 %v1088_v10  ;;  %v5879_v11 = vld [vmem:[%s5876_s13 + $0xc0] sm:$0xff]  ;;  %v5882_v12 = vld [vmem:[%s5876_s13 + $0xc8] sm:$0xff]  ;;  %v5885_v13 = vld [vmem:[%s5876_s13 + $0xd0] sm:$0xff]  ;;  %289 = vst.msk [vmem:[#allocation2 + $0x27] sm:$0x1] %vm288_vm3, %v5748_v2  ;;  %s8218_s9 = scalar_lea.vmem [#allocation3], %s5301_s8 }
  0x1b   : > { %8381 = vst [vmem:[#allocation6_spill] sm:$0xff] %v5879_v11  ;;  %v5892_v14 = vld [vmem:[%s5876_s13 + $0xd8] sm:$0xff]  ;;  %v5897_v16 = vld [vmem:[%s5876_s13 + $0xe0] sm:$0xff]  ;;  %v5902_v18 = vld [vmem:[%s5876_s13 + $0xe8] sm:$0xff]  ;;  %s5184_s17 = sshll.u32 %s8218_s9, 4  ;;  %s5704_s29 = scalar_lea.hbm %s8294_s7, 128  ;;  %s5185_s17 = int_to_ptr.vmem [resolvable:$true] %s5184_s17 }
  0x1c   : > { %8382 = vst [vmem:[#allocation7_spill] sm:$0xff] %v5882_v12  ;;  %v442_v15 = vld [vmem:[#allocation2 + $0x8] sm:$0xff]  ;;  %v5907_v20 = vld [vmem:[%s5876_s13] sm:$0xff]  ;;  %v5990_v43 = vld [vmem:[%s5876_s13 + $0x10] sm:$0xff] }
  0x1d   : > { %8383 = vst [vmem:[#allocation8_spill] sm:$0xff] %v5885_v13  ;;  %v443_v17 = vld [vmem:[#allocation2 + $0x10] sm:$0xff]  ;;  %v5912_v21 = vld [vmem:[%s5876_s13 + $0x8] sm:$0xff]  ;;  %v5995_v44 = vld [vmem:[%s5876_s13 + $0x18] sm:$0xff] }
  0x1e   : > { %377 = vst.msk [vmem:[#allocation2 + $0x1a8] sm:$0xff] %vm278_vm1, %v5879_v11  ;;  %v474_v19 = vpack.c.bf16 %v443_v17, %v442_v15  ;;  %v394_v34 = vld [vmem:[#allocation2 + $0x7] sm:$0xff]  ;;  %v395_v35 = vld [vmem:[#allocation2 + $0xf] sm:$0xff]  ;;  %v6017_v51 = vld [vmem:[%s5876_s13 + $0x38] sm:$0xff] }
  0x1f   : > { %8384 = vst [vmem:[#allocation9_spill] sm:$0xff] %v5892_v14  ;;  %v771_v36 = vld [vmem:[#allocation2 + $0x9] sm:$0xff]  ;;  %v772_v37 = vld [vmem:[#allocation2 + $0x11] sm:$0xff]  ;;  %v426_v38 = vpack.c.bf16 %v395_v35, %v394_v34  ;;  %v6000_v47 = vld [vmem:[%s5876_s13 + $0x20] sm:$0xff] }
  0x20   : > { %378 = vst.msk [vmem:[#allocation2 + $0x1b0] sm:$0xff] %vm278_vm1, %v5882_v12  ;;  %5304 = vmatmul.msk.bf16.vlgmr.msra.gmra.mxu0 %vm278_vm1, %v474_v19  ;;  %v803_v41 = vpack.c.bf16 %v772_v37, %v771_v36  ;;  %v6005_v48 = vld [vmem:[%s5876_s13 + $0x28] sm:$0xff]  ;;  %v6010_v49 = vld [vmem:[%s5876_s13 + $0x30] sm:$0xff]  ;;  %v6037_v58 = vld [vmem:[%s5876_s13 + $0x40] sm:$0xff] }
  0x21   : > { %8385 = vst [vmem:[#allocation10_spill] sm:$0xff] %v5897_v16  ;;  %v6040_v59 = vld [vmem:[%s5876_s13 + $0x48] sm:$0xff]  ;;  %v6064_v6 = vld [vmem:[%s5876_s13 + $0x50] sm:$0xff]  ;;  %v6068_v8 = vld [vmem:[%s5876_s13 + $0x58] sm:$0xff] }
  0x22   : > { %379 = vst.msk [vmem:[#allocation2 + $0x1c8] sm:$0xff] %vm278_vm1, %v5885_v13 }
  0x23   : > { %8386 = vst [vmem:[#allocation11_spill] sm:$0xff] %v5902_v18 }
  0x24   : > { %380 = vst.msk [vmem:[#allocation2 + $0x1d0] sm:$0xff] %vm278_vm1, %v5892_v14 }
  0x25   : > { %8387 = vst [vmem:[#allocation12_spill] sm:$0xff] %v5907_v20  ;;  %v468_v22 = vld [vmem:[#allocation2 + $0x1a8] sm:$0xff] }
  0x26   : > { %381 = vst.msk [vmem:[#allocation2 + $0x1e8] sm:$0xff] %vm278_vm1, %v5897_v16 }
  0x27   : > { %8388 = vst [vmem:[#allocation13_spill] sm:$0xff] %v5912_v21  ;;  %v469_v23 = vld [vmem:[#allocation2 + $0x1b0] sm:$0xff] }
  0x28   : > { %382 = vst.msk [vmem:[#allocation2 + $0x1f0] sm:$0xff] %vm278_vm1, %v5902_v18  ;;  %v487_v24 = vpack.c.bf16 %v469_v23, %v468_v22 }
  0x29   : > { %353 = vst.msk [vmem:[#allocation2 + $0x28] sm:$0xff] %vm278_vm1, %v5907_v20  ;;  %v470_v25 = vld [vmem:[#allocation2 + $0x1c8] sm:$0xff] }
  0x2a   : > { %354 = vst.msk [vmem:[#allocation2 + $0x30] sm:$0xff] %vm278_vm1, %v5912_v21  ;;  %5317 = vmatmul.msk.bf16.vlgmr.msra.gmra.mxu1 %vm278_vm1, %v487_v24 }
  0x2b   : > { %290 = vst.msk [vmem:[#allocation2 + $0x47] sm:$0x1] %vm288_vm3, %v5748_v2  ;;  %v471_v26 = vld [vmem:[#allocation2 + $0x1d0] sm:$0xff]  ;;  %1537 = vmatpush.bf16.msra.mxu1 %v1528_v7 }
  0x2c   : > { %291 = vst.msk [vmem:[#allocation2 + $0x67] sm:$0x1] %vm288_vm3, %v5748_v2  ;;  %v488_v27 = vpack.c.bf16 %v471_v26, %v470_v25  ;;  %v6089_v26 = vld [vmem:[%s5876_s13 + $0x60] sm:$0xff] }
  0x2d   : > { %292 = vst.msk [vmem:[#allocation2 + $0x87] sm:$0x1] %vm288_vm3, %v5748_v2  ;;  %v472_v28 = vld [vmem:[#allocation2 + $0x1e8] sm:$0xff] }
  0x2e   : > { %293 = vst.msk [vmem:[#allocation2 + $0xa7] sm:$0x1] %vm288_vm3, %v5748_v2  ;;  %5318 = vmatmul.msk.bf16.vlgmr.msra.gmra.mxu2 %vm278_vm1, %v488_v27  ;;  %v6092_v27 = vld [vmem:[%s5876_s13 + $0x68] sm:$0xff] }
  0x2f   : > { %v473_v29 = vld [vmem:[#allocation2 + $0x1f0] sm:$0xff]  ;;  %294 = vst.msk [vmem:[#allocation2 + $0xc7] sm:$0x1] %vm288_vm3, %v5748_v2 }
  0x30   : > { %v489_v30 = vpack.c.bf16 %v473_v29, %v472_v28  ;;  %295 = vst.msk [vmem:[#allocation2 + $0xe7] sm:$0x1] %vm288_vm3, %v5748_v2  ;;  %v444_v31 = vld [vmem:[#allocation2 + $0x28] sm:$0xff] }
  0x31   : > { %v445_v32 = vld [vmem:[#allocation2 + $0x30] sm:$0xff]  ;;  %296 = vst.msk [vmem:[#allocation2 + $0x107] sm:$0x1] %vm288_vm3, %v5748_v2  ;;  %v991_v39 = vld [vmem:[#allocation2 + $0x27] sm:$0xff] }
  0x32   : > { %5319 = vmatmul.msk.bf16.vlgmr.msra.gmra.mxu3 %vm278_vm1, %v489_v30  ;;  %297 = vst.msk [vmem:[#allocation2 + $0x127] sm:$0x1] %vm288_vm3, %v5748_v2  ;;  %v5942_v33 = vpack.c.bf16 %v445_v32, %v444_v31  ;;  %v992_v40 = vld [vmem:[#allocation2 + $0x2f] sm:$0xff] }
  0x33   : > { %298 = vst.msk [vmem:[#allocation2 + $0x147] sm:$0x1] %vm288_vm3, %v5748_v2  ;;  %v1023_v42 = vpack.c.bf16 %v992_v40, %v991_v39  ;;  %v773_v45 = vld [vmem:[#allocation2 + $0x29] sm:$0xff]  ;;  %v6116_v39 = vld [vmem:[%s5876_s13 + $0x78] sm:$0xff] }
  0x34   : > { %299 = vst.msk [vmem:[#allocation2 + $0x167] sm:$0x1] %vm288_vm3, %v5748_v2  ;;  %5305 = vmatmul.msk.bf16.gmra.mxu0 %vm278_vm1, %v5942_v33 }
  0x35   : > { %300 = vst.msk [vmem:[#allocation2 + $0x187] sm:$0x1] %vm288_vm3, %v5748_v2 }
  0x36   : > { %301 = vst.msk [vmem:[#allocation2 + $0x1a7] sm:$0x1] %vm288_vm3, %v5748_v2 }
  0x37   : > { %302 = vst.msk [vmem:[#allocation2 + $0x1c7] sm:$0x1] %vm288_vm3, %v5748_v2 }
  0x38   : > { %303 = vst.msk [vmem:[#allocation2 + $0x1e7] sm:$0x1] %vm288_vm3, %v5748_v2 }
  0x39   : > { %304 = vst.msk [vmem:[#allocation2 + $0x207] sm:$0x1] %vm288_vm3, %v5748_v2 }
  0x3a   : > { %305 = vst.msk [vmem:[#allocation2 + $0x38] sm:$0x1] %vm288_vm3, %v5748_v2  ;;  %5320 = vmatmul.msk.bf16.vlgmr.msrb.gmra.mxu1 %vm278_vm1, %v426_v38  ;;  %v6113_v38 = vld [vmem:[%s5876_s13 + $0x70] sm:$0xff] }
  0x3b   : > { %306 = vst.msk [vmem:[#allocation2 + $0x58] sm:$0x1] %vm288_vm3, %v5748_v2 }
  0x3c   : > { %307 = vst.msk [vmem:[#allocation2 + $0x78] sm:$0x1] %vm288_vm3, %v5748_v2 }
  0x3d   : > { %308 = vst.msk [vmem:[#allocation2 + $0x98] sm:$0x1] %vm288_vm3, %v5748_v2 }
  0x3e   : > { %309 = vst.msk [vmem:[#allocation2 + $0xb8] sm:$0x1] %vm288_vm3, %v5748_v2  ;;  %5336 = vmatmul.msk.bf16.vlgmr.msrb.gmra.mxu2 %vm278_vm1, %v803_v41 }
  0x3f   : > { %310 = vst.msk [vmem:[#allocation2 + $0xd8] sm:$0x1] %vm288_vm3, %v5748_v2 }
  0x40   : > { %311 = vst.msk [vmem:[#allocation2 + $0xf8] sm:$0x1] %vm288_vm3, %v5748_v2 }
  0x41   : > { %312 = vst.msk [vmem:[#allocation2 + $0x118] sm:$0x1] %vm288_vm3, %v5748_v2  ;;  %v774_v46 = vld [vmem:[#allocation2 + $0x31] sm:$0xff] }
  0x42   : > { %5352 = vmatmul.msk.bf16.vlgmr.msrb.gmra.mxu3 %vm278_vm1, %v1023_v42  ;;  %313 = vst.msk [vmem:[#allocation2 + $0x138] sm:$0x1] %vm288_vm3, %v5748_v2  ;;  %v6012_v50 = vpack.c.bf16 %v774_v46, %v773_v45 }
  0x43   : > { %314 = vst.msk [vmem:[#allocation2 + $0x158] sm:$0x1] %vm288_vm3, %v5748_v2 }
  0x44   : > { %315 = vst.msk [vmem:[#allocation2 + $0x178] sm:$0x1] %vm288_vm3, %v5748_v2 }
  0x45   : > { %316 = vst.msk [vmem:[#allocation2 + $0x198] sm:$0x1] %vm288_vm3, %v5748_v2 }
  0x46   : > { %317 = vst.msk [vmem:[#allocation2 + $0x1b8] sm:$0x1] %vm288_vm3, %v5748_v2 }
  0x47   : > { %318 = vst.msk [vmem:[#allocation2 + $0x1d8] sm:$0x1] %vm288_vm3, %v5748_v2 }
  0x48   : > { %8389 = vst [vmem:[#allocation14_spill] sm:$0xff] %v5990_v43 }
  0x49   : > { %319 = vst.msk [vmem:[#allocation2 + $0x1f8] sm:$0x1] %vm288_vm3, %v5748_v2 }
  0x4a   : > { %8390 = vst [vmem:[#allocation15_spill] sm:$0xff] %v5995_v44  ;;  %5321 = vmatmul.msk.bf16.gmra.mxu1 %vm278_vm1, %v1023_v42 }
  0x4b   : > { %320 = vst.msk [vmem:[#allocation2 + $0x218] sm:$0x1] %vm288_vm3, %v5748_v2 }
  0x4c   : > { %8391 = vst [vmem:[#allocation16_spill] sm:$0xff] %v6000_v47 }
  0x4d   : > { %355 = vst.msk [vmem:[#allocation2 + $0x48] sm:$0xff] %vm278_vm1, %v5990_v43 }
  0x4e   : > { %8392 = vst [vmem:[#allocation17_spill] sm:$0xff] %v6005_v48  ;;  %5337 = vmatmul.msk.bf16.gmra.mxu2 %vm278_vm1, %v6012_v50 }
  0x4f   : > { %356 = vst.msk [vmem:[#allocation2 + $0x50] sm:$0xff] %vm278_vm1, %v5995_v44 }
  0x50   : > { %8393 = vst [vmem:[#allocation18_spill] sm:$0xff] %v6010_v49 }
  0x51   : > { %357 = vst.msk [vmem:[#allocation2 + $0x68] sm:$0xff] %vm278_vm1, %v6000_v47 }
  0x52   : > { %8394 = vst [vmem:[#allocation19_spill] sm:$0xff] %v6017_v51 }
  0x53   : > { %358 = vst.msk [vmem:[#allocation2 + $0x70] sm:$0xff] %vm278_vm1, %v6005_v48 }
  0x54   : > { %359 = vst.msk [vmem:[#allocation2 + $0x88] sm:$0xff] %vm278_vm1, %v6010_v49  ;;  %v446_v52 = vld [vmem:[#allocation2 + $0x48] sm:$0xff] }
  0x55   : > { %360 = vst.msk [vmem:[#allocation2 + $0x90] sm:$0xff] %vm278_vm1, %v6017_v51  ;;  %v993_v53 = vld [vmem:[#allocation2 + $0x47] sm:$0xff] }
  0x56   : > { %v447_v54 = vld [vmem:[#allocation2 + $0x50] sm:$0xff]  ;;  %8395 = vst [vmem:[#allocation20_spill] sm:$0xff] %v6037_v58 }
  0x57   : > { %v994_v55 = vld [vmem:[#allocation2 + $0x4f] sm:$0xff]  ;;  %v6028_v56 = vpack.c.bf16 %v447_v54, %v446_v52  ;;  %8396 = vst [vmem:[#allocation21_spill] sm:$0xff] %v6040_v59 }
  0x58   : > { %v6030_v57 = vpack.c.bf16 %v994_v55, %v993_v53  ;;  %361 = vst.msk [vmem:[#allocation2 + $0xa8] sm:$0xff] %vm278_vm1, %v6037_v58  ;;  %v775_v60 = vld [vmem:[#allocation2 + $0x49] sm:$0xff]  ;;  %v776_v61 = vld [vmem:[#allocation2 + $0x51] sm:$0xff] }
  0x59   : > { %5306 = vmatmul.msk.bf16.gmra.mxu0 %vm278_vm1, %v6028_v56  ;;  %362 = vst.msk [vmem:[#allocation2 + $0xb0] sm:$0xff] %vm278_vm1, %v6040_v59  ;;  %v6046_v62 = vpack.c.bf16 %v776_v61, %v775_v60  ;;  %v448_v63 = vld [vmem:[#allocation2 + $0x68] sm:$0xff]  ;;  %v6137_v60 = vld [vmem:[%s5876_s13 + $0x80] sm:$0xff] }
  0x5a   : > { %5353 = vmatmul.msk.bf16.gmra.mxu3 %vm278_vm1, %v6030_v57  ;;  %v449_v0 = vld [vmem:[#allocation2 + $0x70] sm:$0xff]  ;;  %5322 = vmatmul.msk.bf16.gmra.mxu1 %vm278_vm1, %v6030_v57  ;;  %v995_v1 = vld [vmem:[#allocation2 + $0x67] sm:$0xff]  ;;  %8397 = vst [vmem:[#allocation22_spill] sm:$0xff] %v6064_v6 }
  0x5b   : > { %v996_v2 = vld [vmem:[#allocation2 + $0x6f] sm:$0xff]  ;;  %v6052_v3 = vpack.c.bf16 %v449_v0, %v448_v63  ;;  %8398 = vst [vmem:[#allocation23_spill] sm:$0xff] %v6068_v8  ;;  %v997_v22 = vld [vmem:[#allocation2 + $0x87] sm:$0xff] }
  0x5c   : > { %v6054_v4 = vpack.c.bf16 %v996_v2, %v995_v1  ;;  %363 = vst.msk [vmem:[#allocation2 + $0xc8] sm:$0xff] %vm278_vm1, %v6064_v6  ;;  %v777_v9 = vld [vmem:[#allocation2 + $0x69] sm:$0xff]  ;;  %v778_v10 = vld [vmem:[#allocation2 + $0x71] sm:$0xff] }
  0x5d   : > { %364 = vst.msk [vmem:[#allocation2 + $0xd0] sm:$0xff] %vm278_vm1, %v6068_v8  ;;  %v6074_v15 = vpack.c.bf16 %v778_v10, %v777_v9  ;;  %v450_v17 = vld [vmem:[#allocation2 + $0x88] sm:$0xff]  ;;  %v451_v19 = vld [vmem:[#allocation2 + $0x90] sm:$0xff] }
  0x5e   : > { %5338 = vmatmul.msk.bf16.gmra.mxu2 %vm278_vm1, %v6046_v62  ;;  %v998_v23 = vld [vmem:[#allocation2 + $0x8f] sm:$0xff]  ;;  %v6080_v24 = vpack.c.bf16 %v451_v19, %v450_v17  ;;  %8399 = vst [vmem:[#allocation24_spill] sm:$0xff] %v6089_v26 }
  0x5f   : > { %v6082_v25 = vpack.c.bf16 %v998_v23, %v997_v22  ;;  %8400 = vst [vmem:[#allocation25_spill] sm:$0xff] %v6092_v27  ;;  %v779_v28 = vld [vmem:[#allocation2 + $0x89] sm:$0xff]  ;;  %v780_v29 = vld [vmem:[#allocation2 + $0x91] sm:$0xff] }
  0x60   : > { %365 = vst.msk [vmem:[#allocation2 + $0xe8] sm:$0xff] %vm278_vm1, %v6089_v26  ;;  %v6098_v30 = vpack.c.bf16 %v780_v29, %v779_v28  ;;  %v452_v31 = vld [vmem:[#allocation2 + $0xa8] sm:$0xff]  ;;  %v453_v32 = vld [vmem:[#allocation2 + $0xb0] sm:$0xff]  ;;  %v6164_v29 = vld [vmem:[%s5876_s13 + $0x98] sm:$0xff] }
  0x61   : > { %366 = vst.msk [vmem:[#allocation2 + $0xf0] sm:$0xff] %vm278_vm1, %v6092_v27  ;;  %v999_v34 = vld [vmem:[#allocation2 + $0xa7] sm:$0xff]  ;;  %v1000_v35 = vld [vmem:[#allocation2 + $0xaf] sm:$0xff]  ;;  %v6104_v36 = vpack.c.bf16 %v453_v32, %v452_v31 }
  0x62   : > { %v6106_v37 = vpack.c.bf16 %v1000_v35, %v999_v34  ;;  %8401 = vst [vmem:[#allocation26_spill] sm:$0xff] %v6113_v38  ;;  %v781_v40 = vld [vmem:[#allocation2 + $0xa9] sm:$0xff]  ;;  %v782_v41 = vld [vmem:[#allocation2 + $0xb1] sm:$0xff] }
  0x63   : > { %8402 = vst [vmem:[#allocation27_spill] sm:$0xff] %v6116_v39  ;;  %v6122_v42 = vpack.c.bf16 %v782_v41, %v781_v40  ;;  %v454_v45 = vld [vmem:[#allocation2 + $0xc8] sm:$0xff]  ;;  %v6161_v28 = vld [vmem:[%s5876_s13 + $0x90] sm:$0xff] }
  0x64   : > { %367 = vst.msk [vmem:[#allocation2 + $0x108] sm:$0xff] %vm278_vm1, %v6113_v38  ;;  %v455_v46 = vld [vmem:[#allocation2 + $0xd0] sm:$0xff]  ;;  %v1001_v52 = vld [vmem:[#allocation2 + $0xc7] sm:$0xff] }
  0x65   : > { %368 = vst.msk [vmem:[#allocation2 + $0x110] sm:$0xff] %vm278_vm1, %v6116_v39  ;;  %v1002_v53 = vld [vmem:[#allocation2 + $0xcf] sm:$0xff]  ;;  %v6128_v54 = vpack.c.bf16 %v455_v46, %v454_v45 }
  0x66   : > { %v6130_v55 = vpack.c.bf16 %v1002_v53, %v1001_v52  ;;  %8403 = vst [vmem:[#allocation28_spill] sm:$0xff] %v6137_v60  ;;  %v6140_v61 = vld [vmem:[%s5876_s13 + $0x88] sm:$0xff]  ;;  %v784_v0 = vld [vmem:[#allocation2 + $0xd1] sm:$0xff] }
  0x67   : > { %8404 = vst [vmem:[#allocation29_spill] sm:$0xff] %v6140_v61  ;;  %v783_v63 = vld [vmem:[#allocation2 + $0xc9] sm:$0xff] }
  0x68   : > { %369 = vst.msk [vmem:[#allocation2 + $0x128] sm:$0xff] %vm278_vm1, %v6137_v60  ;;  %v6146_v1 = vpack.c.bf16 %v784_v0, %v783_v63  ;;  %v456_v2 = vld [vmem:[#allocation2 + $0xe8] sm:$0xff]  ;;  %v457_v5 = vld [vmem:[#allocation2 + $0xf0] sm:$0xff] }
  0x69   : > { %5307 = vmatmul.msk.bf16.gmra.mxu0 %vm278_vm1, %v6052_v3  ;;  %370 = vst.msk [vmem:[#allocation2 + $0x130] sm:$0xff] %vm278_vm1, %v6140_v61  ;;  %v1003_v7 = vld [vmem:[#allocation2 + $0xe7] sm:$0xff]  ;;  %v1004_v9 = vld [vmem:[#allocation2 + $0xef] sm:$0xff]  ;;  %v6152_v10 = vpack.c.bf16 %v457_v5, %v456_v2  ;;  %v6226_v61 = vld [vmem:[%s5876_s13 + $0xb8] sm:$0xff] }
  0x6a   : > { %5354 = vmatmul.msk.bf16.gmra.mxu3 %vm278_vm1, %v6054_v4  ;;  %5323 = vmatmul.msk.bf16.gmra.mxu1 %vm278_vm1, %v6054_v4  ;;  %v6154_v17 = vpack.c.bf16 %v1004_v9, %v1003_v7  ;;  %v785_v19 = vld [vmem:[#allocation2 + $0xe9] sm:$0xff]  ;;  %v786_v22 = vld [vmem:[#allocation2 + $0xf1] sm:$0xff]  ;;  %8405 = vst [vmem:[#allocation30_spill] sm:$0xff] %v6161_v28  ;;  %v6193_v7 = vld [vmem:[%s5876_s13 + $0xa0] sm:$0xff] }
  0x6b   : > { %8406 = vst [vmem:[#allocation31_spill] sm:$0xff] %v6164_v29  ;;  %v6170_v32 = vpack.c.bf16 %v786_v22, %v785_v19  ;;  %v458_v34 = vld [vmem:[#allocation2 + $0x108] sm:$0xff] }
  0x6c   : > { %371 = vst.msk [vmem:[#allocation2 + $0x148] sm:$0xff] %vm278_vm1, %v6161_v28  ;;  %v459_v35 = vld [vmem:[#allocation2 + $0x110] sm:$0xff]  ;;  %v1005_v40 = vld [vmem:[#allocation2 + $0x107] sm:$0xff] }
  0x6d   : > { %372 = vst.msk [vmem:[#allocation2 + $0x150] sm:$0xff] %vm278_vm1, %v6164_v29  ;;  %v1006_v41 = vld [vmem:[#allocation2 + $0x10f] sm:$0xff]  ;;  %v6178_v45 = vpack.c.bf16 %v459_v35, %v458_v34 }
  0x6e   : > { %5339 = vmatmul.msk.bf16.gmra.mxu2 %vm278_vm1, %v6074_v15  ;;  %v6180_v46 = vpack.c.bf16 %v1006_v41, %v1005_v40  ;;  %v787_v2 = vld [vmem:[#allocation2 + $0x109] sm:$0xff]  ;;  %v788_v5 = vld [vmem:[#allocation2 + $0x111] sm:$0xff]  ;;  %8407 = vst [vmem:[#allocation32_spill] sm:$0xff] %v6193_v7 }
  0x6f   : > { %v6198_v22 = vld [vmem:[%s5876_s13 + $0xa8] sm:$0xff]  ;;  %373 = vst.msk [vmem:[#allocation2 + $0x168] sm:$0xff] %vm278_vm1, %v6193_v7  ;;  %v6202_v35 = vpack.c.bf16 %v788_v5, %v787_v2 }
  0x70   : > { %8408 = vst [vmem:[#allocation33_spill] sm:$0xff] %v6198_v22  ;;  %v460_v40 = vld [vmem:[#allocation2 + $0x128] sm:$0xff]  ;;  %v461_v16 = vld [vmem:[#allocation2 + $0x130] sm:$0xff] }
  0x71   : > { %374 = vst.msk [vmem:[#allocation2 + $0x170] sm:$0xff] %vm278_vm1, %v6198_v22  ;;  %v1007_v14 = vld [vmem:[#allocation2 + $0x127] sm:$0xff]  ;;  %v1008_v13 = vld [vmem:[#allocation2 + $0x12f] sm:$0xff] }
  0x72   : > { %v6214_v2 = vpack.c.bf16 %v1008_v13, %v1007_v14  ;;  %v789_v28 = vld [vmem:[#allocation2 + $0x129] sm:$0xff]  ;;  %8410 = vst [vmem:[#allocation35_spill] sm:$0xff] %v6226_v61 }
  0x73   : > { %376 = vst.msk [vmem:[#allocation2 + $0x190] sm:$0xff] %vm278_vm1, %v6226_v61  ;;  %v1009_v39 = vld [vmem:[#allocation2 + $0x147] sm:$0xff] }
  0x74   : > { %v1010_v38 = vld [vmem:[#allocation2 + $0x14f] sm:$0xff] }
  0x75   : > { %v792_v27 = vld [vmem:[#allocation2 + $0x151] sm:$0xff] }
  0x76   : > { %v1011_v6 = vld [vmem:[#allocation2 + $0x167] sm:$0xff] }
  0x78   : > { %v465_v8 = vld [vmem:[#allocation2 + $0x170] sm:$0xff] }
  0x79   : > { %5308 = vmatmul.msk.bf16.gmra.mxu0 %vm278_vm1, %v6080_v24  ;;  %v1012_v59 = vld [vmem:[#allocation2 + $0x16f] sm:$0xff] }
  0x7a   : > { %5355 = vmatmul.msk.bf16.gmra.mxu3 %vm278_vm1, %v6082_v25  ;;  %5324 = vmatmul.msk.bf16.gmra.mxu1 %vm278_vm1, %v6082_v25  ;;  %v467_v49 = vld [vmem:[#allocation2 + $0x190] sm:$0xff] }
  0x7e   : > { %5340 = vmatmul.msk.bf16.gmra.mxu2 %vm278_vm1, %v6098_v30 }
  0x89   : > { %5309 = vmatmul.msk.bf16.gmra.mxu0 %vm278_vm1, %v6104_v36 }
  0x8a   : > { %5356 = vmatmul.msk.bf16.gmra.mxu3 %vm278_vm1, %v6106_v37  ;;  %5325 = vmatmul.msk.bf16.gmra.mxu1 %vm278_vm1, %v6106_v37 }
  0x8e   : > { %5341 = vmatmul.msk.bf16.gmra.mxu2 %vm278_vm1, %v6122_v42 }
  0x99   : > { %5310 = vmatmul.msk.bf16.gmra.mxu0 %vm278_vm1, %v6128_v54 }
  0x9a   : > { %5357 = vmatmul.msk.bf16.gmra.mxu3 %vm278_vm1, %v6130_v55  ;;  %5326 = vmatmul.msk.bf16.gmra.mxu1 %vm278_vm1, %v6130_v55 }
  0x9d   : > { %v551_v23 = vpop.f32.mrf.mxu0 }
  0x9e   : > { %5342 = vmatmul.msk.bf16.gmra.mxu2 %vm278_vm1, %v6146_v1 }
  0xa5   : > { %v553_v63 = vpop.f32.mrf.mxu0 }
  0xa7   : > { %v6166_v31 = vpop.f32.mrf.mxu1 }
  0xa9   : > { %5311 = vmatmul.msk.bf16.gmra.mxu0 %vm278_vm1, %v6152_v10 }
  0xaa   : > { %5358 = vmatmul.msk.bf16.gmra.mxu3 %vm278_vm1, %v6154_v17  ;;  %5327 = vmatmul.msk.bf16.gmra.mxu1 %vm278_vm1, %v6154_v17 }
  0xae   : > { %5343 = vmatmul.msk.bf16.gmra.mxu2 %vm278_vm1, %v6170_v32 }
  0xaf   : > { %v6184_v53 = vpop.f32.mrf.mxu1 }
  0xb1   : > { %v6182_v52 = vpop.f32.mrf.mxu2  ;;  %v556_v18 = vpop.f32.mrf.mxu0 }
  0xb5   : > { %v6190_v0 = vpop.f32.mrf.mxu3 }
  0xb7   : > { %v691_v19 = vpop.f32.mrf.mxu1 }
  0xb8   : > { %v692_v34 = vadd.f32 %v691_v19, %v551_v23  ;;  %v6212_v23 = vpack.c.bf16 %v461_v16, %v460_v40  ;;  %v790_v16 = vld [vmem:[#allocation2 + $0x131] sm:$0xff] }
  0xb9   : > { %5312 = vmatmul.msk.bf16.gmra.mxu0 %vm278_vm1, %v6178_v45  ;;  %v6195_v9 = vpop.f32.mrf.mxu2  ;;  %v558_v29 = vpop.f32.mrf.mxu0  ;;  %v6223_v40 = vld [vmem:[%s5876_s13 + $0xb0] sm:$0xff] }
  0xba   : > { %5359 = vmatmul.msk.bf16.gmra.mxu3 %vm278_vm1, %v6180_v46  ;;  %5328 = vmatmul.msk.bf16.gmra.mxu1 %vm278_vm1, %v6180_v46  ;;  %8409 = vst [vmem:[#allocation34_spill] sm:$0xff] %v6223_v40 }
  0xbb   : > { %375 = vst.msk [vmem:[#allocation2 + $0x188] sm:$0xff] %vm278_vm1, %v6223_v40  ;;  %v791_v40 = vld [vmem:[#allocation2 + $0x149] sm:$0xff] }
  0xbc   : > { %v6257_v26 = vpack.c.bf16 %v792_v27, %v791_v40  ;;  %v6268_v27 = vpack.c.bf16 %v1012_v59, %v1011_v6 }
  0xbd   : > { %v6206_v41 = vpop.f32.mrf.mxu3 }
  0xbe   : > { %5344 = vmatmul.msk.bf16.gmra.mxu2 %vm278_vm1, %v6202_v35  ;;  %8411 = vst [vmem:[#allocation36_spill] sm:$0xff] %v6257_v26 }
  0xbf   : > { %v693_v19 = vpop.f32.mrf.mxu1  ;;  %8412 = vst [vmem:[#allocation37_spill] sm:$0xff] %v6268_v27 }
  0xc0   : > { %v694_v11 = vadd.f32 %v693_v19, %v553_v63  ;;  %v463_v19 = vld [vmem:[#allocation2 + $0x150] sm:$0xff] }
  0xc1   : > { %v879_v5 = vpop.f32.mrf.mxu2 }
  0xc2   : > { %v959_v12 = vadd.f32 %v879_v5, %v692_v34  ;;  %v6230_v5 = vpack.c.bf16 %v790_v16, %v789_v28  ;;  %v466_v51 = vld [vmem:[#allocation2 + $0x188] sm:$0xff] }
  0xc3   : > { %v1013_v48 = vld [vmem:[#allocation2 + $0x187] sm:$0xff] }
  0xc5   : > { %v1099_v22 = vpop.f32.mrf.mxu3 }
  0xc6   : > { %v6220_v7 = vadd.f32 %v1099_v22, %v959_v12  ;;  %v462_v12 = vld [vmem:[#allocation2 + $0x148] sm:$0xff] }
  0xc7   : > { %v696_v14 = vpop.f32.mrf.mxu1 }
  0xc8   : > { %v697_v34 = vadd.f32 %v696_v14, %v556_v18  ;;  %v6242_v18 = vpack.c.bf16 %v1010_v38, %v1009_v39  ;;  %v391_v38 = vld [vmem:[%s8288_s1 + $0xc] sm:$0x3] }
  0xc9   : > { %5313 = vmatmul.msk.bf16.gmra.mxu0 %vm278_vm1, %v6212_v23  ;;  %v881_v13 = vpop.f32.mrf.mxu2 }
  0xca   : > { %5360 = vmatmul.msk.bf16.gmra.mxu3 %vm278_vm1, %v6214_v2  ;;  %v960_v63 = vadd.f32 %v881_v13, %v694_v11  ;;  %5329 = vmatmul.msk.bf16.gmra.mxu1 %vm278_vm1, %v6214_v2  ;;  %v6240_v11 = vpack.c.bf16 %v463_v19, %v462_v12 }
  0xcd   : > { %v1101_v22 = vpop.f32.mrf.mxu3 }
  0xce   : > { %v6234_v60 = vadd.f32 %v1101_v22, %v960_v63  ;;  %5345 = vmatmul.msk.bf16.gmra.mxu2 %vm278_vm1, %v6230_v5 }
  0xcf   : > { %v698_v13 = vpop.f32.mrf.mxu1 }
  0xd0   : > { %v699_v61 = vadd.f32 %v698_v13, %v558_v29  ;;  %v1749_v29 = vsel %vm538_vm0, %v391_v38, 0 }
  0xd1   : > { %v884_v16 = vpop.f32.mrf.mxu2  ;;  %1758 = vmatpush.bf16.msra.mxu2 %v1749_v29 }
  0xd2   : > { %v961_v14 = vadd.f32 %v884_v16, %v697_v34  ;;  %v392_v34 = vld [vmem:[%s8288_s1 + $0xe] sm:$0x3] }
  0xd6   : > { %v561_v28 = vpop.f32.mrf.mxu0 }
  0xd7   : > { %v701_v19 = vpop.f32.mrf.mxu1 }
  0xd8   : > { %v702_v13 = vadd.f32 %v701_v19, %v561_v28 }
  0xd9   : > { %5314 = vmatmul.msk.bf16.gmra.mxu0 %vm278_vm1, %v6240_v11  ;;  %v886_v39 = vpop.f32.mrf.mxu2 }
  0xda   : > { %5361 = vmatmul.msk.bf16.gmra.mxu3 %vm278_vm1, %v6242_v18  ;;  %v962_v16 = vadd.f32 %v886_v39, %v699_v61  ;;  %5330 = vmatmul.msk.bf16.gmra.mxu1 %vm278_vm1, %v6242_v18 }
  0xdd   : > { %v1104_v63 = vpop.f32.mrf.mxu3 }
  0xde   : > { %v6248_v22 = vadd.f32 %v1104_v63, %v961_v14  ;;  %v563_v12 = vpop.f32.mrf.mxu0  ;;  %v1969_v14 = vsel %vm538_vm0, %v392_v34, 0  ;;  %v464_v63 = vld [vmem:[#allocation2 + $0x168] sm:$0xff]  ;;  %5346 = vmatmul.msk.bf16.gmra.mxu2 %vm278_vm1, %v6257_v26 }
  0xdf   : > { %1978 = vmatpush.bf16.msra.mxu3 %v1969_v14  ;;  %v6264_v58 = vpack.c.bf16 %v465_v8, %v464_v63  ;;  %v703_v39 = vpop.f32.mrf.mxu1  ;;  %v393_v8 = vld [vmem:[%s8288_s1 + $0x10] sm:$0x3] }
  0xe0   : > { %v704_v29 = vadd.f32 %v703_v39, %v563_v12  ;;  %v2189_v34 = vsel %vm538_vm0, %v393_v8, 0  ;;  %v794_v14 = vld [vmem:[#allocation2 + $0x171] sm:$0xff] }
  0xe1   : > { %v889_v28 = vpop.f32.mrf.mxu2  ;;  %2198 = vmatpush.bf16.msra.mxu0 %v2189_v34  ;;  %v1014_v8 = vld [vmem:[#allocation2 + $0x18f] sm:$0xff] }
  0xe2   : > { %v963_v19 = vadd.f32 %v889_v28, %v702_v13  ;;  %v6290_v47 = vpack.c.bf16 %v1014_v8, %v1013_v48 }
  0xe4   : > { %8414 = vst [vmem:[#allocation39_spill] sm:$0xff] %v6290_v47 }
  0xe5   : > { %v1106_v38 = vpop.f32.mrf.mxu3 }
  0xe6   : > { %v6266_v61 = vadd.f32 %v1106_v38, %v962_v16  ;;  %v566_v40 = vpop.f32.mrf.mxu0  ;;  %v793_v16 = vld [vmem:[#allocation2 + $0x169] sm:$0xff] }
  0xe7   : > { %v706_v63 = vpop.f32.mrf.mxu1  ;;  %v6280_v39 = vpack.c.bf16 %v794_v14, %v793_v16 }
  0xe8   : > { %v707_v28 = vadd.f32 %v706_v63, %v566_v40 }
  0xe9   : > { %5315 = vmatmul.msk.bf16.gmra.mxu0 %vm278_vm1, %v6264_v58  ;;  %v891_v12 = vpop.f32.mrf.mxu2  ;;  %8413 = vst [vmem:[#allocation38_spill] sm:$0xff] %v6280_v39 }
  0xea   : > { %5362 = vmatmul.msk.bf16.gmra.mxu3 %vm278_vm1, %v6268_v27  ;;  %v964_v38 = vadd.f32 %v891_v12, %v704_v29  ;;  %5331 = vmatmul.msk.bf16.gmra.mxu1 %vm278_vm1, %v6268_v27 }
  0xed   : > { %v1109_v59 = vpop.f32.mrf.mxu3 }
  0xee   : > { %v6278_v6 = vadd.f32 %v1109_v59, %v963_v19  ;;  %v568_v13 = vpop.f32.mrf.mxu0  ;;  %5347 = vmatmul.msk.bf16.gmra.mxu2 %vm278_vm1, %v6280_v39  ;;  %v6286_v19 = vpack.c.bf16 %v467_v49, %v466_v51  ;;  %v795_v49 = vld [vmem:[#allocation2 + $0x189] sm:$0xff]  ;;  %v796_v51 = vld [vmem:[#allocation2 + $0x191] sm:$0xff] }
  0xef   : > { %v708_v16 = vpop.f32.mrf.mxu1  ;;  %v6298_v21 = vpack.c.bf16 %v796_v51, %v795_v49 }
  0xf0   : > { %v709_v12 = vadd.f32 %v708_v16, %v568_v13  ;;  %v1015_v13 = vld [vmem:[#allocation2 + $0x1a7] sm:$0xff] }
  0xf1   : > { %v894_v29 = vpop.f32.mrf.mxu2  ;;  %8415 = vst [vmem:[#allocation40_spill] sm:$0xff] %v6298_v21 }
  0xf2   : > { %v965_v14 = vadd.f32 %v894_v29, %v707_v28  ;;  %v1016_v28 = vld [vmem:[#allocation2 + $0x1af] sm:$0xff] }
  0xf5   : > { %v1111_v34 = vpop.f32.mrf.mxu3 }
  0xf6   : > { %v6288_v59 = vadd.f32 %v1111_v34, %v964_v38  ;;  %v571_v40 = vpop.f32.mrf.mxu0 }
  0xf7   : > { %v711_v48 = vpop.f32.mrf.mxu1 }
  0xf8   : > { %v712_v43 = vadd.f32 %v711_v48, %v571_v40  ;;  %v798_v48 = vld [vmem:[#allocation2 + $0x1b1] sm:$0xff] }
  0xf9   : > { %5316 = vmatmul.msk.bf16.gmra.mxu0 %vm278_vm1, %v6286_v19  ;;  %v896_v34 = vpop.f32.mrf.mxu2 }
  0xfa   : > { %5363 = vmatmul.msk.bf16.gmra.mxu3 %vm278_vm1, %v6290_v47  ;;  %v966_v8 = vadd.f32 %v896_v34, %v709_v12  ;;  %5332 = vmatmul.msk.bf16.gmra.mxu1 %vm278_vm1, %v6290_v47  ;;  %v797_v34 = vld [vmem:[#allocation2 + $0x1a9] sm:$0xff] }
  0xfb   : > { %v6325_v47 = vld [vmem:[%s5876_s13 + $0xf0] sm:$0xff] }
  0xfc   : > { %8419 = vst [vmem:[#allocation44_spill] sm:$0xff] %v6325_v47 }
  0xfd   : > { %v1114_v63 = vpop.f32.mrf.mxu3  ;;  %383 = vst.msk [vmem:[#allocation2 + $0x208] sm:$0xff] %vm278_vm1, %v6325_v47 }
  0xfe   : > { %v6296_v44 = vadd.f32 %v1114_v63, %v965_v14  ;;  %v573_v38 = vpop.f32.mrf.mxu0  ;;  %5348 = vmatmul.msk.bf16.gmra.mxu2 %vm278_vm1, %v6298_v21  ;;  %v6306_v14 = vpack.c.bf16 %v1016_v28, %v1015_v13 }
  0xff   : > { %v713_v39 = vpop.f32.mrf.mxu1 }
 0x100   : > { %8416 = vst [vmem:[#allocation41_spill] sm:$0xff] %v6306_v14  ;;  %v714_v40 = vadd.f32 %v713_v39, %v573_v38 }
 0x101   : > { %v899_v20 = vpop.f32.mrf.mxu2 }
 0x102   : > { %v967_v12 = vadd.f32 %v899_v20, %v712_v43  ;;  %v6314_v20 = vpack.c.bf16 %v798_v48, %v797_v34  ;;  %v1018_v43 = vld [vmem:[#allocation2 + $0x1cf] sm:$0xff] }
 0x104   : > { %8417 = vst [vmem:[#allocation42_spill] sm:$0xff] %v6314_v20 }
 0x105   : > { %v1116_v29 = vpop.f32.mrf.mxu3 }
 0x106   : > { %v6304_v16 = vadd.f32 %v1116_v29, %v966_v8  ;;  %v576_v63 = vpop.f32.mrf.mxu0 }
 0x107   : > { %v716_v28 = vpop.f32.mrf.mxu1 }
 0x108   : > { %v717_v21 = vadd.f32 %v716_v28, %v576_v63 }
 0x109   : > { %5368 = vmatmul.msk.bf16.vlgmr.msrb.gmra.mxu0 %vm278_vm1, %v5942_v33  ;;  %v901_v13 = vpop.f32.mrf.mxu2  ;;  %v1017_v33 = vld [vmem:[#allocation2 + $0x1c7] sm:$0xff] }
 0x10a   : > { %5364 = vmatmul.msk.bf16.gmra.mxu3 %vm278_vm1, %v6306_v14  ;;  %v968_v29 = vadd.f32 %v901_v13, %v714_v40  ;;  %5333 = vmatmul.msk.bf16.gmra.mxu1 %vm278_vm1, %v6306_v14  ;;  %v6328_v40 = vld [vmem:[%s5876_s13 + $0xf8] sm:$0xff]  ;;  %s5634_s13 = sshll.u32 %s5812_s28, 6  ;;  %s5172_s28 = scalar_lea.sflag [#allocation4], %s269_s22 }
 0x10b   : > { %8420 = vst [vmem:[#allocation45_spill] sm:$0xff] %v6328_v40  ;;  %s5183_s16 = scalar_lea.hbm %s8294_s7, %s5634_s13 }
 0x10c   : > { %384 = vst.msk [vmem:[#allocation2 + $0x210] sm:$0xff] %vm278_vm1, %v6328_v40  ;;  %s5186_s18 = sshll.u32 %s5183_s16, 4  ;;  %s5187_s18 = int_to_ptr.hbm [resolvable:$true] %s5186_s18 }
 0x10d   : > { %v1119_v49 = vpop.f32.mrf.mxu3  ;;  %s5698_s19 = sshra.s32 %s5187_s18, 4  ;;  %s5699_s19 = int_to_ptr.hbm [resolvable:$true] %s5698_s19 }
 0x10e   : > { %v6312_v51 = vadd.f32 %v1119_v49, %v967_v12  ;;  %v578_v8 = vpop.f32.mrf.mxu0  ;;  %5349 = vmatmul.msk.bf16.gmra.mxu2 %vm278_vm1, %v6314_v20  ;;  %v6322_v12 = vpack.c.bf16 %v1018_v43, %v1017_v33  ;;  %v799_v33 = vld [vmem:[#allocation2 + $0x1c9] sm:$0xff]  ;;  %v800_v43 = vld [vmem:[#allocation2 + $0x1d1] sm:$0xff]  ;;  %s5700_s20 = scalar_lea.hbm %s5699_s19, 64  ;;  %p5705_p0 = scmp.lt.s32.totalorder %s5699_s19, %s8294_s7 }
 0x10f   : > { %v718_v34 = vpop.f32.mrf.mxu1  ;;  %p5701_p11 = scmp.ne.s32.totalorder %s5699_s19, %s5700_s20  ;;  %p5706_p1 = scmp.lt.s32.totalorder %s5704_s29, %s5700_s20 }
 0x110   : > { %8418 = vst [vmem:[#allocation43_spill] sm:$0xff] %v6322_v12  ;;  %v719_v13 = vadd.f32 %v718_v34, %v578_v8  ;;  %v6340_v8 = vpack.c.bf16 %v800_v43, %v799_v33  ;;  %v1020_v34 = vld [vmem:[#allocation2 + $0x1ef] sm:$0xff] }
 0x111   : > { %v904_v63 = vpop.f32.mrf.mxu2  ;;  %v801_v33 = vld [vmem:[#allocation2 + $0x1e9] sm:$0xff]  ;;  %v802_v43 = vld [vmem:[#allocation2 + $0x1f1] sm:$0xff]  ;;  %p5702_p12 = pnand %p5701_p11, %p5829_p5  ;;  %p5707_p2 = por %p5706_p1, %p5705_p0 }
 0x112   : > { %v969_v48 = vadd.f32 %v904_v63, %v717_v21  ;;  %8422 = vst [vmem:[#allocation47_spill] sm:$0xff] %v6340_v8  ;;  %v1019_v63 = vld [vmem:[#allocation2 + $0x1e7] sm:$0xff] }
 0x113   : > { %p5703_p13 = pneg %p5702_p12 }
 0x115   : > { %v1121_v39 = vpop.f32.mrf.mxu3  ;;  %p5708_p3 = pnand %p5707_p2, %p5703_p13 }
 0x116   : > { %v6320_v38 = vadd.f32 %v1121_v39, %v968_v29  ;;  %v581_v49 = vpop.f32.mrf.mxu0 }
 0x117   : > { %v721_v14 = vpop.f32.mrf.mxu1 }
 0x118   : > { %v722_v21 = vadd.f32 %v721_v14, %v581_v49 }
 0x119   : > { %5369 = vmatmul.msk.bf16.gmra.mxu0 %vm278_vm1, %v6028_v56  ;;  %v906_v20 = vpop.f32.mrf.mxu2 }
 0x11a   : > { %5365 = vmatmul.msk.bf16.gmra.mxu3 %vm278_vm1, %v6322_v12  ;;  %v970_v47 = vadd.f32 %v906_v20, %v719_v13  ;;  %5334 = vmatmul.msk.bf16.gmra.mxu1 %vm278_vm1, %v6322_v12  ;;  %v6356_v12 = vpack.c.bf16 %v802_v43, %v801_v33 }
 0x11d   : > { %v1124_v28 = vpop.f32.mrf.mxu3 }
 0x11e   : > { %v6338_v29 = vadd.f32 %v1124_v28, %v969_v48  ;;  %v583_v39 = vpop.f32.mrf.mxu0  ;;  %5350 = vmatmul.msk.bf16.gmra.mxu2 %vm278_vm1, %v6340_v8  ;;  %v6348_v28 = vpack.c.bf16 %v1020_v34, %v1019_v63 }
 0x11f   : > { %v723_v26 = vpop.f32.mrf.mxu1 }
 0x120   : > { %8421 = vst [vmem:[#allocation46_spill] sm:$0xff] %v6338_v29  ;;  %v724_v14 = vadd.f32 %v723_v26, %v583_v39  ;;  %v1021_v26 = vld [vmem:[#allocation2 + $0x207] sm:$0xff] }
 0x121   : > { %v909_v27 = vpop.f32.mrf.mxu2 }
 0x122   : > { %v971_v20 = vadd.f32 %v909_v27, %v722_v21  ;;  %v1022_v27 = vld [vmem:[#allocation2 + $0x20f] sm:$0xff] }
 0x125   : > { %v1126_v40 = vpop.f32.mrf.mxu3 }
 0x126   : > { %v6346_v48 = vadd.f32 %v1126_v40, %v970_v47  ;;  %v586_v29 = vpop.f32.mrf.mxu0 }
 0x127   : > { %v726_v63 = vpop.f32.mrf.mxu1 }
 0x128   : > { %8423 = vst [vmem:[#allocation48_spill] sm:$0xff] %v6346_v48  ;;  %v727_v8 = vadd.f32 %v726_v63, %v586_v29 }
 0x129   : > { %5370 = vmatmul.msk.bf16.gmra.mxu0 %vm278_vm1, %v6052_v3  ;;  %v911_v40 = vpop.f32.mrf.mxu2 }
 0x12a   : > { %5366 = vmatmul.msk.bf16.gmra.mxu3 %vm278_vm1, %v6348_v28  ;;  %v972_v34 = vadd.f32 %v911_v40, %v724_v14  ;;  %5335 = vmatmul.msk.bf16.gmra.mxu1 %vm278_vm1, %v6348_v28 }
 0x12d   : > { %v1129_v49 = vpop.f32.mrf.mxu3 }
 0x12e   : > { %v6354_v13 = vadd.f32 %v1129_v49, %v971_v20  ;;  %v588_v47 = vpop.f32.mrf.mxu0  ;;  %5351 = vmatmul.msk.bf16.gmra.mxu2 %vm278_vm1, %v6356_v12  ;;  %v6364_v20 = vpack.c.bf16 %v1022_v27, %v1021_v26 }
 0x12f   : > { %v728_v48 = vpop.f32.mrf.mxu1 }
 0x130   : > { %8424 = vst [vmem:[#allocation49_spill] sm:$0xff] %v6354_v13  ;;  %v729_v29 = vadd.f32 %v728_v48, %v588_v47 }
 0x131   : > { %8425 = vst [vmem:[#allocation50_spill] sm:$0xff] %v6364_v20  ;;  %v914_v13 = vpop.f32.mrf.mxu2 }
 0x132   : > { %v973_v14 = vadd.f32 %v914_v13, %v727_v8 }
 0x135   : > { %v1131_v39 = vpop.f32.mrf.mxu3 }
 0x136   : > { %v6362_v21 = vadd.f32 %v1131_v39, %v972_v34  ;;  %v591_v49 = vpop.f32.mrf.mxu0 }
 0x137   : > { %v731_v34 = vpop.f32.mrf.mxu1 }
 0x138   : > { %v732_v26 = vadd.f32 %v731_v34, %v591_v49 }
 0x139   : > { %5371 = vmatmul.msk.bf16.gmra.mxu0 %vm278_vm1, %v6080_v24  ;;  %v916_v63 = vpop.f32.mrf.mxu2 }
 0x13a   : > { %5367 = vmatmul.msk.bf16.gmra.mxu3 %vm278_vm1, %v6364_v20  ;;  %v974_v39 = vadd.f32 %v916_v63, %v729_v29  ;;  %5384 = vmatmul.msk.bf16.vlgmr.msra.gmra.mxu1 %vm278_vm1, %v6012_v50 }
 0x13d   : > { %v1134_v33 = vpop.f32.mrf.mxu3 }
 0x13e   : > { %v6370_v43 = vadd.f32 %v1134_v33, %v973_v14  ;;  %v593_v40 = vpop.f32.mrf.mxu0  ;;  %5400 = vmatmul.msk.bf16.vlgmr.msra.gmra.mxu2 %vm278_vm1, %v6030_v57 }
 0x13f   : > { %v733_v47 = vpop.f32.mrf.mxu1 }
 0x140   : > { %v734_v14 = vadd.f32 %v733_v47, %v593_v40 }
 0x141   : > { %v919_v13 = vpop.f32.mrf.mxu2 }
 0x142   : > { %v975_v20 = vadd.f32 %v919_v13, %v732_v26 }
 0x145   : > { %v1136_v27 = vpop.f32.mrf.mxu3 }
 0x146   : > { %v6376_v8 = vadd.f32 %v1136_v27, %v974_v39  ;;  %v596_v48 = vpop.f32.mrf.mxu0 }
 0x147   : > { %v736_v63 = vpop.f32.mrf.mxu1 }
 0x148   : > { %v737_v34 = vadd.f32 %v736_v63, %v596_v48 }
 0x149   : > { %5372 = vmatmul.msk.bf16.gmra.mxu0 %vm278_vm1, %v6104_v36  ;;  %v921_v33 = vpop.f32.mrf.mxu2 }
 0x14a   : > { %5416 = vmatmul.msk.bf16.vlgmr.msra.gmra.mxu3 %vm278_vm1, %v6028_v56  ;;  %v976_v57 = vadd.f32 %v921_v33, %v734_v14  ;;  %5385 = vmatmul.msk.bf16.gmra.mxu1 %vm278_vm1, %v6046_v62 }
 0x14d   : > { %v1139_v49 = vpop.f32.mrf.mxu3 }
 0x14e   : > { %v6382_v29 = vadd.f32 %v1139_v49, %v975_v20  ;;  %v598_v50 = vpop.f32.mrf.mxu0  ;;  %5401 = vmatmul.msk.bf16.gmra.mxu2 %vm278_vm1, %v6054_v4 }
 0x14f   : > { %v738_v56 = vpop.f32.mrf.mxu1 }
 0x150   : > { %v739_v20 = vadd.f32 %v738_v56, %v598_v50 }
 0x151   : > { %v924_v27 = vpop.f32.mrf.mxu2 }
 0x152   : > { %v977_v13 = vadd.f32 %v924_v27, %v737_v34 }
 0x155   : > { %v1141_v39 = vpop.f32.mrf.mxu3 }
 0x156   : > { %v6388_v40 = vadd.f32 %v1141_v39, %v976_v57  ;;  %v601_v26 = vpop.f32.mrf.mxu0 }
 0x157   : > { %v741_v49 = vpop.f32.mrf.mxu1 }
 0x158   : > { %v742_v33 = vadd.f32 %v741_v49, %v601_v26 }
 0x159   : > { %5373 = vmatmul.msk.bf16.gmra.mxu0 %vm278_vm1, %v6128_v54  ;;  %v926_v14 = vpop.f32.mrf.mxu2 }
 0x15a   : > { %5417 = vmatmul.msk.bf16.gmra.mxu3 %vm278_vm1, %v6052_v3  ;;  %v978_v4 = vadd.f32 %v926_v14, %v739_v20  ;;  %5386 = vmatmul.msk.bf16.gmra.mxu1 %vm278_vm1, %v6074_v15 }
 0x15d   : > { %v1144_v48 = vpop.f32.mrf.mxu3 }
 0x15e   : > { %v6394_v47 = vadd.f32 %v1144_v48, %v977_v13  ;;  %v603_v62 = vpop.f32.mrf.mxu0  ;;  %5402 = vmatmul.msk.bf16.gmra.mxu2 %vm278_vm1, %v6082_v25  ;;  %v2445_v25 = vld [vmem:[%s8290_s3 + $0x2] sm:$0x3] }
 0x15f   : > { %v743_v3 = vpop.f32.mrf.mxu1 }
 0x160   : > { %v744_v27 = vadd.f32 %v743_v3, %v603_v62  ;;  %v2598_v62 = vsel %vm538_vm0, %v2445_v25, 0 }
 0x161   : > { %v929_v34 = vpop.f32.mrf.mxu2  ;;  %2607 = vmatpush.bf16.msrb.mxu1 %v2598_v62 }
 0x162   : > { %v979_v39 = vadd.f32 %v929_v34, %v742_v33 }
 0x165   : > { %v1146_v63 = vpop.f32.mrf.mxu3 }
 0x166   : > { %v6400_v50 = vadd.f32 %v1146_v63, %v978_v4  ;;  %v606_v57 = vpop.f32.mrf.mxu0 }
 0x167   : > { %v746_v20 = vpop.f32.mrf.mxu1 }
 0x168   : > { %v747_v14 = vadd.f32 %v746_v20, %v606_v57 }
 0x169   : > { %5374 = vmatmul.msk.bf16.gmra.mxu0 %vm278_vm1, %v6152_v10  ;;  %v931_v13 = vpop.f32.mrf.mxu2 }
 0x16a   : > { %5418 = vmatmul.msk.bf16.gmra.mxu3 %vm278_vm1, %v6080_v24  ;;  %v980_v48 = vadd.f32 %v931_v13, %v744_v27  ;;  %5387 = vmatmul.msk.bf16.gmra.mxu1 %vm278_vm1, %v6098_v30 }
 0x16d   : > { %v1149_v26 = vpop.f32.mrf.mxu3 }
 0x16e   : > { %v6406_v56 = vadd.f32 %v1149_v26, %v979_v39  ;;  %v608_v15 = vpop.f32.mrf.mxu0  ;;  %5403 = vmatmul.msk.bf16.gmra.mxu2 %vm278_vm1, %v6106_v37 }
 0x16f   : > { %v748_v63 = vpop.f32.mrf.mxu1 }
 0x170   : > { %v749_v3 = vadd.f32 %v748_v63, %v608_v15 }
 0x171   : > { %v934_v33 = vpop.f32.mrf.mxu2 }
 0x172   : > { %v981_v34 = vadd.f32 %v934_v33, %v747_v14 }
 0x175   : > { %v1151_v49 = vpop.f32.mrf.mxu3 }
 0x176   : > { %v6416_v24 = vadd.f32 %v1151_v49, %v980_v48  ;;  %v611_v4 = vpop.f32.mrf.mxu0 }
 0x177   : > { %v751_v26 = vpop.f32.mrf.mxu1 }
 0x178   : > { %v752_v13 = vadd.f32 %v751_v26, %v611_v4 }
 0x179   : > { %5375 = vmatmul.msk.bf16.gmra.mxu0 %vm278_vm1, %v6178_v45  ;;  %v936_v27 = vpop.f32.mrf.mxu2 }
 0x17a   : > { %5419 = vmatmul.msk.bf16.gmra.mxu3 %vm278_vm1, %v6104_v36  ;;  %v982_v37 = vadd.f32 %v936_v27, %v749_v3  ;;  %5388 = vmatmul.msk.bf16.gmra.mxu1 %vm278_vm1, %v6122_v42 }
 0x17d   : > { %v1154_v57 = vpop.f32.mrf.mxu3 }
 0x17e   : > { %v6422_v39 = vadd.f32 %v1154_v57, %v981_v34  ;;  %v613_v30 = vpop.f32.mrf.mxu0  ;;  %5404 = vmatmul.msk.bf16.gmra.mxu2 %vm278_vm1, %v6130_v55 }
 0x17f   : > { %v753_v14 = vpop.f32.mrf.mxu1 }
 0x180   : > { %v754_v49 = vadd.f32 %v753_v14, %v613_v30 }
 0x181   : > { %v939_v48 = vpop.f32.mrf.mxu2 }
 0x182   : > { %v983_v62 = vadd.f32 %v939_v48, %v752_v13 }
 0x185   : > { %v1156_v20 = vpop.f32.mrf.mxu3 }
 0x186   : > { %v6428_v15 = vadd.f32 %v1156_v20, %v982_v37  ;;  %v1319_v25 = vpop.f32.mrf.mxu0 }
 0x187   : > { %v6431_v36 = vadd.f32 %v1319_v25, %v6220_v7  ;;  %v756_v7 = vpop.f32.mrf.mxu1 }
 0x188   : > { %v757_v30 = vadd.f32 %v756_v7, %v6166_v31 }
 0x189   : > { %5376 = vmatmul.msk.bf16.gmra.mxu0 %vm278_vm1, %v6212_v23  ;;  %v941_v63 = vpop.f32.mrf.mxu2 }
 0x18a   : > { %5420 = vmatmul.msk.bf16.gmra.mxu3 %vm278_vm1, %v6128_v54  ;;  %v984_v34 = vadd.f32 %v941_v63, %v754_v49  ;;  %5389 = vmatmul.msk.bf16.gmra.mxu1 %vm278_vm1, %v6146_v1 }
 0x18d   : > { %v1159_v42 = vpop.f32.mrf.mxu3 }
 0x18e   : > { %v6437_v4 = vadd.f32 %v1159_v42, %v983_v62  ;;  %v1321_v55 = vpop.f32.mrf.mxu0  ;;  %5405 = vmatmul.msk.bf16.gmra.mxu2 %vm278_vm1, %v6154_v17 }
 0x18f   : > { %v6440_v33 = vadd.f32 %v1321_v55, %v6234_v60  ;;  %v758_v26 = vpop.f32.mrf.mxu1 }
 0x190   : > { %v759_v20 = vadd.f32 %v758_v26, %v6184_v53 }
 0x191   : > { %v944_v60 = vpop.f32.mrf.mxu2 }
 0x192   : > { %v985_v37 = vadd.f32 %v944_v60, %v757_v30 }
 0x195   : > { %v1161_v3 = vpop.f32.mrf.mxu3 }
 0x196   : > { %v6446_v57 = vadd.f32 %v1161_v3, %v984_v34  ;;  %v1324_v54 = vpop.f32.mrf.mxu0 }
 0x197   : > { %v6450_v27 = vadd.f32 %v1324_v54, %v6248_v22  ;;  %v761_v25 = vpop.f32.mrf.mxu1 }
 0x198   : > { %v762_v49 = vadd.f32 %v761_v25, %v6182_v52 }
 0x199   : > { %5377 = vmatmul.msk.bf16.gmra.mxu0 %vm278_vm1, %v6240_v11  ;;  %v946_v22 = vpop.f32.mrf.mxu2 }
 0x19a   : > { %5421 = vmatmul.msk.bf16.gmra.mxu3 %vm278_vm1, %v6152_v10  ;;  %v986_v48 = vadd.f32 %v946_v22, %v759_v20  ;;  %5390 = vmatmul.msk.bf16.gmra.mxu1 %vm278_vm1, %v6170_v32 }
 0x19d   : > { %v1164_v1 = vpop.f32.mrf.mxu3 }
 0x19e   : > { %v6456_v13 = vadd.f32 %v1164_v1, %v985_v37  ;;  %v1326_v17 = vpop.f32.mrf.mxu0  ;;  %5406 = vmatmul.msk.bf16.gmra.mxu2 %vm278_vm1, %v6180_v46 }
 0x19f   : > { %v6460_v31 = vadd.f32 %v1326_v17, %v6266_v61  ;;  %v763_v42 = vpop.f32.mrf.mxu1 }
 0x1a0   : > { %v764_v7 = vadd.f32 %v763_v42, %v6195_v9 }
 0x1a1   : > { %v949_v61 = vpop.f32.mrf.mxu2 }
 0x1a2   : > { %v987_v55 = vadd.f32 %v949_v61, %v762_v49 }
 0x1a5   : > { %v1166_v14 = vpop.f32.mrf.mxu3 }
 0x1a6   : > { %v6466_v10 = vadd.f32 %v1166_v14, %v986_v48  ;;  %v1329_v62 = vpop.f32.mrf.mxu0  ;;  %v1235_v48 = vld [vmem:[#allocation2 + $0x1a8] sm:$0xff]  ;;  %v1236_v14 = vld [vmem:[#allocation2 + $0x1b0] sm:$0xff] }
 0x1a7   : > { %v6470_v53 = vadd.f32 %v1329_v62, %v6278_v6  ;;  %v766_v34 = vpop.f32.mrf.mxu1  ;;  %v6507_v62 = vpack.c.bf16 %v1236_v14, %v1235_v48 }
 0x1a8   : > { %v767_v60 = vadd.f32 %v766_v34, %v6190_v0 }
 0x1a9   : > { %5378 = vmatmul.msk.bf16.gmra.mxu0 %vm278_vm1, %v6264_v58  ;;  %v951_v6 = vpop.f32.mrf.mxu2 }
 0x1aa   : > { %5422 = vmatmul.msk.bf16.gmra.mxu3 %vm278_vm1, %v6178_v45  ;;  %v988_v3 = vadd.f32 %v951_v6, %v764_v7  ;;  %5391 = vmatmul.msk.bf16.gmra.mxu1 %vm278_vm1, %v6202_v35 }
 0x1ad   : > { %v1169_v32 = vpop.f32.mrf.mxu3 }
 0x1ae   : > { %v6476_v63 = vadd.f32 %v1169_v32, %v987_v55  ;;  %v1331_v46 = vpop.f32.mrf.mxu0  ;;  %5407 = vmatmul.msk.bf16.gmra.mxu2 %vm278_vm1, %v6214_v2 }
 0x1af   : > { %v6480_v52 = vadd.f32 %v1331_v46, %v6288_v59  ;;  %v768_v26 = vpop.f32.mrf.mxu1 }
 0x1b0   : > { %v769_v17 = vadd.f32 %v768_v26, %v6206_v41  ;;  %v8428_v26 = vld [vmem:[#allocation46_spill] sm:$0xff] }
 0x1b1   : > { %v954_v59 = vpop.f32.mrf.mxu2 }
 0x1b2   : > { %v989_v37 = vadd.f32 %v954_v59, %v767_v60  ;;  %v8427_v60 = vld [vmem:[#allocation37_spill] sm:$0xff] }
 0x1b5   : > { %v1171_v54 = vpop.f32.mrf.mxu3 }
 0x1b6   : > { %v6486_v45 = vadd.f32 %v1171_v54, %v988_v3  ;;  %v1334_v30 = vpop.f32.mrf.mxu0  ;;  %v1237_v3 = vld [vmem:[#allocation2 + $0x1c8] sm:$0xff]  ;;  %v8426_v54 = vld [vmem:[#allocation36_spill] sm:$0xff] }
 0x1b7   : > { %v6490_v9 = vadd.f32 %v1334_v30, %v6296_v44  ;;  %v1539_v20 = vpop.f32.mrf.mxu1 }
 0x1b8   : > { %v1619_v25 = vadd.f32 %v1539_v20, %v6431_v36 }
 0x1b9   : > { %5379 = vmatmul.msk.bf16.gmra.mxu0 %vm278_vm1, %v6286_v19  ;;  %v956_v44 = vpop.f32.mrf.mxu2 }
 0x1ba   : > { %5423 = vmatmul.msk.bf16.gmra.mxu3 %vm278_vm1, %v6212_v23  ;;  %v990_v22 = vadd.f32 %v956_v44, %v769_v17  ;;  %5392 = vmatmul.msk.bf16.gmra.mxu1 %vm278_vm1, %v6230_v5 }
 0x1bd   : > { %v1174_v35 = vpop.f32.mrf.mxu3 }
 0x1be   : > { %v6496_v1 = vadd.f32 %v1174_v35, %v989_v37  ;;  %v1336_v2 = vpop.f32.mrf.mxu0  ;;  %5408 = vmatmul.msk.bf16.gmra.mxu2 %vm278_vm1, %v6242_v18 }
 0x1bf   : > { %v6500_v0 = vadd.f32 %v1336_v2, %v6304_v16  ;;  %v1541_v42 = vpop.f32.mrf.mxu1 }
 0x1c0   : > { %v1620_v55 = vadd.f32 %v1541_v42, %v6440_v33  ;;  %v1238_v33 = vld [vmem:[#allocation2 + $0x1d0] sm:$0xff]  ;;  %v1239_v42 = vld [vmem:[#allocation2 + $0x1e8] sm:$0xff] }
 0x1c1   : > { %v1760_v61 = vpop.f32.mrf.mxu2 }
 0x1c2   : > { %v1840_v36 = vadd.f32 %v1760_v61, %v1619_v25  ;;  %v8429_v25 = vld [vmem:[#allocation48_spill] sm:$0xff] }
 0x1c5   : > { %v1176_v23 = vpop.f32.mrf.mxu3 }
 0x1c6   : > { %v6509_v41 = vadd.f32 %v1176_v23, %v990_v22  ;;  %v1339_v16 = vpop.f32.mrf.mxu0 }
 0x1c7   : > { %v6512_v49 = vadd.f32 %v1339_v16, %v6312_v51  ;;  %v1544_v7 = vpop.f32.mrf.mxu1 }
 0x1c8   : > { %v1621_v34 = vadd.f32 %v1544_v7, %v6450_v27  ;;  %v8432_v7 = vld [vmem:[#allocation49_spill] sm:$0xff] }
 0x1c9   : > { %5380 = vmatmul.msk.bf16.gmra.mxu0 %vm278_vm1, %v6507_v62  ;;  %v1762_v51 = vpop.f32.mrf.mxu2 }
 0x1ca   : > { %5424 = vmatmul.msk.bf16.gmra.mxu3 %vm278_vm1, %v6240_v11  ;;  %v1841_v6 = vadd.f32 %v1762_v51, %v1620_v55  ;;  %5393 = vmatmul.msk.bf16.gmra.mxu1 %vm278_vm1, %v8426_v54  ;;  %v6529_v11 = vpack.c.bf16 %v1238_v33, %v1237_v3 }
 0x1cd   : > { %v1980_v5 = vpop.f32.mrf.mxu3 }
 0x1ce   : > { %v6519_v18 = vadd.f32 %v1980_v5, %v1840_v36  ;;  %v1341_v32 = vpop.f32.mrf.mxu0  ;;  %5409 = vmatmul.msk.bf16.gmra.mxu2 %vm278_vm1, %v8427_v60  ;;  %v8430_v36 = vld [vmem:[#allocation38_spill] sm:$0xff]  ;;  %v8431_v5 = vld [vmem:[#allocation39_spill] sm:$0xff] }
 0x1cf   : > { %v6522_v46 = vadd.f32 %v1341_v32, %v6320_v38  ;;  %v1546_v2 = vpop.f32.mrf.mxu1 }
 0x1d0   : > { %v1622_v17 = vadd.f32 %v1546_v2, %v6460_v31  ;;  %v1240_v31 = vld [vmem:[#allocation2 + $0x1f0] sm:$0xff] }
 0x1d1   : > { %v1765_v35 = vpop.f32.mrf.mxu2 }
 0x1d2   : > { %v1842_v27 = vadd.f32 %v1765_v35, %v1621_v34 }
 0x1d5   : > { %v1982_v30 = vpop.f32.mrf.mxu3 }
 0x1d6   : > { %v6531_v59 = vadd.f32 %v1982_v30, %v1841_v6  ;;  %v1344_v38 = vpop.f32.mrf.mxu0 }
 0x1d7   : > { %v6534_v37 = vadd.f32 %v1344_v38, %v8428_v26  ;;  %v1549_v23 = vpop.f32.mrf.mxu1 }
 0x1d8   : > { %v1623_v61 = vadd.f32 %v1549_v23, %v6470_v53 }
 0x1d9   : > { %5381 = vmatmul.msk.bf16.gmra.mxu0 %vm278_vm1, %v6529_v11  ;;  %v1767_v14 = vpop.f32.mrf.mxu2 }
 0x1da   : > { %5425 = vmatmul.msk.bf16.gmra.mxu3 %vm278_vm1, %v6264_v58  ;;  %v1843_v16 = vadd.f32 %v1767_v14, %v1622_v17  ;;  %5394 = vmatmul.msk.bf16.gmra.mxu1 %vm278_vm1, %v8430_v36  ;;  %v6551_v58 = vpack.c.bf16 %v1240_v31, %v1239_v42  ;;  %v1241_v17 = vld [vmem:[#allocation2 + $0x208] sm:$0xff] }
 0x1dd   : > { %v1985_v44 = vpop.f32.mrf.mxu3 }
 0x1de   : > { %v6541_v20 = vadd.f32 %v1985_v44, %v1842_v27  ;;  %v1346_v22 = vpop.f32.mrf.mxu0  ;;  %5410 = vmatmul.msk.bf16.gmra.mxu2 %vm278_vm1, %v8431_v5  ;;  %v8433_v44 = vld [vmem:[#allocation40_spill] sm:$0xff] }
 0x1df   : > { %v6544_v48 = vadd.f32 %v1346_v22, %v8429_v25  ;;  %v1551_v3 = vpop.f32.mrf.mxu1  ;;  %v8434_v25 = vld [vmem:[#allocation41_spill] sm:$0xff] }
 0x1e0   : > { %v1624_v33 = vadd.f32 %v1551_v3, %v6480_v52  ;;  %v1242_v52 = vld [vmem:[#allocation2 + $0x210] sm:$0xff] }
 0x1e1   : > { %v1770_v34 = vpop.f32.mrf.mxu2  ;;  %v2092_v3 = vld [vmem:[#allocation2 + $0x49] sm:$0xff] }
 0x1e2   : > { %v1844_v53 = vadd.f32 %v1770_v34, %v1623_v61 }
 0x1e5   : > { %v1987_v55 = vpop.f32.mrf.mxu3 }
 0x1e6   : > { %v6553_v32 = vadd.f32 %v1987_v55, %v1843_v16  ;;  %v1349_v51 = vpop.f32.mrf.mxu0 }
 0x1e7   : > { %v6556_v6 = vadd.f32 %v1349_v51, %v8432_v7  ;;  %v1554_v35 = vpop.f32.mrf.mxu1 }
 0x1e8   : > { %v1625_v27 = vadd.f32 %v1554_v35, %v6490_v9 }
 0x1e9   : > { %5382 = vmatmul.msk.bf16.gmra.mxu0 %vm278_vm1, %v6551_v58  ;;  %v1772_v26 = vpop.f32.mrf.mxu2 }
 0x1ea   : > { %5426 = vmatmul.msk.bf16.gmra.mxu3 %vm278_vm1, %v6286_v19  ;;  %v1845_v2 = vadd.f32 %v1772_v26, %v1624_v33  ;;  %5395 = vmatmul.msk.bf16.gmra.mxu1 %vm278_vm1, %v8433_v44  ;;  %v6573_v19 = vpack.c.bf16 %v1242_v52, %v1241_v17 }
 0x1ed   : > { %v1990_v54 = vpop.f32.mrf.mxu3 }
 0x1ee   : > { %v6563_v30 = vadd.f32 %v1990_v54, %v1844_v53  ;;  %v1351_v60 = vpop.f32.mrf.mxu0  ;;  %5411 = vmatmul.msk.bf16.gmra.mxu2 %vm278_vm1, %v8434_v25  ;;  %v8435_v53 = vld [vmem:[#allocation42_spill] sm:$0xff]  ;;  %v8436_v54 = vld [vmem:[#allocation43_spill] sm:$0xff] }
 0x1ef   : > { %v6566_v38 = vadd.f32 %v1351_v60, %v6362_v21  ;;  %v1556_v61 = vpop.f32.mrf.mxu1 }
 0x1f0   : > { %v1626_v42 = vadd.f32 %v1556_v61, %v6500_v0  ;;  %v2093_v0 = vld [vmem:[#allocation2 + $0x51] sm:$0xff]  ;;  %v8437_v61 = vld [vmem:[#allocation47_spill] sm:$0xff] }
 0x1f1   : > { %v1775_v16 = vpop.f32.mrf.mxu2 }
 0x1f2   : > { %v1846_v9 = vadd.f32 %v1775_v16, %v1625_v27  ;;  %v2095_v16 = vld [vmem:[#allocation2 + $0x71] sm:$0xff] }
 0x1f5   : > { %v1992_v22 = vpop.f32.mrf.mxu3 }
 0x1f6   : > { %v6575_v14 = vadd.f32 %v1992_v22, %v1845_v2  ;;  %v1354_v21 = vpop.f32.mrf.mxu0 }
 0x1f7   : > { %v6578_v23 = vadd.f32 %v1354_v21, %v6370_v43  ;;  %v1559_v51 = vpop.f32.mrf.mxu1  ;;  %v2094_v21 = vld [vmem:[#allocation2 + $0x69] sm:$0xff] }
 0x1f8   : > { %v1627_v34 = vadd.f32 %v1559_v51, %v6512_v49 }
 0x1f9   : > { %5383 = vmatmul.msk.bf16.gmra.mxu0 %vm278_vm1, %v6573_v19  ;;  %v1777_v43 = vpop.f32.mrf.mxu2 }
 0x1fa   : > { %5427 = vmatmul.msk.bf16.gmra.mxu3 %vm278_vm1, %v6507_v62  ;;  %v1847_v7 = vadd.f32 %v1777_v43, %v1626_v42  ;;  %5396 = vmatmul.msk.bf16.gmra.mxu1 %vm278_vm1, %v8435_v53  ;;  %v2124_v62 = vpack.c.bf16 %v2093_v0, %v2092_v3  ;;  %v2097_v3 = vld [vmem:[#allocation2 + $0x91] sm:$0xff] }
 0x1fd   : > { %v1995_v31 = vpop.f32.mrf.mxu3 }
 0x1fe   : > { %v6585_v36 = vadd.f32 %v1995_v31, %v1846_v9  ;;  %v1356_v55 = vpop.f32.mrf.mxu0  ;;  %5412 = vmatmul.msk.bf16.gmra.mxu2 %vm278_vm1, %v8436_v54 }
 0x1ff   : > { %v6588_v5 = vadd.f32 %v1356_v55, %v6376_v8  ;;  %v6600_v2 = vpop.f32.mrf.mxu1 }
 0x201   : > { %v1780_v35 = vpop.f32.mrf.mxu2 }
 0x202   : > { %v1848_v49 = vadd.f32 %v1780_v35, %v1627_v34  ;;  %v2096_v34 = vld [vmem:[#allocation2 + $0x89] sm:$0xff] }
 0x203   : > { %v2126_v53 = vpack.c.bf16 %v2097_v3, %v2096_v34  ;;  %v1682_v35 = vld [vmem:[#allocation2 + $0x227] sm:$0xff] }
 0x205   : > { %v1997_v33 = vpop.f32.mrf.mxu3 }
 0x206   : > { %v6595_v60 = vadd.f32 %v1997_v33, %v1847_v7  ;;  %v1359_v26 = vpop.f32.mrf.mxu0 }
 0x207   : > { %v6598_v8 = vadd.f32 %v1359_v26, %v6382_v29  ;;  %v1564_v29 = vpop.f32.mrf.mxu1 }
 0x208   : > { %v6613_v25 = vadd.f32 %v1564_v29, %v6534_v37 }
 0x209   : > { %5432 = vmatmul.msk.bf16.vlgmr.msra.gmra.mxu0 %vm278_vm1, %v2124_v62  ;;  %v6610_v22 = vpop.f32.mrf.mxu2 }
 0x20a   : > { %5428 = vmatmul.msk.bf16.gmra.mxu3 %vm278_vm1, %v6529_v11  ;;  %5397 = vmatmul.msk.bf16.gmra.mxu1 %vm278_vm1, %v8437_v61  ;;  %v2125_v11 = vpack.c.bf16 %v2095_v16, %v2094_v21  ;;  %v2098_v61 = vld [vmem:[#allocation2 + $0xa9] sm:$0xff] }
 0x20d   : > { %v2000_v27 = vpop.f32.mrf.mxu3 }
 0x20e   : > { %v6605_v17 = vadd.f32 %v2000_v27, %v1848_v49  ;;  %v1361_v52 = vpop.f32.mrf.mxu0  ;;  %5413 = vmatmul.msk.bf16.gmra.mxu2 %vm278_vm1, %v6348_v28  ;;  %v1683_v49 = vld [vmem:[#allocation2 + $0x22f] sm:$0xff] }
 0x20f   : > { %v6608_v44 = vadd.f32 %v1361_v52, %v6388_v40  ;;  %v6626_v55 = vpop.f32.mrf.mxu1  ;;  %v1699_v16 = vpack.c.bf16 %v1683_v49, %v1682_v35 }
 0x211   : > { %v6624_v31 = vpop.f32.mrf.mxu2 }
 0x215   : > { %v6617_v9 = vpop.f32.mrf.mxu3 }
 0x216   : > { %v1364_v42 = vpop.f32.mrf.mxu0 }
 0x217   : > { %v6622_v40 = vadd.f32 %v1364_v42, %v6394_v47  ;;  %v1569_v7 = vpop.f32.mrf.mxu1  ;;  %v1902_v42 = vld [vmem:[#allocation2 + $0x228] sm:$0xff] }
 0x218   : > { %v6639_v47 = vadd.f32 %v1569_v7, %v6556_v6  ;;  %v1462_v6 = vld [vmem:[#allocation2 + $0x211] sm:$0xff] }
 0x219   : > { %5433 = vmatmul.msk.bf16.gmra.mxu0 %vm278_vm1, %v2125_v11  ;;  %v6636_v28 = vpop.f32.mrf.mxu2  ;;  %v2099_v11 = vld [vmem:[#allocation2 + $0xb1] sm:$0xff] }
 0x21a   : > { %5429 = vmatmul.msk.bf16.gmra.mxu3 %vm278_vm1, %v6551_v58  ;;  %5398 = vmatmul.msk.bf16.gmra.mxu1 %vm278_vm1, %v6356_v12  ;;  %v8439_v58 = vld [vmem:[#allocation50_spill] sm:$0xff]  ;;  %v1461_v12 = vld [vmem:[#allocation2 + $0x209] sm:$0xff] }
 0x21b   : > { %v6659_v52 = vpack.c.bf16 %v1462_v6, %v1461_v12 }
 0x21d   : > { %v6631_v37 = vpop.f32.mrf.mxu3 }
 0x21e   : > { %v1366_v43 = vpop.f32.mrf.mxu0  ;;  %5414 = vmatmul.msk.bf16.gmra.mxu2 %vm278_vm1, %v8439_v58 }
 0x21f   : > { %v6634_v51 = vadd.f32 %v1366_v43, %v6400_v50  ;;  %v6650_v54 = vpop.f32.mrf.mxu1  ;;  %v1903_v43 = vld [vmem:[#allocation2 + $0x230] sm:$0xff] }
 0x220   : > { %v1919_v34 = vpack.c.bf16 %v1903_v43, %v1902_v42 }
 0x221   : > { %8438 = vst [vmem:[#allocation36_spill] sm:$0xff] %v6634_v51  ;;  %v6652_v62 = vpop.f32.mrf.mxu2  ;;  %v2829_v51 = vld [vmem:[#allocation2 + $0x9] sm:$0xff] }
 0x225   : > { %v6643_v0 = vpop.f32.mrf.mxu3 }
 0x226   : > { %v1369_v33 = vpop.f32.mrf.mxu0 }
 0x227   : > { %v6648_v50 = vadd.f32 %v1369_v33, %v6406_v56  ;;  %v1574_v29 = vpop.f32.mrf.mxu1 }
 0x228   : > { %v6665_v21 = vadd.f32 %v1574_v29, %v6578_v23 }
 0x229   : > { %5434 = vmatmul.msk.bf16.gmra.mxu0 %vm278_vm1, %v2126_v53 }
 0x22a   : > { %5430 = vmatmul.msk.bf16.gmra.mxu3 %vm278_vm1, %v6573_v19  ;;  %v6667_v19 = vpop.f32.mrf.mxu2  ;;  %5399 = vmatmul.msk.bf16.gmra.mxu1 %vm278_vm1, %v6659_v52 }
 0x22d   : > { %v6657_v26 = vpop.f32.mrf.mxu3 }
 0x22e   : > { %v1371_v27 = vpop.f32.mrf.mxu0  ;;  %5415 = vmatmul.msk.bf16.gmra.mxu2 %vm278_vm1, %v1699_v16 }
 0x22f   : > { %v6662_v56 = vadd.f32 %v1371_v27, %v6416_v24  ;;  %v2127_v24 = vpack.c.bf16 %v2099_v11, %v2098_v61  ;;  %v6677_v58 = vpop.f32.mrf.mxu1  ;;  %v2101_v27 = vld [vmem:[#allocation2 + $0xd1] sm:$0xff] }
 0x231   : > { %8440 = vst [vmem:[#allocation37_spill] sm:$0xff] %v6662_v56 }
 0x232   : > { %v6681_v53 = vpop.f32.mrf.mxu2 }
 0x235   : > { %v6671_v7 = vpop.f32.mrf.mxu3 }
 0x236   : > { %v1374_v3 = vpop.f32.mrf.mxu0 }
 0x237   : > { %v6675_v23 = vadd.f32 %v1374_v3, %v6422_v39  ;;  %v1579_v35 = vpop.f32.mrf.mxu1  ;;  %v2100_v39 = vld [vmem:[#allocation2 + $0xc9] sm:$0xff] }
 0x238   : > { %v6689_v49 = vadd.f32 %v1579_v35, %v6598_v8  ;;  %v2128_v29 = vpack.c.bf16 %v2101_v27, %v2100_v39  ;;  %v2103_v35 = vld [vmem:[#allocation2 + $0xf1] sm:$0xff] }
 0x239   : > { %5435 = vmatmul.msk.bf16.gmra.mxu0 %vm278_vm1, %v2127_v24 }
 0x23a   : > { %5431 = vmatmul.msk.bf16.gmra.mxu3 %vm278_vm1, %v1919_v34  ;;  %v6691_v61 = vpop.f32.mrf.mxu2 }
 0x23d   : > { %v6683_v12 = vpop.f32.mrf.mxu3 }
 0x23e   : > { %v1376_v33 = vpop.f32.mrf.mxu0 }
 0x23f   : > { %v6686_v6 = vadd.f32 %v1376_v33, %v6428_v15  ;;  %v6696_v42 = vpop.f32.mrf.mxu1 }
 0x241   : > { %8441 = vst [vmem:[#allocation46_spill] sm:$0xff] %v6686_v6 }
 0x242   : > { %v6704_v34 = vpop.f32.mrf.mxu2 }
 0x245   : > { %v6698_v43 = vpop.f32.mrf.mxu3 }
 0x246   : > { %v1379_v16 = vpop.f32.mrf.mxu0 }
 0x247   : > { %v6694_v11 = vadd.f32 %v1379_v16, %v6437_v4  ;;  %v1584_v8 = vpop.f32.mrf.mxu1  ;;  %v2102_v4 = vld [vmem:[#allocation2 + $0xe9] sm:$0xff] }
 0x248   : > { %v6707_v3 = vadd.f32 %v1584_v8, %v6622_v40  ;;  %v2129_v39 = vpack.c.bf16 %v2103_v35, %v2102_v4  ;;  %v2444_v40 = vld [vmem:[%s8290_s3] sm:$0x3]  ;;  %v2446_v35 = vld [vmem:[%s8290_s3 + $0x4] sm:$0x3] }
 0x249   : > { %5436 = vmatmul.msk.bf16.gmra.mxu0 %vm278_vm1, %v2128_v29  ;;  %v2926_v56 = vsel %vm538_vm0, %v2446_v35, 0 }
 0x24a   : > { %8443 = vst [vmem:[#allocation38_spill] sm:$0xff] %v6707_v3  ;;  %v2830_v3 = vld [vmem:[#allocation2 + $0x11] sm:$0xff]  ;;  %2935 = vmatpush.bf16.msrb.mxu3 %v2926_v56 }
 0x24b   : > { %v2502_v56 = vld [vmem:[#allocation2 + $0x10] sm:$0xff] }
 0x24d   : > { %v6709_v33 = vpop.f32.mrf.mxu3 }
 0x24e   : > { %v1381_v15 = vpop.f32.mrf.mxu0 }
 0x24f   : > { %v6702_v24 = vadd.f32 %v1381_v15, %v6446_v57  ;;  %v6714_v29 = vpop.f32.mrf.mxu1  ;;  %v6717_v57 = vpop.f32.mrf.mxu2 }
 0x250   : > { %8444 = vst [vmem:[#allocation39_spill] sm:$0xff] %v6714_v29 }
 0x251   : > { %8442 = vst [vmem:[#allocation48_spill] sm:$0xff] %v6702_v24 }
 0x252   : > { %8445 = vst [vmem:[#allocation49_spill] sm:$0xff] %v6717_v57 }
 0x255   : > { %v6719_v15 = vpop.f32.mrf.mxu3 }
 0x256   : > { %v1384_v27 = vpop.f32.mrf.mxu0  ;;  %8446 = vst [vmem:[#allocation40_spill] sm:$0xff] %v6719_v15 }
 0x257   : > { %v6712_v16 = vadd.f32 %v1384_v27, %v6456_v13  ;;  %v1589_v4 = vpop.f32.mrf.mxu1  ;;  %v2738_v13 = vsel %vm538_vm0, %v2444_v40, 0  ;;  %v2454_v27 = vld [vmem:[#allocation2 + $0xf] sm:$0xff]  ;;  %v6736_v40 = vpop.f32.mrf.mxu2 }
 0x258   : > { %v6732_v6 = vadd.f32 %v1589_v4, %v6648_v50  ;;  %2747 = vmatpush.bf16.msrb.mxu2 %v2738_v13  ;;  %v2501_v4 = vld [vmem:[#allocation2 + $0x8] sm:$0xff] }
 0x259   : > { %5437 = vmatmul.msk.bf16.gmra.mxu0 %vm278_vm1, %v2129_v39  ;;  %v2453_v39 = vld [vmem:[#allocation2 + $0x7] sm:$0xff] }
 0x25a   : > { %v2485_v29 = vpack.c.bf16 %v2454_v27, %v2453_v39 }
 0x25c   : > { %5464 = vmatmul.msk.bf16.vlgmr.msrb.gmra.mxu2 %vm278_vm1, %v2485_v29 }
 0x25d   : > { %v6739_v57 = vpop.f32.mrf.mxu3 }
 0x25e   : > { %v1386_v24 = vpop.f32.mrf.mxu0 }
 0x25f   : > { %v6725_v8 = vadd.f32 %v1386_v24, %v6466_v10  ;;  %v2861_v10 = vpack.c.bf16 %v2830_v3, %v2829_v51  ;;  %v2104_v24 = vld [vmem:[#allocation2 + $0x109] sm:$0xff]  ;;  %v6744_v35 = vpop.f32.mrf.mxu1  ;;  %v2533_v51 = vpack.c.bf16 %v2502_v56, %v2501_v4  ;;  %v6748_v3 = vpop.f32.mrf.mxu2 }
 0x260   : > { %8448 = vst [vmem:[#allocation42_spill] sm:$0xff] %v6744_v35 }
 0x261   : > { %8447 = vst [vmem:[#allocation41_spill] sm:$0xff] %v6725_v8  ;;  %v2105_v8 = vld [vmem:[#allocation2 + $0x111] sm:$0xff]  ;;  %5480 = vmatmul.msk.bf16.vlgmr.msrb.gmra.mxu3 %vm278_vm1, %v2861_v10  ;;  %5448 = vmatmul.msk.bf16.vlgmr.msrb.gmra.mxu1 %vm278_vm1, %v2533_v51  ;;  %v2106_v10 = vld [vmem:[#allocation2 + $0x129] sm:$0xff] }
 0x262   : > { %v2130_v15 = vpack.c.bf16 %v2105_v8, %v2104_v24  ;;  %v2107_v24 = vld [vmem:[#allocation2 + $0x131] sm:$0xff]  ;;  %v2448_v51 = vld [vmem:[%s8290_s3 + $0x8] sm:$0x3] }
 0x265   : > { %v6753_v27 = vpop.f32.mrf.mxu3 }
 0x266   : > { %v1389_v50 = vpop.f32.mrf.mxu0 }
 0x267   : > { %v6742_v13 = vadd.f32 %v1389_v50, %v6476_v63  ;;  %v1594_v39 = vpop.f32.mrf.mxu1  ;;  %v2131_v50 = vpack.c.bf16 %v2107_v24, %v2106_v10 }
 0x268   : > { %v6756_v63 = vadd.f32 %v1594_v39, %v6675_v23  ;;  %v3366_v39 = vsel %vm538_vm0, %v2448_v51, 0 }
 0x269   : > { %5438 = vmatmul.msk.bf16.gmra.mxu0 %vm278_vm1, %v2130_v15  ;;  %3375 = vmatpush.bf16.msra.mxu1 %v3366_v39 }
 0x26a   : > { %8450 = vst [vmem:[#allocation47_spill] sm:$0xff] %v6756_v63  ;;  %v2108_v63 = vld [vmem:[#allocation2 + $0x149] sm:$0xff] }
 0x26e   : > { %v1391_v29 = vpop.f32.mrf.mxu0 }
 0x26f   : > { %v6751_v8 = vadd.f32 %v1391_v29, %v6486_v45  ;;  %v6761_v56 = vpop.f32.mrf.mxu1  ;;  %v2447_v45 = vld [vmem:[%s8290_s3 + $0x6] sm:$0x3]  ;;  %v6769_v29 = vpop.f32.mrf.mxu2 }
 0x270   : > { %8451 = vst [vmem:[#allocation50_spill] sm:$0xff] %v6761_v56  ;;  %v3146_v23 = vsel %vm538_vm0, %v2447_v45, 0  ;;  %v2109_v45 = vld [vmem:[#allocation2 + $0x151] sm:$0xff] }
 0x271   : > { %8449 = vst [vmem:[#allocation43_spill] sm:$0xff] %v6751_v8  ;;  %3155 = vmatpush.bf16.msrb.mxu0 %v3146_v23  ;;  %v2132_v51 = vpack.c.bf16 %v2109_v45, %v2108_v63 }
 0x276   : > { %v1394_v4 = vpop.f32.mrf.mxu0 }
 0x277   : > { %v6759_v15 = vadd.f32 %v1394_v4, %v6496_v1  ;;  %v6774_v1 = vpop.f32.mrf.mxu3  ;;  %v1599_v4 = vpop.f32.mrf.mxu1 }
 0x278   : > { %v6780_v8 = vadd.f32 %v1599_v4, %v6694_v11  ;;  %v6782_v56 = vpop.f32.mrf.mxu2 }
 0x279   : > { %5439 = vmatmul.msk.bf16.gmra.mxu0 %vm278_vm1, %v2131_v50  ;;  %8454 = vst [vmem:[#allocation53_spill] sm:$0xff] %v6782_v56  ;;  %v6789_v50 = vld [vmem:[%s8289_s2] ss:$0 sm:$0xff] }
 0x27a   : > { %8453 = vst [vmem:[#allocation52_spill] sm:$0xff] %v6780_v8 }
 0x27e   : > { %v1396_v10 = vpop.f32.mrf.mxu0 }
 0x27f   : > { %v6777_v24 = vadd.f32 %v1396_v10, %v6509_v41  ;;  %v6784_v35 = vpop.f32.mrf.mxu3  ;;  %v6792_v39 = vpop.f32.mrf.mxu1 }
 0x280   : > { %8455 = vst [vmem:[#allocation54_spill] sm:$0xff] %v6784_v35  ;;  %v6796_v4 = vpop.f32.mrf.mxu2 }
 0x281   : > { %8452 = vst [vmem:[#allocation51_spill] sm:$0xff] %v6777_v24  ;;  %v8458_v24 = vld [vmem:[#allocation12_spill] sm:$0xff] }
 0x282   : > { %8456 = vst [vmem:[#allocation55_spill] sm:$0xff] %v6792_v39  ;;  %v8462_v39 = vld [vmem:[#allocation13_spill] sm:$0xff] }
 0x283   : > { %8457 = vst [vmem:[#allocation56_spill] sm:$0xff] %v6796_v4 }
 0x286   : > { %v2200_v23 = vpop.f32.mrf.mxu0 }
 0x287   : > { %v2280_v41 = vadd.f32 %v2200_v23, %v6519_v18  ;;  %v6801_v35 = vpop.f32.mrf.mxu3  ;;  %v1604_v63 = vpop.f32.mrf.mxu1  ;;  %v2110_v23 = vld [vmem:[#allocation2 + $0x169] sm:$0xff] }
 0x288   : > { %8460 = vst [vmem:[#allocation57_spill] sm:$0xff] %v6801_v35  ;;  %v6807_v45 = vadd.f32 %v1604_v63, %v6712_v16  ;;  %v6813_v35 = vpop.f32.mrf.mxu2 }
 0x289   : > { %v2316_v11 = vadd.f32 %v6789_v50, %v2280_v41  ;;  %5440 = vmatmul.msk.bf16.gmra.mxu0 %vm278_vm1, %v2132_v51  ;;  %v2111_v41 = vld [vmem:[#allocation2 + $0x171] sm:$0xff] }
 0x28a   : > { %8461 = vst [vmem:[#allocation58_spill] sm:$0xff] %v6807_v45 }
 0x28b   : > { %v2348_v10 = vmax.f32 %v2316_v11, 0.0 }
 0x28d   : > { %v6799_v8 = vadd.f32 %v2348_v10, %v8458_v24  ;;  %v2133_v10 = vpack.c.bf16 %v2111_v41, %v2110_v23 }
 0x28e   : > { %v2202_v56 = vpop.f32.mrf.mxu0 }
 0x28f   : > { %8459 = vst [vmem:[#allocation12_spill] sm:$0xff] %v6799_v8  ;;  %v2281_v18 = vadd.f32 %v2202_v56, %v6531_v59  ;;  %v6818_v56 = vpop.f32.mrf.mxu1  ;;  %v6820_v16 = vpop.f32.mrf.mxu3 }
 0x290   : > { %2412 = vst.msk [vmem:[#allocation2 + $0x28] sm:$0xff] %vm278_vm1, %v6799_v8 }
 0x291   : > { %v2317_v51 = vadd.f32 %v6789_v50, %v2281_v18  ;;  %8464 = vst [vmem:[#allocation59_spill] sm:$0xff] %v6818_v56 }
 0x292   : > { %8465 = vst [vmem:[#allocation60_spill] sm:$0xff] %v6820_v16 }
 0x293   : > { %v2349_v11 = vmax.f32 %v2317_v51, 0.0 }
 0x295   : > { %v6811_v24 = vadd.f32 %v2349_v11, %v8462_v39  ;;  %v8466_v39 = vld [vmem:[#allocation14_spill] sm:$0xff] }
 0x296   : > { %v2205_v4 = vpop.f32.mrf.mxu0 }
 0x297   : > { %8463 = vst [vmem:[#allocation13_spill] sm:$0xff] %v6811_v24  ;;  %v2282_v59 = vadd.f32 %v2205_v4, %v6541_v20  ;;  %v2503_v23 = vld [vmem:[#allocation2 + $0x28] sm:$0xff] }
 0x298   : > { %2413 = vst.msk [vmem:[#allocation2 + $0x30] sm:$0xff] %vm278_vm1, %v6811_v24  ;;  %v2455_v41 = vld [vmem:[#allocation2 + $0x27] sm:$0xff] }
 0x299   : > { %v2318_v18 = vadd.f32 %v6789_v50, %v2282_v59  ;;  %5441 = vmatmul.msk.bf16.gmra.mxu0 %vm278_vm1, %v2133_v10  ;;  %v1609_v10 = vpop.f32.mrf.mxu1 }
 0x29b   : > { %v2350_v63 = vmax.f32 %v2318_v18, 0.0  ;;  %v6832_v18 = vpop.f32.mrf.mxu2 }
 0x29d   : > { %v6825_v51 = vadd.f32 %v2350_v63, %v8466_v39  ;;  %v6835_v39 = vadd.f32 %v1609_v10, %v6742_v13 }
 0x29e   : > { %v2207_v11 = vpop.f32.mrf.mxu0 }
 0x29f   : > { %8467 = vst [vmem:[#allocation14_spill] sm:$0xff] %v6825_v51  ;;  %v2504_v8 = vld [vmem:[#allocation2 + $0x30] sm:$0xff]  ;;  %v2283_v20 = vadd.f32 %v2207_v11, %v6553_v32 }
 0x2a0   : > { %v2456_v45 = vld [vmem:[#allocation2 + $0x2f] sm:$0xff]  ;;  %2414 = vst.msk [vmem:[#allocation2 + $0x48] sm:$0xff] %vm278_vm1, %v6825_v51  ;;  %v2534_v4 = vpack.c.bf16 %v2504_v8, %v2503_v23  ;;  %v6841_v51 = vpop.f32.mrf.mxu3 }
 0x2a1   : > { %v2831_v24 = vld [vmem:[#allocation2 + $0x29] sm:$0xff]  ;;  %v6830_v56 = vpack.c.bf16 %v2456_v45, %v2455_v41  ;;  %v2832_v59 = vld [vmem:[#allocation2 + $0x31] sm:$0xff]  ;;  %8468 = vst [vmem:[#allocation61_spill] sm:$0xff] %v6835_v39  ;;  %v2319_v16 = vadd.f32 %v6789_v50, %v2283_v20  ;;  %v6850_v20 = vpop.f32.mrf.mxu1 }
 0x2a2   : > { %v2862_v63 = vpack.c.bf16 %v2832_v59, %v2831_v24  ;;  %5449 = vmatmul.msk.bf16.gmra.mxu1 %vm278_vm1, %v2534_v4  ;;  %v2112_v32 = vld [vmem:[#allocation2 + $0x189] sm:$0xff]  ;;  %v2113_v8 = vld [vmem:[#allocation2 + $0x191] sm:$0xff]  ;;  %8471 = vst [vmem:[#allocation62_spill] sm:$0xff] %v6850_v20 }
 0x2a3   : > { %5465 = vmatmul.msk.bf16.gmra.mxu2 %vm278_vm1, %v6830_v56  ;;  %v2351_v45 = vmax.f32 %v2319_v16, 0.0  ;;  %v8469_v23 = vld [vmem:[#allocation15_spill] sm:$0xff]  ;;  %v2134_v24 = vpack.c.bf16 %v2113_v8, %v2112_v32  ;;  %v6854_v59 = vpop.f32.mrf.mxu2 }
 0x2a4   : > { %5481 = vmatmul.msk.bf16.gmra.mxu3 %vm278_vm1, %v2862_v63  ;;  %v8473_v63 = vld [vmem:[#allocation16_spill] sm:$0xff] }
 0x2a5   : > { %v6845_v41 = vadd.f32 %v2351_v45, %v8469_v23 }
 0x2a6   : > { %v2210_v13 = vpop.f32.mrf.mxu0 }
 0x2a7   : > { %8470 = vst [vmem:[#allocation15_spill] sm:$0xff] %v6845_v41  ;;  %v2284_v11 = vadd.f32 %v2210_v13, %v6563_v30  ;;  %v2505_v32 = vld [vmem:[#allocation2 + $0x48] sm:$0xff] }
 0x2a8   : > { %2415 = vst.msk [vmem:[#allocation2 + $0x50] sm:$0xff] %vm278_vm1, %v6845_v41  ;;  %v6856_v16 = vpop.f32.mrf.mxu3  ;;  %v2457_v8 = vld [vmem:[#allocation2 + $0x47] sm:$0xff] }
 0x2a9   : > { %v2320_v4 = vadd.f32 %v6789_v50, %v2284_v11  ;;  %5442 = vmatmul.msk.bf16.gmra.mxu0 %vm278_vm1, %v2134_v24  ;;  %8472 = vst [vmem:[#allocation63_spill] sm:$0xff] %v6856_v16  ;;  %v1614_v20 = vpop.f32.mrf.mxu1 }
 0x2ab   : > { %v2352_v10 = vmax.f32 %v2320_v4, 0.0 }
 0x2ad   : > { %v6859_v45 = vadd.f32 %v2352_v10, %v8473_v63  ;;  %v6867_v10 = vadd.f32 %v1614_v20, %v6759_v15 }
 0x2ae   : > { %v2212_v23 = vpop.f32.mrf.mxu0 }
 0x2af   : > { %8474 = vst [vmem:[#allocation16_spill] sm:$0xff] %v6859_v45  ;;  %v2506_v41 = vld [vmem:[#allocation2 + $0x50] sm:$0xff]  ;;  %v2285_v13 = vadd.f32 %v2212_v23, %v6575_v14 }
 0x2b0   : > { %v2458_v39 = vld [vmem:[#allocation2 + $0x4f] sm:$0xff]  ;;  %2416 = vst.msk [vmem:[#allocation2 + $0x68] sm:$0xff] %vm278_vm1, %v6859_v45  ;;  %v2535_v24 = vpack.c.bf16 %v2506_v41, %v2505_v32  ;;  %v8476_v32 = vld [vmem:[#allocation17_spill] sm:$0xff]  ;;  %v6879_v15 = vpop.f32.mrf.mxu3 }
 0x2b1   : > { %v2833_v30 = vld [vmem:[#allocation2 + $0x49] sm:$0xff]  ;;  %v6864_v11 = vpack.c.bf16 %v2458_v39, %v2457_v8  ;;  %v2834_v4 = vld [vmem:[#allocation2 + $0x51] sm:$0xff]  ;;  %8475 = vst [vmem:[#allocation64_spill] sm:$0xff] %v6867_v10  ;;  %v2321_v63 = vadd.f32 %v6789_v50, %v2285_v13  ;;  %v6874_v39 = vpop.f32.mrf.mxu2 }
 0x2b2   : > { %v2863_v16 = vpack.c.bf16 %v2834_v4, %v2833_v30  ;;  %5450 = vmatmul.msk.bf16.gmra.mxu1 %vm278_vm1, %v2535_v24  ;;  %v2114_v45 = vld [vmem:[#allocation2 + $0x1a9] sm:$0xff]  ;;  %v2115_v14 = vld [vmem:[#allocation2 + $0x1b1] sm:$0xff]  ;;  %8478 = vst [vmem:[#allocation65_spill] sm:$0xff] %v6879_v15  ;;  %v8479_v24 = vld [vmem:[#allocation18_spill] sm:$0xff] }
 0x2b3   : > { %5466 = vmatmul.msk.bf16.gmra.mxu2 %vm278_vm1, %v6864_v11  ;;  %v2353_v41 = vmax.f32 %v2321_v63, 0.0  ;;  %v2135_v23 = vpack.c.bf16 %v2115_v14, %v2114_v45 }
 0x2b4   : > { %5482 = vmatmul.msk.bf16.gmra.mxu3 %vm278_vm1, %v2863_v16 }
 0x2b5   : > { %v6877_v8 = vadd.f32 %v2353_v41, %v8476_v32 }
 0x2b6   : > { %v2215_v20 = vpop.f32.mrf.mxu0 }
 0x2b7   : > { %8477 = vst [vmem:[#allocation17_spill] sm:$0xff] %v6877_v8  ;;  %v2286_v30 = vadd.f32 %v2215_v20, %v6585_v36  ;;  %v2507_v63 = vld [vmem:[#allocation2 + $0x68] sm:$0xff] }
 0x2b8   : > { %2417 = vst.msk [vmem:[#allocation2 + $0x70] sm:$0xff] %vm278_vm1, %v6877_v8  ;;  %v2459_v41 = vld [vmem:[#allocation2 + $0x67] sm:$0xff] }
 0x2b9   : > { %v2322_v13 = vadd.f32 %v6789_v50, %v2286_v30  ;;  %5443 = vmatmul.msk.bf16.gmra.mxu0 %vm278_vm1, %v2135_v23  ;;  %v6889_v32 = vpop.f32.mrf.mxu2  ;;  %v2116_v8 = vld [vmem:[#allocation2 + $0x1c9] sm:$0xff] }
 0x2ba   : > { %8481 = vst [vmem:[#allocation66_spill] sm:$0xff] %v6889_v32 }
 0x2bb   : > { %v2354_v16 = vmax.f32 %v2322_v13, 0.0  ;;  %v6896_v13 = vpop.f32.mrf.mxu3 }
 0x2bd   : > { %v6887_v4 = vadd.f32 %v2354_v16, %v8479_v24 }
 0x2be   : > { %v2217_v45 = vpop.f32.mrf.mxu0 }
 0x2bf   : > { %8480 = vst [vmem:[#allocation18_spill] sm:$0xff] %v6887_v4  ;;  %v2508_v14 = vld [vmem:[#allocation2 + $0x70] sm:$0xff]  ;;  %v2287_v36 = vadd.f32 %v2217_v45, %v6595_v60  ;;  %v8482_v60 = vld [vmem:[#allocation19_spill] sm:$0xff] }
 0x2c0   : > { %v2460_v10 = vld [vmem:[#allocation2 + $0x6f] sm:$0xff]  ;;  %2418 = vst.msk [vmem:[#allocation2 + $0x88] sm:$0xff] %vm278_vm1, %v6887_v4  ;;  %v2536_v20 = vpack.c.bf16 %v2508_v14, %v2507_v63 }
 0x2c1   : > { %v2835_v15 = vld [vmem:[#allocation2 + $0x69] sm:$0xff]  ;;  %v6894_v30 = vpack.c.bf16 %v2460_v10, %v2459_v41  ;;  %v2836_v23 = vld [vmem:[#allocation2 + $0x71] sm:$0xff]  ;;  %v2323_v24 = vadd.f32 %v6789_v50, %v2287_v36  ;;  %v6911_v14 = vpop.f32.mrf.mxu2 }
 0x2c2   : > { %v2864_v16 = vpack.c.bf16 %v2836_v23, %v2835_v15  ;;  %5451 = vmatmul.msk.bf16.gmra.mxu1 %vm278_vm1, %v2536_v20  ;;  %v2117_v4 = vld [vmem:[#allocation2 + $0x1d1] sm:$0xff]  ;;  %v1628_v15 = vadd.f32 %v6600_v2, %v6522_v46 }
 0x2c3   : > { %5467 = vmatmul.msk.bf16.gmra.mxu2 %vm278_vm1, %v6894_v30  ;;  %v2355_v32 = vmax.f32 %v2323_v24, 0.0  ;;  %v2136_v10 = vpack.c.bf16 %v2117_v4, %v2116_v8  ;;  %v8484_v23 = vld [vmem:[#allocation20_spill] sm:$0xff] }
 0x2c4   : > { %5483 = vmatmul.msk.bf16.gmra.mxu3 %vm278_vm1, %v2864_v16  ;;  %v1849_v36 = vadd.f32 %v6610_v22, %v1628_v15 }
 0x2c5   : > { %v6904_v63 = vadd.f32 %v2355_v32, %v8482_v60  ;;  %v6916_v32 = vpop.f32.mrf.mxu3 }
 0x2c6   : > { %v2220_v41 = vpop.f32.mrf.mxu0  ;;  %v2069_v4 = vadd.f32 %v6617_v9, %v1849_v36  ;;  %v1850_v9 = vadd.f32 %v6624_v31, %v6613_v25  ;;  %v8486_v31 = vld [vmem:[#allocation21_spill] sm:$0xff] }
 0x2c7   : > { %8483 = vst [vmem:[#allocation19_spill] sm:$0xff] %v6904_v63  ;;  %v2288_v45 = vadd.f32 %v2220_v41, %v6605_v17  ;;  %v2509_v2 = vld [vmem:[#allocation2 + $0x88] sm:$0xff] }
 0x2c8   : > { %2419 = vst.msk [vmem:[#allocation2 + $0x90] sm:$0xff] %vm278_vm1, %v6904_v63  ;;  %v2461_v16 = vld [vmem:[#allocation2 + $0x87] sm:$0xff]  ;;  %v2070_v25 = vadd.f32 %v6631_v37, %v1850_v9 }
 0x2c9   : > { %v2324_v20 = vadd.f32 %v6789_v50, %v2288_v45  ;;  %5444 = vmatmul.msk.bf16.gmra.mxu0 %vm278_vm1, %v2136_v10 }
 0x2cb   : > { %v2356_v8 = vmax.f32 %v2324_v20, 0.0 }
 0x2cd   : > { %v6920_v46 = vadd.f32 %v2356_v8, %v8484_v23  ;;  %v6937_v8 = vpop.f32.mrf.mxu2  ;;  %v2119_v23 = vld [vmem:[#allocation2 + $0x1f1] sm:$0xff] }
 0x2ce   : > { %v2222_v24 = vpop.f32.mrf.mxu0 }
 0x2cf   : > { %8485 = vst [vmem:[#allocation20_spill] sm:$0xff] %v6920_v46  ;;  %v2510_v17 = vld [vmem:[#allocation2 + $0x90] sm:$0xff]  ;;  %v2289_v22 = vadd.f32 %v2222_v24, %v2069_v4 }
 0x2d0   : > { %v2462_v60 = vld [vmem:[#allocation2 + $0x8f] sm:$0xff]  ;;  %2420 = vst.msk [vmem:[#allocation2 + $0xa8] sm:$0xff] %vm278_vm1, %v6920_v46  ;;  %v6924_v15 = vpack.c.bf16 %v2510_v17, %v2509_v2 }
 0x2d1   : > { %v2837_v41 = vld [vmem:[#allocation2 + $0x89] sm:$0xff]  ;;  %v6926_v10 = vpack.c.bf16 %v2462_v60, %v2461_v16  ;;  %v2838_v45 = vld [vmem:[#allocation2 + $0x91] sm:$0xff]  ;;  %v2325_v36 = vadd.f32 %v6789_v50, %v2289_v22  ;;  %v6941_v16 = vpop.f32.mrf.mxu3 }
 0x2d2   : > { %v6928_v20 = vpack.c.bf16 %v2838_v45, %v2837_v41  ;;  %5452 = vmatmul.msk.bf16.gmra.mxu1 %vm278_vm1, %v6924_v15  ;;  %v2118_v4 = vld [vmem:[#allocation2 + $0x1e9] sm:$0xff]  ;;  %v1630_v41 = vadd.f32 %v6626_v55, %v6544_v48 }
 0x2d3   : > { %5468 = vmatmul.msk.bf16.gmra.mxu2 %vm278_vm1, %v6926_v10  ;;  %v2357_v2 = vmax.f32 %v2325_v36, 0.0  ;;  %v2137_v17 = vpack.c.bf16 %v2119_v23, %v2118_v4  ;;  %v8488_v4 = vld [vmem:[#allocation22_spill] sm:$0xff] }
 0x2d4   : > { %5484 = vmatmul.msk.bf16.gmra.mxu3 %vm278_vm1, %v6928_v20  ;;  %v1851_v45 = vadd.f32 %v6636_v28, %v1630_v41 }
 0x2d5   : > { %v6945_v24 = vadd.f32 %v2357_v2, %v8486_v31  ;;  %v6954_v37 = vpop.f32.mrf.mxu2 }
 0x2d6   : > { %v2225_v60 = vpop.f32.mrf.mxu0  ;;  %v2071_v9 = vadd.f32 %v6643_v0, %v1851_v45 }
 0x2d7   : > { %8487 = vst [vmem:[#allocation21_spill] sm:$0xff] %v6945_v24  ;;  %v2290_v22 = vadd.f32 %v2225_v60, %v2070_v25  ;;  %v2511_v2 = vld [vmem:[#allocation2 + $0xa8] sm:$0xff] }
 0x2d8   : > { %2421 = vst.msk [vmem:[#allocation2 + $0xb0] sm:$0xff] %vm278_vm1, %v6945_v24  ;;  %v2463_v48 = vld [vmem:[#allocation2 + $0xa7] sm:$0xff] }
 0x2d9   : > { %v2326_v36 = vadd.f32 %v6789_v50, %v2290_v22  ;;  %5445 = vmatmul.msk.bf16.gmra.mxu0 %vm278_vm1, %v2137_v17  ;;  %v6960_v55 = vpop.f32.mrf.mxu3 }
 0x2db   : > { %v2358_v46 = vmax.f32 %v2326_v36, 0.0 }
 0x2dd   : > { %v6958_v23 = vadd.f32 %v2358_v46, %v8488_v4  ;;  %v1852_v46 = vadd.f32 %v6652_v62, %v6639_v47  ;;  %v1632_v62 = vadd.f32 %v6650_v54, %v6566_v38 }
 0x2de   : > { %v2227_v31 = vpop.f32.mrf.mxu0 }
 0x2df   : > { %8489 = vst [vmem:[#allocation22_spill] sm:$0xff] %v6958_v23  ;;  %v2512_v25 = vld [vmem:[#allocation2 + $0xb0] sm:$0xff]  ;;  %v2291_v17 = vadd.f32 %v2227_v31, %v2071_v9  ;;  %v2072_v4 = vadd.f32 %v6657_v26, %v1852_v46 }
 0x2e0   : > { %v2464_v60 = vld [vmem:[#allocation2 + $0xaf] sm:$0xff]  ;;  %2422 = vst.msk [vmem:[#allocation2 + $0xc8] sm:$0xff] %vm278_vm1, %v6958_v23  ;;  %v2538_v41 = vpack.c.bf16 %v2512_v25, %v2511_v2  ;;  %v6977_v2 = vpop.f32.mrf.mxu1  ;;  %v6982_v25 = vpop.f32.mrf.mxu2 }
 0x2e1   : > { %v2839_v28 = vld [vmem:[#allocation2 + $0xa9] sm:$0xff]  ;;  %v6964_v22 = vpack.c.bf16 %v2464_v60, %v2463_v48  ;;  %v2840_v36 = vld [vmem:[#allocation2 + $0xb1] sm:$0xff]  ;;  %v2327_v45 = vadd.f32 %v6789_v50, %v2291_v17  ;;  %v1853_v17 = vadd.f32 %v6667_v19, %v1632_v62 }
 0x2e2   : > { %v6966_v0 = vpack.c.bf16 %v2840_v36, %v2839_v28  ;;  %5453 = vmatmul.msk.bf16.gmra.mxu1 %vm278_vm1, %v2538_v41  ;;  %v8490_v48 = vld [vmem:[#allocation23_spill] sm:$0xff]  ;;  %v6988_v28 = vpop.f32.mrf.mxu3  ;;  %v8492_v46 = vld [vmem:[#allocation24_spill] sm:$0xff] }
 0x2e3   : > { %5469 = vmatmul.msk.bf16.gmra.mxu2 %vm278_vm1, %v6964_v22  ;;  %v2359_v9 = vmax.f32 %v2327_v45, 0.0  ;;  %v2073_v36 = vadd.f32 %v6671_v7, %v1853_v17 }
 0x2e4   : > { %5485 = vmatmul.msk.bf16.gmra.mxu3 %vm278_vm1, %v6966_v0 }
 0x2e5   : > { %v6980_v31 = vadd.f32 %v2359_v9, %v8490_v48 }
 0x2e6   : > { %v2230_v47 = vpop.f32.mrf.mxu0 }
 0x2e7   : > { %8491 = vst [vmem:[#allocation23_spill] sm:$0xff] %v6980_v31  ;;  %v2292_v60 = vadd.f32 %v2230_v47, %v2072_v4  ;;  %v2513_v38 = vld [vmem:[#allocation2 + $0xc8] sm:$0xff] }
 0x2e8   : > { %2423 = vst.msk [vmem:[#allocation2 + $0xd0] sm:$0xff] %vm278_vm1, %v6980_v31  ;;  %v2465_v54 = vld [vmem:[#allocation2 + $0xc7] sm:$0xff]  ;;  %v2609_v9 = vpop.f32.mrf.mxu1  ;;  %v2749_v23 = vpop.f32.mrf.mxu2 }
 0x2e9   : > { %v2328_v26 = vadd.f32 %v6789_v50, %v2292_v60  ;;  %5446 = vmatmul.msk.bf16.gmra.mxu0 %vm278_vm1, %v6659_v52  ;;  %v2750_v7 = vadd.f32 %v2749_v23, %v2609_v9  ;;  %v2123_v23 = vld [vmem:[#allocation2 + $0x231] sm:$0xff] }
 0x2eb   : > { %v2360_v41 = vmax.f32 %v2328_v26, 0.0  ;;  %v2937_v26 = vpop.f32.mrf.mxu3 }
 0x2ed   : > { %v6996_v45 = vadd.f32 %v2360_v41, %v8492_v46  ;;  %v1854_v41 = vadd.f32 %v6681_v53, %v6665_v21 }
 0x2ee   : > { %v2232_v48 = vpop.f32.mrf.mxu0 }
 0x2ef   : > { %8493 = vst [vmem:[#allocation24_spill] sm:$0xff] %v6996_v45  ;;  %v2514_v4 = vld [vmem:[#allocation2 + $0xd0] sm:$0xff]  ;;  %v2293_v19 = vadd.f32 %v2232_v48, %v2073_v36  ;;  %v1634_v48 = vadd.f32 %v6677_v58, %v6588_v5 }
 0x2f0   : > { %v2466_v47 = vld [vmem:[#allocation2 + $0xcf] sm:$0xff]  ;;  %2424 = vst.msk [vmem:[#allocation2 + $0xe8] sm:$0xff] %vm278_vm1, %v6996_v45  ;;  %v2539_v62 = vpack.c.bf16 %v2514_v4, %v2513_v38  ;;  %v7010_v45 = vadd.f32 %v2937_v26, %v2750_v7  ;;  %v2074_v38 = vadd.f32 %v6683_v12, %v1854_v41 }
 0x2f1   : > { %v2841_v31 = vld [vmem:[#allocation2 + $0xc9] sm:$0xff]  ;;  %v7000_v52 = vpack.c.bf16 %v2466_v47, %v2465_v54  ;;  %v2842_v60 = vld [vmem:[#allocation2 + $0xd1] sm:$0xff]  ;;  %v2329_v46 = vadd.f32 %v6789_v50, %v2293_v19  ;;  %v1855_v47 = vadd.f32 %v6691_v61, %v1634_v48 }
 0x2f2   : > { %v7002_v17 = vpack.c.bf16 %v2842_v60, %v2841_v31  ;;  %5454 = vmatmul.msk.bf16.gmra.mxu1 %vm278_vm1, %v2539_v62  ;;  %v2122_v36 = vld [vmem:[#allocation2 + $0x229] sm:$0xff]  ;;  %v8494_v54 = vld [vmem:[#allocation25_spill] sm:$0xff]  ;;  %v8496_v60 = vld [vmem:[#allocation26_spill] sm:$0xff] }
 0x2f3   : > { %5470 = vmatmul.msk.bf16.gmra.mxu2 %vm278_vm1, %v7000_v52  ;;  %v2361_v31 = vmax.f32 %v2329_v46, 0.0  ;;  %v2139_v21 = vpack.c.bf16 %v2123_v23, %v2122_v36  ;;  %v2075_v12 = vadd.f32 %v6698_v43, %v1855_v47  ;;  %v1856_v43 = vadd.f32 %v6704_v34, %v6689_v49  ;;  %v8500_v34 = vld [vmem:[#allocation49_spill] sm:$0xff] }
 0x2f4   : > { %5486 = vmatmul.msk.bf16.gmra.mxu3 %vm278_vm1, %v7002_v17 }
 0x2f5   : > { %v7016_v9 = vadd.f32 %v2361_v31, %v8494_v54  ;;  %v2076_v48 = vadd.f32 %v6709_v33, %v1856_v43  ;;  %v8501_v33 = vld [vmem:[#allocation40_spill] sm:$0xff] }
 0x2f6   : > { %v2235_v53 = vpop.f32.mrf.mxu0 }
 0x2f7   : > { %8495 = vst [vmem:[#allocation25_spill] sm:$0xff] %v7016_v9  ;;  %v2294_v4 = vadd.f32 %v2235_v53, %v2074_v38  ;;  %v2515_v26 = vld [vmem:[#allocation2 + $0xe8] sm:$0xff] }
 0x2f8   : > { %2425 = vst.msk [vmem:[#allocation2 + $0xf0] sm:$0xff] %vm278_vm1, %v7016_v9  ;;  %v2467_v41 = vld [vmem:[#allocation2 + $0xe7] sm:$0xff] }
 0x2f9   : > { %v2330_v19 = vadd.f32 %v6789_v50, %v2294_v4  ;;  %5447 = vmatmul.msk.bf16.gmra.mxu0 %vm278_vm1, %v2139_v21  ;;  %v8498_v4 = vld [vmem:[#allocation27_spill] sm:$0xff] }
 0x2fb   : > { %v2362_v62 = vmax.f32 %v2330_v19, 0.0 }
 0x2fd   : > { %v7027_v7 = vadd.f32 %v2362_v62, %v8496_v60  ;;  %v1636_v62 = vadd.f32 %v6696_v42, %v6608_v44 }
 0x2fe   : > { %v2237_v46 = vpop.f32.mrf.mxu0 }
 0x2ff   : > { %8497 = vst [vmem:[#allocation26_spill] sm:$0xff] %v7027_v7  ;;  %v2516_v5 = vld [vmem:[#allocation2 + $0xf0] sm:$0xff]  ;;  %v2295_v61 = vadd.f32 %v2237_v46, %v2075_v12  ;;  %v1857_v12 = vadd.f32 %v8500_v34, %v1636_v62 }
 0x300   : > { %v2468_v58 = vld [vmem:[#allocation2 + $0xef] sm:$0xff]  ;;  %2426 = vst.msk [vmem:[#allocation2 + $0x108] sm:$0xff] %vm278_vm1, %v7027_v7  ;;  %v2540_v23 = vpack.c.bf16 %v2516_v5, %v2515_v26 }
 0x301   : > { %v2843_v36 = vld [vmem:[#allocation2 + $0xe9] sm:$0xff]  ;;  %v7031_v31 = vpack.c.bf16 %v2468_v58, %v2467_v41  ;;  %v2844_v38 = vld [vmem:[#allocation2 + $0xf1] sm:$0xff]  ;;  %v2331_v21 = vadd.f32 %v6789_v50, %v2295_v61  ;;  %v2077_v41 = vadd.f32 %v8501_v33, %v1857_v12  ;;  %v7077_v12 = vpop.f32.mrf.mxu1 }
 0x302   : > { %v2868_v54 = vpack.c.bf16 %v2844_v38, %v2843_v36  ;;  %5455 = vmatmul.msk.bf16.gmra.mxu1 %vm278_vm1, %v2540_v23  ;;  %v8502_v46 = vld [vmem:[#allocation28_spill] sm:$0xff] }
 0x303   : > { %5471 = vmatmul.msk.bf16.gmra.mxu2 %vm278_vm1, %v7031_v31  ;;  %v2363_v53 = vmax.f32 %v2331_v21, 0.0 }
 0x304   : > { %5487 = vmatmul.msk.bf16.gmra.mxu3 %vm278_vm1, %v2868_v54 }
 0x305   : > { %v7042_v47 = vadd.f32 %v2363_v53, %v8498_v4  ;;  %v8504_v53 = vld [vmem:[#allocation38_spill] sm:$0xff] }
 0x306   : > { %v2240_v19 = vpop.f32.mrf.mxu0 }
 0x307   : > { %8499 = vst [vmem:[#allocation27_spill] sm:$0xff] %v7042_v47  ;;  %v2296_v49 = vadd.f32 %v2240_v19, %v2076_v48  ;;  %v2517_v58 = vld [vmem:[#allocation2 + $0x108] sm:$0xff]  ;;  %v1858_v48 = vadd.f32 %v6736_v40, %v8504_v53 }
 0x308   : > { %2427 = vst.msk [vmem:[#allocation2 + $0x110] sm:$0xff] %vm278_vm1, %v7042_v47  ;;  %v2469_v36 = vld [vmem:[#allocation2 + $0x107] sm:$0xff] }
 0x309   : > { %v2332_v60 = vadd.f32 %v6789_v50, %v2296_v49  ;;  %5496 = vmatmul.msk.bf16.vlgmr.msrb.gmra.mxu0 %vm278_vm1, %v6830_v56  ;;  %v2078_v62 = vadd.f32 %v6739_v57, %v1858_v48  ;;  %v8505_v49 = vld [vmem:[#allocation29_spill] sm:$0xff] }
 0x30b   : > { %v2364_v26 = vmax.f32 %v2332_v60, 0.0  ;;  %v8507_v60 = vld [vmem:[#allocation36_spill] sm:$0xff] }
 0x30d   : > { %v7054_v5 = vadd.f32 %v2364_v26, %v8502_v46  ;;  %v8508_v26 = vld [vmem:[#allocation39_spill] sm:$0xff] }
 0x30e   : > { %v2242_v44 = vpop.f32.mrf.mxu0  ;;  %v1638_v33 = vadd.f32 %v8508_v26, %v8507_v60  ;;  %v1860_v26 = vadd.f32 %v6769_v29, %v6732_v6 }
 0x30f   : > { %8503 = vst [vmem:[#allocation49_spill] sm:$0xff] %v7054_v5  ;;  %v2518_v42 = vld [vmem:[#allocation2 + $0x110] sm:$0xff]  ;;  %v2297_v38 = vadd.f32 %v2242_v44, %v2077_v41 }
 0x310   : > { %v2470_v61 = vld [vmem:[#allocation2 + $0x10f] sm:$0xff]  ;;  %2428 = vst.msk [vmem:[#allocation2 + $0x128] sm:$0xff] %vm278_vm1, %v7054_v5  ;;  %v7058_v54 = vpack.c.bf16 %v2518_v42, %v2517_v58  ;;  %v1859_v46 = vadd.f32 %v6748_v3, %v1638_v33  ;;  %v7090_v42 = vpop.f32.mrf.mxu3 }
 0x311   : > { %v2845_v23 = vld [vmem:[#allocation2 + $0x109] sm:$0xff]  ;;  %v7060_v43 = vpack.c.bf16 %v2470_v61, %v2469_v36  ;;  %v2846_v56 = vld [vmem:[#allocation2 + $0x111] sm:$0xff]  ;;  %v2333_v4 = vadd.f32 %v6789_v50, %v2297_v38  ;;  %v7087_v36 = vpop.f32.mrf.mxu2  ;;  %v8509_v61 = vld [vmem:[#allocation30_spill] sm:$0xff] }
 0x312   : > { %v7062_v21 = vpack.c.bf16 %v2846_v56, %v2845_v23  ;;  %5456 = vmatmul.msk.bf16.gmra.mxu1 %vm278_vm1, %v7058_v54  ;;  %v2079_v44 = vadd.f32 %v6753_v27, %v1859_v46 }
 0x313   : > { %5472 = vmatmul.msk.bf16.gmra.mxu2 %vm278_vm1, %v7060_v43  ;;  %v2365_v19 = vmax.f32 %v2333_v4, 0.0 }
 0x314   : > { %5488 = vmatmul.msk.bf16.gmra.mxu3 %vm278_vm1, %v7062_v21 }
 0x315   : > { %v7075_v34 = vadd.f32 %v2365_v19, %v8505_v49 }
 0x316   : > { %v2245_v40 = vpop.f32.mrf.mxu0 }
 0x317   : > { %8506 = vst [vmem:[#allocation40_spill] sm:$0xff] %v7075_v34  ;;  %v2298_v41 = vadd.f32 %v2245_v40, %v2078_v62  ;;  %v2519_v38 = vld [vmem:[#allocation2 + $0x128] sm:$0xff] }
 0x318   : > { %2429 = vst.msk [vmem:[#allocation2 + $0x130] sm:$0xff] %vm278_vm1, %v7075_v34  ;;  %v2471_v56 = vld [vmem:[#allocation2 + $0x127] sm:$0xff] }
 0x319   : > { %v2334_v58 = vadd.f32 %v6789_v50, %v2298_v41  ;;  %5497 = vmatmul.msk.bf16.gmra.mxu0 %vm278_vm1, %v6864_v11 }
 0x31b   : > { %v2366_v57 = vmax.f32 %v2334_v58, 0.0  ;;  %v2080_v58 = vadd.f32 %v6774_v1, %v1860_v26 }
 0x31d   : > { %v7093_v23 = vadd.f32 %v2366_v57, %v8509_v61  ;;  %v8511_v57 = vld [vmem:[#allocation31_spill] sm:$0xff] }
 0x31e   : > { %v2247_v53 = vpop.f32.mrf.mxu0 }
 0x31f   : > { %8510 = vst [vmem:[#allocation28_spill] sm:$0xff] %v7093_v23  ;;  %v2614_v48 = vpop.f32.mrf.mxu1  ;;  %v2520_v3 = vld [vmem:[#allocation2 + $0x130] sm:$0xff]  ;;  %v2299_v62 = vadd.f32 %v2247_v53, %v2079_v44  ;;  %v8514_v53 = vld [vmem:[#allocation42_spill] sm:$0xff] }
 0x320   : > { %v2472_v4 = vld [vmem:[#allocation2 + $0x12f] sm:$0xff]  ;;  %2430 = vst.msk [vmem:[#allocation2 + $0x148] sm:$0xff] %vm278_vm1, %v7093_v23  ;;  %v7097_v49 = vpack.c.bf16 %v2520_v3, %v2519_v38 }
 0x321   : > { %v2847_v19 = vld [vmem:[#allocation2 + $0x129] sm:$0xff]  ;;  %v7099_v40 = vpack.c.bf16 %v2472_v4, %v2471_v56  ;;  %v2848_v27 = vld [vmem:[#allocation2 + $0x131] sm:$0xff]  ;;  %v2335_v33 = vadd.f32 %v6789_v50, %v2299_v62 }
 0x322   : > { %v7101_v60 = vpack.c.bf16 %v2848_v27, %v2847_v19  ;;  %5457 = vmatmul.msk.bf16.gmra.mxu1 %vm278_vm1, %v7097_v49  ;;  %v8513_v56 = vld [vmem:[#allocation37_spill] sm:$0xff] }
 0x323   : > { %5473 = vmatmul.msk.bf16.gmra.mxu2 %vm278_vm1, %v7099_v40  ;;  %v2367_v41 = vmax.f32 %v2335_v33, 0.0  ;;  %v1640_v3 = vadd.f32 %v8514_v53, %v8513_v56  ;;  %v8515_v62 = vld [vmem:[#allocation53_spill] sm:$0xff]  ;;  %v8516_v33 = vld [vmem:[#allocation54_spill] sm:$0xff] }
 0x324   : > { %5489 = vmatmul.msk.bf16.gmra.mxu3 %vm278_vm1, %v7101_v60 }
 0x325   : > { %v7114_v44 = vadd.f32 %v2367_v41, %v8511_v57  ;;  %v1861_v27 = vadd.f32 %v8515_v62, %v1640_v3 }
 0x326   : > { %v2754_v46 = vpop.f32.mrf.mxu2  ;;  %v2250_v29 = vpop.f32.mrf.mxu0 }
 0x327   : > { %8512 = vst [vmem:[#allocation38_spill] sm:$0xff] %v7114_v44  ;;  %v2755_v61 = vadd.f32 %v2754_v46, %v2614_v48  ;;  %v2942_v6 = vpop.f32.mrf.mxu3  ;;  %v2616_v38 = vpop.f32.mrf.mxu1  ;;  %v2300_v19 = vadd.f32 %v2250_v29, %v2080_v58  ;;  %v2081_v41 = vadd.f32 %v8516_v33, %v1861_v27  ;;  %v8517_v46 = vld [vmem:[#allocation32_spill] sm:$0xff] }
 0x328   : > { %2431 = vst.msk [vmem:[#allocation2 + $0x150] sm:$0xff] %vm278_vm1, %v7114_v44  ;;  %v2521_v44 = vld [vmem:[#allocation2 + $0x148] sm:$0xff]  ;;  %v8520_v33 = vld [vmem:[#allocation56_spill] sm:$0xff] }
 0x329   : > { %v7120_v4 = vadd.f32 %v2942_v6, %v2755_v61  ;;  %v2336_v1 = vadd.f32 %v6789_v50, %v2300_v19  ;;  %5498 = vmatmul.msk.bf16.gmra.mxu0 %vm278_vm1, %v6894_v30  ;;  %v2473_v61 = vld [vmem:[#allocation2 + $0x147] sm:$0xff] }
 0x32b   : > { %v2368_v48 = vmax.f32 %v2336_v1, 0.0 }
 0x32d   : > { %v7128_v57 = vadd.f32 %v2368_v48, %v8517_v46 }
 0x32e   : > { %v2756_v26 = vpop.f32.mrf.mxu2  ;;  %v2252_v6 = vpop.f32.mrf.mxu0 }
 0x32f   : > { %8518 = vst [vmem:[#allocation29_spill] sm:$0xff] %v7128_v57  ;;  %v2757_v56 = vadd.f32 %v2756_v26, %v2616_v38  ;;  %v2944_v53 = vpop.f32.mrf.mxu3  ;;  %v2619_v58 = vpop.f32.mrf.mxu1  ;;  %v2522_v29 = vld [vmem:[#allocation2 + $0x150] sm:$0xff]  ;;  %v2301_v1 = vadd.f32 %v2252_v6, %v2081_v41  ;;  %v8519_v26 = vld [vmem:[#allocation47_spill] sm:$0xff] }
 0x330   : > { %v2474_v3 = vld [vmem:[#allocation2 + $0x14f] sm:$0xff]  ;;  %2432 = vst.msk [vmem:[#allocation2 + $0x168] sm:$0xff] %vm278_vm1, %v7128_v57  ;;  %v7134_v23 = vpack.c.bf16 %v2522_v29, %v2521_v44  ;;  %v1862_v46 = vadd.f32 %v8520_v33, %v8519_v26  ;;  %v8525_v26 = vld [vmem:[#allocation50_spill] sm:$0xff] }
 0x331   : > { %v2849_v62 = vld [vmem:[#allocation2 + $0x149] sm:$0xff]  ;;  %v7132_v19 = vadd.f32 %v2944_v53, %v2757_v56  ;;  %v7136_v27 = vpack.c.bf16 %v2474_v3, %v2473_v61  ;;  %v2850_v48 = vld [vmem:[#allocation2 + $0x151] sm:$0xff]  ;;  %v2337_v34 = vadd.f32 %v6789_v50, %v2301_v1 }
 0x332   : > { %v7138_v38 = vpack.c.bf16 %v2850_v48, %v2849_v62  ;;  %5458 = vmatmul.msk.bf16.gmra.mxu1 %vm278_vm1, %v7134_v23  ;;  %v8521_v56 = vld [vmem:[#allocation57_spill] sm:$0xff]  ;;  %v8524_v48 = vld [vmem:[#allocation46_spill] sm:$0xff] }
 0x333   : > { %5474 = vmatmul.msk.bf16.gmra.mxu2 %vm278_vm1, %v7136_v27  ;;  %v2369_v44 = vmax.f32 %v2337_v34, 0.0  ;;  %v2082_v53 = vadd.f32 %v8521_v56, %v1862_v46  ;;  %v8522_v61 = vld [vmem:[#allocation33_spill] sm:$0xff]  ;;  %v1642_v33 = vadd.f32 %v8525_v26, %v8524_v48 }
 0x334   : > { %5490 = vmatmul.msk.bf16.gmra.mxu3 %vm278_vm1, %v7138_v38 }
 0x335   : > { %v7151_v6 = vadd.f32 %v2369_v44, %v8522_v61  ;;  %v1863_v34 = vadd.f32 %v6813_v35, %v1642_v33  ;;  %v8527_v61 = vld [vmem:[#allocation34_spill] sm:$0xff] }
 0x336   : > { %v2759_v41 = vpop.f32.mrf.mxu2  ;;  %v2255_v62 = vpop.f32.mrf.mxu0 }
 0x337   : > { %8523 = vst [vmem:[#allocation36_spill] sm:$0xff] %v7151_v6  ;;  %v2760_v29 = vadd.f32 %v2759_v41, %v2619_v58  ;;  %v2947_v3 = vpop.f32.mrf.mxu3  ;;  %v2621_v1 = vpop.f32.mrf.mxu1  ;;  %v2302_v5 = vadd.f32 %v2255_v62, %v2082_v53  ;;  %v8526_v41 = vld [vmem:[#allocation60_spill] sm:$0xff] }
 0x338   : > { %2433 = vst.msk [vmem:[#allocation2 + $0x170] sm:$0xff] %vm278_vm1, %v7151_v6  ;;  %v2083_v56 = vadd.f32 %v8526_v41, %v1863_v34  ;;  %v2523_v6 = vld [vmem:[#allocation2 + $0x168] sm:$0xff] }
 0x339   : > { %v7157_v57 = vadd.f32 %v2947_v3, %v2760_v29  ;;  %v2338_v46 = vadd.f32 %v6789_v50, %v2302_v5  ;;  %5499 = vmatmul.msk.bf16.gmra.mxu0 %vm278_vm1, %v6926_v10  ;;  %v2475_v29 = vld [vmem:[#allocation2 + $0x167] sm:$0xff] }
 0x33b   : > { %v2370_v58 = vmax.f32 %v2338_v46, 0.0 }
 0x33d   : > { %v7165_v47 = vadd.f32 %v2370_v58, %v8527_v61 }
 0x33e   : > { %v2761_v44 = vpop.f32.mrf.mxu2  ;;  %v2257_v3 = vpop.f32.mrf.mxu0 }
 0x33f   : > { %8528 = vst [vmem:[#allocation39_spill] sm:$0xff] %v7165_v47  ;;  %v2762_v48 = vadd.f32 %v2761_v44, %v2621_v1  ;;  %v2949_v26 = vpop.f32.mrf.mxu3  ;;  %v2624_v53 = vpop.f32.mrf.mxu1  ;;  %v2524_v62 = vld [vmem:[#allocation2 + $0x170] sm:$0xff]  ;;  %v2303_v46 = vadd.f32 %v2257_v3, %v2083_v56 }
 0x340   : > { %v2476_v35 = vld [vmem:[#allocation2 + $0x16f] sm:$0xff]  ;;  %2434 = vst.msk [vmem:[#allocation2 + $0x188] sm:$0xff] %vm278_vm1, %v7165_v47  ;;  %v7171_v7 = vpack.c.bf16 %v2524_v62, %v2523_v6 }
 0x341   : > { %v2851_v33 = vld [vmem:[#allocation2 + $0x169] sm:$0xff]  ;;  %v7169_v5 = vadd.f32 %v2949_v26, %v2762_v48  ;;  %v7173_v34 = vpack.c.bf16 %v2476_v35, %v2475_v29  ;;  %v2852_v58 = vld [vmem:[#allocation2 + $0x171] sm:$0xff]  ;;  %v2339_v61 = vadd.f32 %v6789_v50, %v2303_v46 }
 0x342   : > { %v7175_v1 = vpack.c.bf16 %v2852_v58, %v2851_v33  ;;  %v8529_v44 = vld [vmem:[#allocation52_spill] sm:$0xff]  ;;  %5459 = vmatmul.msk.bf16.gmra.mxu1 %vm278_vm1, %v7171_v7  ;;  %v8530_v26 = vld [vmem:[#allocation35_spill] sm:$0xff] }
 0x343   : > { %v1864_v41 = vadd.f32 %v6832_v18, %v8529_v44  ;;  %5475 = vmatmul.msk.bf16.gmra.mxu2 %vm278_vm1, %v7173_v34  ;;  %v2371_v6 = vmax.f32 %v2339_v61, 0.0  ;;  %v8532_v33 = vld [vmem:[#allocation48_spill] sm:$0xff]  ;;  %v8533_v46 = vld [vmem:[#allocation55_spill] sm:$0xff] }
 0x344   : > { %5491 = vmatmul.msk.bf16.gmra.mxu3 %vm278_vm1, %v7175_v1  ;;  %v1644_v58 = vadd.f32 %v8533_v46, %v8532_v33 }
 0x345   : > { %v2084_v48 = vadd.f32 %v6841_v51, %v1864_v41  ;;  %v7188_v29 = vadd.f32 %v2371_v6, %v8530_v26  ;;  %v8534_v6 = vld [vmem:[#allocation63_spill] sm:$0xff]  ;;  %v8535_v26 = vld [vmem:[#allocation6_spill] sm:$0xff] }
 0x346   : > { %v2764_v56 = vpop.f32.mrf.mxu2  ;;  %v2260_v62 = vpop.f32.mrf.mxu0  ;;  %v1865_v61 = vadd.f32 %v6854_v59, %v1644_v58 }
 0x347   : > { %8531 = vst [vmem:[#allocation30_spill] sm:$0xff] %v7188_v29  ;;  %v2765_v3 = vadd.f32 %v2764_v56, %v2624_v53  ;;  %v2952_v18 = vpop.f32.mrf.mxu3  ;;  %v2626_v35 = vpop.f32.mrf.mxu1  ;;  %v2304_v47 = vadd.f32 %v2260_v62, %v2084_v48 }
 0x348   : > { %2435 = vst.msk [vmem:[#allocation2 + $0x190] sm:$0xff] %vm278_vm1, %v7188_v29  ;;  %v2085_v56 = vadd.f32 %v8534_v6, %v1865_v61  ;;  %v2525_v29 = vld [vmem:[#allocation2 + $0x188] sm:$0xff] }
 0x349   : > { %v7194_v44 = vadd.f32 %v2952_v18, %v2765_v3  ;;  %v2340_v51 = vadd.f32 %v6789_v50, %v2304_v47  ;;  %5500 = vmatmul.msk.bf16.gmra.mxu0 %vm278_vm1, %v6964_v22  ;;  %v2477_v3 = vld [vmem:[#allocation2 + $0x187] sm:$0xff] }
 0x34b   : > { %v2372_v53 = vmax.f32 %v2340_v51, 0.0 }
 0x34d   : > { %v7202_v9 = vadd.f32 %v2372_v53, %v8535_v26 }
 0x34e   : > { %v2766_v41 = vpop.f32.mrf.mxu2  ;;  %v2262_v18 = vpop.f32.mrf.mxu0 }
 0x34f   : > { %8536 = vst [vmem:[#allocation31_spill] sm:$0xff] %v7202_v9  ;;  %v2767_v33 = vadd.f32 %v2766_v41, %v2626_v35  ;;  %v2954_v46 = vpop.f32.mrf.mxu3  ;;  %v2629_v48 = vpop.f32.mrf.mxu1  ;;  %v2526_v62 = vld [vmem:[#allocation2 + $0x190] sm:$0xff]  ;;  %v2305_v51 = vadd.f32 %v2262_v18, %v2085_v56  ;;  %v8539_v41 = vld [vmem:[#allocation58_spill] sm:$0xff] }
 0x350   : > { %v2478_v59 = vld [vmem:[#allocation2 + $0x18f] sm:$0xff]  ;;  %2436 = vst.msk [vmem:[#allocation2 + $0x1a8] sm:$0xff] %vm278_vm1, %v7202_v9  ;;  %v7208_v24 = vpack.c.bf16 %v2526_v62, %v2525_v29  ;;  %v1866_v6 = vadd.f32 %v6874_v39, %v8539_v41 }
 0x351   : > { %v2853_v58 = vld [vmem:[#allocation2 + $0x189] sm:$0xff]  ;;  %v7206_v47 = vadd.f32 %v2954_v46, %v2767_v33  ;;  %v7210_v61 = vpack.c.bf16 %v2478_v59, %v2477_v3  ;;  %v2854_v53 = vld [vmem:[#allocation2 + $0x191] sm:$0xff]  ;;  %v2341_v26 = vadd.f32 %v6789_v50, %v2305_v51 }
 0x352   : > { %8537 = vst [vmem:[#allocation37_spill] sm:$0xff] %v7208_v24  ;;  %v7212_v35 = vpack.c.bf16 %v2854_v53, %v2853_v58  ;;  %5460 = vmatmul.msk.bf16.gmra.mxu1 %vm278_vm1, %v7208_v24  ;;  %v8540_v33 = vld [vmem:[#allocation65_spill] sm:$0xff]  ;;  %v8541_v3 = vld [vmem:[#allocation7_spill] sm:$0xff] }
 0x353   : > { %5476 = vmatmul.msk.bf16.gmra.mxu2 %vm278_vm1, %v7210_v61  ;;  %v2373_v29 = vmax.f32 %v2341_v26, 0.0  ;;  %v2086_v46 = vadd.f32 %v8540_v33, %v1866_v6  ;;  %v8543_v51 = vld [vmem:[#allocation41_spill] sm:$0xff]  ;;  %v8544_v53 = vld [vmem:[#allocation59_spill] sm:$0xff]  ;;  %v8545_v26 = vld [vmem:[#allocation66_spill] sm:$0xff] }
 0x354   : > { %8538 = vst [vmem:[#allocation42_spill] sm:$0xff] %v7212_v35  ;;  %5492 = vmatmul.msk.bf16.gmra.mxu3 %vm278_vm1, %v7212_v35  ;;  %v1646_v41 = vadd.f32 %v8544_v53, %v8543_v51  ;;  %v8546_v33 = vld [vmem:[#allocation8_spill] sm:$0xff] }
 0x355   : > { %v7225_v18 = vadd.f32 %v2373_v29, %v8541_v3 }
 0x356   : > { %v2769_v56 = vpop.f32.mrf.mxu2  ;;  %v2265_v59 = vpop.f32.mrf.mxu0  ;;  %v1867_v35 = vadd.f32 %v8545_v26, %v1646_v41 }
 0x357   : > { %8542 = vst [vmem:[#allocation53_spill] sm:$0xff] %v7225_v18  ;;  %v2770_v62 = vadd.f32 %v2769_v56, %v2629_v48  ;;  %v2957_v39 = vpop.f32.mrf.mxu3  ;;  %v2631_v58 = vpop.f32.mrf.mxu1  ;;  %v2306_v63 = vadd.f32 %v2265_v59, %v2086_v46 }
 0x358   : > { %2437 = vst.msk [vmem:[#allocation2 + $0x1b0] sm:$0xff] %vm278_vm1, %v7225_v18  ;;  %v2087_v56 = vadd.f32 %v6896_v13, %v1867_v35  ;;  %v2527_v18 = vld [vmem:[#allocation2 + $0x1a8] sm:$0xff] }
 0x359   : > { %v7231_v9 = vadd.f32 %v2957_v39, %v2770_v62  ;;  %v2342_v6 = vadd.f32 %v6789_v50, %v2306_v63  ;;  %5501 = vmatmul.msk.bf16.gmra.mxu0 %vm278_vm1, %v7000_v52  ;;  %v2479_v62 = vld [vmem:[#allocation2 + $0x1a7] sm:$0xff] }
 0x35b   : > { %v2374_v48 = vmax.f32 %v2342_v6, 0.0 }
 0x35d   : > { %v7239_v3 = vadd.f32 %v2374_v48, %v8546_v33  ;;  %v8549_v48 = vld [vmem:[#allocation61_spill] sm:$0xff] }
 0x35e   : > { %v2771_v29 = vpop.f32.mrf.mxu2  ;;  %v2267_v39 = vpop.f32.mrf.mxu0 }
 0x35f   : > { %8547 = vst [vmem:[#allocation54_spill] sm:$0xff] %v7239_v3  ;;  %v2772_v51 = vadd.f32 %v2771_v29, %v2631_v58  ;;  %v2959_v53 = vpop.f32.mrf.mxu3  ;;  %v2634_v46 = vpop.f32.mrf.mxu1  ;;  %v2528_v59 = vld [vmem:[#allocation2 + $0x1b0] sm:$0xff]  ;;  %v2307_v6 = vadd.f32 %v2267_v39, %v2087_v56  ;;  %v1868_v29 = vadd.f32 %v6911_v14, %v8549_v48 }
 0x360   : > { %v2480_v41 = vld [vmem:[#allocation2 + $0x1af] sm:$0xff]  ;;  %2438 = vst.msk [vmem:[#allocation2 + $0x1c8] sm:$0xff] %vm278_vm1, %v7239_v3  ;;  %v7245_v24 = vpack.c.bf16 %v2528_v59, %v2527_v18 }
 0x361   : > { %v2855_v26 = vld [vmem:[#allocation2 + $0x1a9] sm:$0xff]  ;;  %v7243_v63 = vadd.f32 %v2959_v53, %v2772_v51  ;;  %v7247_v13 = vpack.c.bf16 %v2480_v41, %v2479_v62  ;;  %v2856_v35 = vld [vmem:[#allocation2 + $0x1b1] sm:$0xff]  ;;  %v2343_v33 = vadd.f32 %v6789_v50, %v2307_v6  ;;  %v2088_v51 = vadd.f32 %v6916_v32, %v1868_v29  ;;  %v8553_v6 = vld [vmem:[#allocation62_spill] sm:$0xff] }
 0x362   : > { %v7249_v58 = vpack.c.bf16 %v2856_v35, %v2855_v26  ;;  %5461 = vmatmul.msk.bf16.gmra.mxu1 %vm278_vm1, %v7245_v24  ;;  %v8550_v53 = vld [vmem:[#allocation9_spill] sm:$0xff]  ;;  %v8552_v26 = vld [vmem:[#allocation43_spill] sm:$0xff] }
 0x363   : > { %5477 = vmatmul.msk.bf16.gmra.mxu2 %vm278_vm1, %v7247_v13  ;;  %v2375_v18 = vmax.f32 %v2343_v33, 0.0  ;;  %v1648_v35 = vadd.f32 %v8553_v6, %v8552_v26  ;;  %v2449_v32 = vld [vmem:[%s8290_s3 + $0xa] sm:$0x3] }
 0x364   : > { %8548 = vst [vmem:[#allocation32_spill] sm:$0xff] %v7249_v58  ;;  %5493 = vmatmul.msk.bf16.gmra.mxu3 %vm278_vm1, %v7249_v58  ;;  %v3586_v29 = vsel %vm538_vm0, %v2449_v32, 0 }
 0x365   : > { %v7262_v62 = vadd.f32 %v2375_v18, %v8550_v53  ;;  %v1869_v18 = vadd.f32 %v6937_v8, %v1648_v35  ;;  %3595 = vmatpush.bf16.msra.mxu2 %v3586_v29 }
 0x366   : > { %v2774_v56 = vpop.f32.mrf.mxu2  ;;  %v2270_v59 = vpop.f32.mrf.mxu0 }
 0x367   : > { %8551 = vst [vmem:[#allocation47_spill] sm:$0xff] %v7262_v62  ;;  %v2775_v39 = vadd.f32 %v2774_v56, %v2634_v46  ;;  %v2962_v14 = vpop.f32.mrf.mxu3  ;;  %v2636_v41 = vpop.f32.mrf.mxu1  ;;  %v2308_v3 = vadd.f32 %v2270_v59, %v2088_v51  ;;  %v2450_v46 = vld [vmem:[%s8290_s3 + $0xc] sm:$0x3] }
 0x368   : > { %2439 = vst.msk [vmem:[#allocation2 + $0x1d0] sm:$0xff] %vm278_vm1, %v7262_v62  ;;  %v3806_v33 = vsel %vm538_vm0, %v2450_v46, 0  ;;  %v2529_v32 = vld [vmem:[#allocation2 + $0x1c8] sm:$0xff] }
 0x369   : > { %v7268_v48 = vadd.f32 %v2962_v14, %v2775_v39  ;;  %v2344_v56 = vadd.f32 %v6789_v50, %v2308_v3  ;;  %5502 = vmatmul.msk.bf16.gmra.mxu0 %vm278_vm1, %v7031_v31  ;;  %3815 = vmatpush.bf16.msra.mxu3 %v3806_v33  ;;  %v2089_v39 = vadd.f32 %v6941_v16, %v1869_v18  ;;  %v8554_v14 = vld [vmem:[#allocation10_spill] sm:$0xff] }
 0x36a   : > { %v2481_v46 = vld [vmem:[#allocation2 + $0x1c7] sm:$0xff] }
 0x36b   : > { %v2376_v51 = vmax.f32 %v2344_v56, 0.0 }
 0x36d   : > { %v7284_v59 = vadd.f32 %v2376_v51, %v8554_v14  ;;  %v8558_v14 = vld [vmem:[#allocation64_spill] sm:$0xff] }
 0x36e   : > { %v2776_v53 = vpop.f32.mrf.mxu2  ;;  %v2272_v62 = vpop.f32.mrf.mxu0  ;;  %v1870_v58 = vadd.f32 %v6954_v37, %v8558_v14  ;;  %v8561_v14 = vld [vmem:[#allocation51_spill] sm:$0xff] }
 0x36f   : > { %8555 = vst [vmem:[#allocation56_spill] sm:$0xff] %v7284_v59  ;;  %v2777_v26 = vadd.f32 %v2776_v53, %v2636_v41  ;;  %v2964_v6 = vpop.f32.mrf.mxu3  ;;  %v2639_v8 = vpop.f32.mrf.mxu1  ;;  %v2530_v35 = vld [vmem:[#allocation2 + $0x1d0] sm:$0xff]  ;;  %v2309_v33 = vadd.f32 %v2272_v62, %v2089_v39  ;;  %v2451_v41 = vld [vmem:[%s8290_s3 + $0xe] sm:$0x3]  ;;  %v5683_v62 = vld [vmem:[%s8289_s2] ss:$0 sm:$0xff] }
 0x370   : > { %v2482_v50 = vld [vmem:[#allocation2 + $0x1cf] sm:$0xff]  ;;  %2440 = vst.msk [vmem:[#allocation2 + $0x1e8] sm:$0xff] %vm278_vm1, %v7284_v59  ;;  %v7290_v56 = vpack.c.bf16 %v2530_v35, %v2529_v32  ;;  %v4026_v53 = vsel %vm538_vm0, %v2451_v41, 0 }
 0x371   : > { %v2857_v3 = vld [vmem:[#allocation2 + $0x1c9] sm:$0xff]  ;;  %v7288_v29 = vadd.f32 %v2964_v6, %v2777_v26  ;;  %v7292_v16 = vpack.c.bf16 %v2482_v50, %v2481_v46  ;;  %v2858_v18 = vld [vmem:[#allocation2 + $0x1d1] sm:$0xff]  ;;  %v2345_v39 = vadd.f32 %v5683_v62, %v2309_v33  ;;  %4035 = vmatpush.bf16.msra.mxu0 %v4026_v53  ;;  %v2090_v46 = vadd.f32 %v6960_v55, %v1870_v58 }
 0x372   : > { %8556 = vst [vmem:[#allocation57_spill] sm:$0xff] %v7290_v56  ;;  %v7297_v51 = vpack.c.bf16 %v2858_v18, %v2857_v3  ;;  %5462 = vmatmul.msk.bf16.gmra.mxu1 %vm278_vm1, %v7290_v56  ;;  %v2452_v26 = vld [vmem:[%s8290_s3 + $0x10] sm:$0x3]  ;;  %v8559_v35 = vld [vmem:[#allocation11_spill] sm:$0xff]  ;;  %v1650_v53 = vadd.f32 %v6977_v2, %v8561_v14 }
 0x373   : > { %5478 = vmatmul.msk.bf16.gmra.mxu2 %vm278_vm1, %v7292_v16  ;;  %v2377_v37 = vmax.f32 %v2345_v39, 0.0  ;;  %v4246_v6 = vsel %vm538_vm0, %v2452_v26, 0 }
 0x374   : > { %8557 = vst [vmem:[#allocation33_spill] sm:$0xff] %v7297_v51  ;;  %5494 = vmatmul.msk.bf16.gmra.mxu3 %vm278_vm1, %v7297_v51  ;;  %4255 = vmatpush.bf16.msrb.mxu1 %v4246_v6  ;;  %v1871_v6 = vadd.f32 %v6982_v25, %v1650_v53 }
 0x375   : > { %v7317_v50 = vadd.f32 %v2377_v37, %v8559_v35  ;;  %v8562_v37 = vld [vmem:[#allocation44_spill] sm:$0xff] }
 0x376   : > { %v2779_v32 = vpop.f32.mrf.mxu2  ;;  %v2275_v18 = vpop.f32.mrf.mxu0 }
 0x377   : > { %8560 = vst [vmem:[#allocation46_spill] sm:$0xff] %v7317_v50  ;;  %v2780_v3 = vadd.f32 %v2779_v32, %v2639_v8  ;;  %v2967_v33 = vpop.f32.mrf.mxu3  ;;  %v2641_v41 = vpop.f32.mrf.mxu1  ;;  %v2310_v26 = vadd.f32 %v2275_v18, %v2090_v46  ;;  %v2091_v8 = vadd.f32 %v6988_v28, %v1871_v6  ;;  %v2531_v14 = vld [vmem:[#allocation2 + $0x1e8] sm:$0xff] }
 0x378   : > { %2441 = vst.msk [vmem:[#allocation2 + $0x1f0] sm:$0xff] %vm278_vm1, %v7317_v50  ;;  %v2483_v50 = vld [vmem:[#allocation2 + $0x1e7] sm:$0xff] }
 0x379   : > { %v7323_v39 = vadd.f32 %v2967_v33, %v2780_v3  ;;  %v2346_v59 = vadd.f32 %v5683_v62, %v2310_v26  ;;  %5503 = vmatmul.msk.bf16.gmra.mxu0 %vm278_vm1, %v7060_v43 }
 0x37b   : > { %v2378_v55 = vmax.f32 %v2346_v59, 0.0 }
 0x37d   : > { %v7330_v32 = vadd.f32 %v2378_v55, %v8562_v37 }
 0x37e   : > { %v2781_v58 = vpop.f32.mrf.mxu2  ;;  %v2277_v3 = vpop.f32.mrf.mxu0 }
 0x37f   : > { %8563 = vst [vmem:[#allocation50_spill] sm:$0xff] %v7330_v32  ;;  %v2782_v2 = vadd.f32 %v2781_v58, %v2641_v41  ;;  %v2969_v35 = vpop.f32.mrf.mxu3  ;;  %v2644_v33 = vpop.f32.mrf.mxu1  ;;  %v2532_v46 = vld [vmem:[#allocation2 + $0x1f0] sm:$0xff]  ;;  %v2311_v59 = vadd.f32 %v2277_v3, %v2091_v8  ;;  %v8566_v8 = vld [vmem:[#allocation45_spill] sm:$0xff] }
 0x380   : > { %v2484_v18 = vld [vmem:[#allocation2 + $0x1ef] sm:$0xff]  ;;  %2442 = vst.msk [vmem:[#allocation2 + $0x208] sm:$0xff] %vm278_vm1, %v7330_v32  ;;  %v7336_v26 = vpack.c.bf16 %v2532_v46, %v2531_v14 }
 0x381   : > { %v2859_v25 = vld [vmem:[#allocation2 + $0x1e9] sm:$0xff]  ;;  %v7334_v53 = vadd.f32 %v2969_v35, %v2782_v2  ;;  %v7338_v28 = vpack.c.bf16 %v2484_v18, %v2483_v50  ;;  %v2860_v6 = vld [vmem:[#allocation2 + $0x1f1] sm:$0xff]  ;;  %v2347_v55 = vadd.f32 %v5683_v62, %v2311_v59 }
 0x382   : > { %8564 = vst [vmem:[#allocation60_spill] sm:$0xff] %v7336_v26  ;;  %v7340_v41 = vpack.c.bf16 %v2860_v6, %v2859_v25  ;;  %5463 = vmatmul.msk.bf16.gmra.mxu1 %vm278_vm1, %v7336_v26  ;;  %v3270_v25 = vld [vmem:[#allocation2 + $0x30] sm:$0xff] }
 0x383   : > { %5479 = vmatmul.msk.bf16.gmra.mxu2 %vm278_vm1, %v7338_v28  ;;  %v2379_v58 = vmax.f32 %v2347_v55, 0.0  ;;  %v3489_v59 = vld [vmem:[#allocation2 + $0x29] sm:$0xff]  ;;  %v3490_v6 = vld [vmem:[#allocation2 + $0x31] sm:$0xff] }
 0x384   : > { %8565 = vst [vmem:[#allocation34_spill] sm:$0xff] %v7340_v41  ;;  %5495 = vmatmul.msk.bf16.gmra.mxu3 %vm278_vm1, %v7340_v41 }
 0x385   : > { %v7349_v2 = vadd.f32 %v2379_v58, %v8566_v8  ;;  %v3269_v8 = vld [vmem:[#allocation2 + $0x28] sm:$0xff] }
 0x386   : > { %v2784_v37 = vpop.f32.mrf.mxu2  ;;  %v3157_v3 = vpop.f32.mrf.mxu0 }
 0x387   : > { %8567 = vst [vmem:[#allocation52_spill] sm:$0xff] %v7349_v2  ;;  %v2785_v50 = vadd.f32 %v2784_v37, %v2644_v33  ;;  %v2972_v35 = vpop.f32.mrf.mxu3  ;;  %v2646_v14 = vpop.f32.mrf.mxu1  ;;  %v7356_v46 = vadd.f32 %v3157_v3, %v7010_v45 }
 0x388   : > { %2443 = vst.msk [vmem:[#allocation2 + $0x210] sm:$0xff] %vm278_vm1, %v7349_v2 }
 0x389   : > { %v7353_v62 = vadd.f32 %v2972_v35, %v2785_v50  ;;  %5504 = vmatmul.msk.bf16.gmra.mxu0 %vm278_vm1, %v7099_v40  ;;  %v3301_v50 = vpack.c.bf16 %v3270_v25, %v3269_v8  ;;  %v3521_v35 = vpack.c.bf16 %v3490_v6, %v3489_v59  ;;  %v3272_v59 = vld [vmem:[#allocation2 + $0x50] sm:$0xff] }
 0x38a   : > { %v3491_v6 = vld [vmem:[#allocation2 + $0x49] sm:$0xff] }
 0x38e   : > { %v2786_v18 = vpop.f32.mrf.mxu2  ;;  %v7360_v37 = vpop.f32.mrf.mxu0 }
 0x38f   : > { %v2787_v55 = vadd.f32 %v2786_v18, %v2646_v14  ;;  %v2974_v33 = vpop.f32.mrf.mxu3  ;;  %v2649_v58 = vpop.f32.mrf.mxu1 }
 0x391   : > { %v7362_v32 = vadd.f32 %v2974_v33, %v2787_v55  ;;  %v3492_v55 = vld [vmem:[#allocation2 + $0x51] sm:$0xff] }
 0x392   : > { %5512 = vmatmul.msk.bf16.vlgmr.msra.gmra.mxu1 %vm278_vm1, %v3301_v50 }
 0x393   : > { %5528 = vmatmul.msk.bf16.vlgmr.msra.gmra.mxu2 %vm278_vm1, %v3521_v35 }
 0x394   : > { %5544 = vmatmul.msk.bf16.vlgmr.msra.gmra.mxu3 %vm278_vm1, %v6864_v11 }
 0x396   : > { %v2789_v45 = vpop.f32.mrf.mxu2  ;;  %v3162_v18 = vpop.f32.mrf.mxu0 }
 0x397   : > { %v2790_v3 = vadd.f32 %v2789_v45, %v2649_v58  ;;  %v2977_v2 = vpop.f32.mrf.mxu3  ;;  %v2651_v14 = vpop.f32.mrf.mxu1  ;;  %v7371_v26 = vadd.f32 %v3162_v18, %v7120_v4  ;;  %v3271_v58 = vld [vmem:[#allocation2 + $0x48] sm:$0xff]  ;;  %v7382_v4 = vpack.c.bf16 %v3492_v55, %v3491_v6  ;;  %v3274_v55 = vld [vmem:[#allocation2 + $0x70] sm:$0xff] }
 0x398   : > { %v7380_v45 = vpack.c.bf16 %v3272_v59, %v3271_v58 }
 0x399   : > { %v7368_v41 = vadd.f32 %v2977_v2, %v2790_v3  ;;  %5505 = vmatmul.msk.bf16.gmra.mxu0 %vm278_vm1, %v7136_v27  ;;  %8568 = vst [vmem:[#allocation35_spill] sm:$0xff] %v7382_v4 }
 0x39e   : > { %v2791_v25 = vpop.f32.mrf.mxu2  ;;  %v3164_v50 = vpop.f32.mrf.mxu0 }
 0x39f   : > { %v2792_v33 = vadd.f32 %v2791_v25, %v2651_v14  ;;  %v2979_v8 = vpop.f32.mrf.mxu3  ;;  %v2654_v11 = vpop.f32.mrf.mxu1  ;;  %v7378_v2 = vadd.f32 %v3164_v50, %v7132_v19  ;;  %v3494_v50 = vld [vmem:[#allocation2 + $0x71] sm:$0xff] }
 0x3a1   : > { %v7375_v35 = vadd.f32 %v2979_v8, %v2792_v33  ;;  %v3493_v8 = vld [vmem:[#allocation2 + $0x69] sm:$0xff] }
 0x3a2   : > { %5513 = vmatmul.msk.bf16.gmra.mxu1 %vm278_vm1, %v7380_v45 }
 0x3a3   : > { %5529 = vmatmul.msk.bf16.gmra.mxu2 %vm278_vm1, %v7382_v4 }
 0x3a4   : > { %5545 = vmatmul.msk.bf16.gmra.mxu3 %vm278_vm1, %v6894_v30 }
 0x3a6   : > { %v2794_v3 = vpop.f32.mrf.mxu2  ;;  %v3167_v33 = vpop.f32.mrf.mxu0 }
 0x3a7   : > { %v2795_v14 = vadd.f32 %v2794_v3, %v2654_v11  ;;  %v2982_v18 = vpop.f32.mrf.mxu3  ;;  %v2656_v25 = vpop.f32.mrf.mxu1  ;;  %v7393_v59 = vadd.f32 %v3167_v33, %v7157_v57  ;;  %v3273_v11 = vld [vmem:[#allocation2 + $0x68] sm:$0xff]  ;;  %v7404_v57 = vpack.c.bf16 %v3494_v50, %v3493_v8 }
 0x3a9   : > { %v7390_v19 = vadd.f32 %v2982_v18, %v2795_v14  ;;  %5506 = vmatmul.msk.bf16.gmra.mxu0 %vm278_vm1, %v7173_v34  ;;  %v7402_v18 = vpack.c.bf16 %v3274_v55, %v3273_v11  ;;  %8569 = vst [vmem:[#allocation48_spill] sm:$0xff] %v7404_v57 }
 0x3ae   : > { %v2796_v6 = vpop.f32.mrf.mxu2  ;;  %v3169_v51 = vpop.f32.mrf.mxu0 }
 0x3af   : > { %v2797_v58 = vadd.f32 %v2796_v6, %v2656_v25  ;;  %v2984_v4 = vpop.f32.mrf.mxu3  ;;  %v2659_v30 = vpop.f32.mrf.mxu1  ;;  %v7400_v14 = vadd.f32 %v3169_v51, %v7169_v5 }
 0x3b1   : > { %v7397_v3 = vadd.f32 %v2984_v4, %v2797_v58 }
 0x3b2   : > { %5514 = vmatmul.msk.bf16.gmra.mxu1 %vm278_vm1, %v7402_v18 }
 0x3b3   : > { %5530 = vmatmul.msk.bf16.gmra.mxu2 %vm278_vm1, %v7404_v57 }
 0x3b4   : > { %5546 = vmatmul.msk.bf16.gmra.mxu3 %vm278_vm1, %v6926_v10 }
 0x3b6   : > { %v2799_v25 = vpop.f32.mrf.mxu2  ;;  %v3172_v58 = vpop.f32.mrf.mxu0 }
 0x3b7   : > { %v2800_v33 = vadd.f32 %v2799_v25, %v2659_v30  ;;  %v2987_v4 = vpop.f32.mrf.mxu3  ;;  %v2661_v6 = vpop.f32.mrf.mxu1  ;;  %v7415_v51 = vadd.f32 %v3172_v58, %v7194_v44 }
 0x3b9   : > { %v7412_v5 = vadd.f32 %v2987_v4, %v2800_v33  ;;  %5507 = vmatmul.msk.bf16.gmra.mxu0 %vm278_vm1, %v7210_v61 }
 0x3be   : > { %v2801_v55 = vpop.f32.mrf.mxu2  ;;  %v3174_v57 = vpop.f32.mrf.mxu0 }
 0x3bf   : > { %v2802_v8 = vadd.f32 %v2801_v55, %v2661_v6  ;;  %v2989_v50 = vpop.f32.mrf.mxu3  ;;  %v2664_v11 = vpop.f32.mrf.mxu1  ;;  %v7422_v10 = vadd.f32 %v3174_v57, %v7206_v47  ;;  %v3278_v47 = vld [vmem:[#allocation2 + $0xb0] sm:$0xff] }
 0x3c1   : > { %v7419_v56 = vadd.f32 %v2989_v50, %v2802_v8 }
 0x3c2   : > { %5515 = vmatmul.msk.bf16.gmra.mxu1 %vm278_vm1, %v6924_v15 }
 0x3c3   : > { %5531 = vmatmul.msk.bf16.gmra.mxu2 %vm278_vm1, %v6928_v20 }
 0x3c4   : > { %5547 = vmatmul.msk.bf16.gmra.mxu3 %vm278_vm1, %v6964_v22  ;;  %v3277_v22 = vld [vmem:[#allocation2 + $0xa8] sm:$0xff] }
 0x3c6   : > { %v2804_v44 = vpop.f32.mrf.mxu2  ;;  %v3177_v4 = vpop.f32.mrf.mxu0 }
 0x3c7   : > { %v2805_v30 = vadd.f32 %v2804_v44, %v2664_v11  ;;  %v2992_v25 = vpop.f32.mrf.mxu3  ;;  %v2666_v33 = vpop.f32.mrf.mxu1  ;;  %v7433_v58 = vadd.f32 %v3177_v4, %v7231_v9  ;;  %v7442_v44 = vpack.c.bf16 %v3278_v47, %v3277_v22 }
 0x3c9   : > { %v7430_v6 = vadd.f32 %v2992_v25, %v2805_v30  ;;  %5508 = vmatmul.msk.bf16.gmra.mxu0 %vm278_vm1, %v7247_v13 }
 0x3ce   : > { %v2806_v15 = vpop.f32.mrf.mxu2  ;;  %v3179_v8 = vpop.f32.mrf.mxu0 }
 0x3cf   : > { %v2807_v57 = vadd.f32 %v2806_v15, %v2666_v33  ;;  %v2994_v20 = vpop.f32.mrf.mxu3  ;;  %v2669_v55 = vpop.f32.mrf.mxu1  ;;  %v7440_v11 = vadd.f32 %v3179_v8, %v7243_v63 }
 0x3d1   : > { %v7437_v50 = vadd.f32 %v2994_v20, %v2807_v57  ;;  %8570 = vst [vmem:[#allocation55_spill] sm:$0xff] %v7440_v11  ;;  %v3280_v57 = vld [vmem:[#allocation2 + $0xd0] sm:$0xff] }
 0x3d2   : > { %5516 = vmatmul.msk.bf16.gmra.mxu1 %vm278_vm1, %v7442_v44 }
 0x3d3   : > { %5532 = vmatmul.msk.bf16.gmra.mxu2 %vm278_vm1, %v6966_v0 }
 0x3d4   : > { %5548 = vmatmul.msk.bf16.gmra.mxu3 %vm278_vm1, %v7000_v52  ;;  %v3279_v52 = vld [vmem:[#allocation2 + $0xc8] sm:$0xff] }
 0x3d6   : > { %v2809_v9 = vpop.f32.mrf.mxu2  ;;  %v3182_v4 = vpop.f32.mrf.mxu0 }
 0x3d7   : > { %v2810_v30 = vadd.f32 %v2809_v9, %v2669_v55  ;;  %v2997_v25 = vpop.f32.mrf.mxu3  ;;  %v2671_v33 = vpop.f32.mrf.mxu1  ;;  %v7453_v63 = vadd.f32 %v3182_v4, %v7268_v48  ;;  %v7462_v9 = vpack.c.bf16 %v3280_v57, %v3279_v52 }
 0x3d9   : > { %v7450_v15 = vadd.f32 %v2997_v25, %v2810_v30  ;;  %5509 = vmatmul.msk.bf16.gmra.mxu0 %vm278_vm1, %v7292_v16 }
 0x3de   : > { %v2811_v47 = vpop.f32.mrf.mxu2  ;;  %v3184_v22 = vpop.f32.mrf.mxu0 }
 0x3df   : > { %v2812_v20 = vadd.f32 %v2811_v47, %v2671_v33  ;;  %v2999_v0 = vpop.f32.mrf.mxu3  ;;  %v2674_v8 = vpop.f32.mrf.mxu1  ;;  %v7460_v55 = vadd.f32 %v3184_v22, %v7288_v29 }
 0x3e1   : > { %v7457_v11 = vadd.f32 %v2999_v0, %v2812_v20  ;;  %8571 = vst [vmem:[#allocation63_spill] sm:$0xff] %v7460_v55  ;;  %v3282_v20 = vld [vmem:[#allocation2 + $0xf0] sm:$0xff] }
 0x3e2   : > { %5517 = vmatmul.msk.bf16.gmra.mxu1 %vm278_vm1, %v7462_v9  ;;  %v3501_v0 = vld [vmem:[#allocation2 + $0xe9] sm:$0xff] }
 0x3e3   : > { %5533 = vmatmul.msk.bf16.gmra.mxu2 %vm278_vm1, %v7002_v17  ;;  %v3502_v17 = vld [vmem:[#allocation2 + $0xf1] sm:$0xff] }
 0x3e4   : > { %5549 = vmatmul.msk.bf16.gmra.mxu3 %vm278_vm1, %v7031_v31 }
 0x3e6   : > { %v2814_v48 = vpop.f32.mrf.mxu2  ;;  %v3187_v4 = vpop.f32.mrf.mxu0 }
 0x3e7   : > { %v2815_v30 = vadd.f32 %v2814_v48, %v2674_v8  ;;  %v3002_v25 = vpop.f32.mrf.mxu3  ;;  %v2676_v33 = vpop.f32.mrf.mxu1  ;;  %v7473_v29 = vadd.f32 %v3187_v4, %v7323_v39  ;;  %v3281_v8 = vld [vmem:[#allocation2 + $0xe8] sm:$0xff]  ;;  %v7484_v39 = vpack.c.bf16 %v3502_v17, %v3501_v0 }
 0x3e8   : > { %v3080_v4 = vld [vmem:[#allocation2 + $0x20f] sm:$0xff] }
 0x3e9   : > { %v7470_v47 = vadd.f32 %v3002_v25, %v2815_v30  ;;  %8572 = vst [vmem:[#allocation6_spill] sm:$0xff] %v7473_v29  ;;  %5510 = vmatmul.msk.bf16.gmra.mxu0 %vm278_vm1, %v7338_v28  ;;  %v7482_v25 = vpack.c.bf16 %v3282_v20, %v3281_v8 }
 0x3ea   : > { %8574 = vst [vmem:[#allocation65_spill] sm:$0xff] %v7484_v39 }
 0x3ee   : > { %v2816_v57 = vpop.f32.mrf.mxu2  ;;  %v3189_v55 = vpop.f32.mrf.mxu0 }
 0x3ef   : > { %v2817_v22 = vadd.f32 %v2816_v57, %v2676_v33  ;;  %v3004_v52 = vpop.f32.mrf.mxu3  ;;  %v2679_v31 = vpop.f32.mrf.mxu1  ;;  %v7480_v30 = vadd.f32 %v3189_v55, %v7334_v53  ;;  %v3079_v55 = vld [vmem:[#allocation2 + $0x207] sm:$0xff] }
 0x3f0   : > { %v7497_v17 = vpack.c.bf16 %v3080_v4, %v3079_v55 }
 0x3f1   : > { %v7477_v48 = vadd.f32 %v3004_v52, %v2817_v22  ;;  %8573 = vst [vmem:[#allocation58_spill] sm:$0xff] %v7480_v30 }
 0x3f2   : > { %5518 = vmatmul.msk.bf16.gmra.mxu1 %vm278_vm1, %v7482_v25 }
 0x3f3   : > { %5534 = vmatmul.msk.bf16.gmra.mxu2 %vm278_vm1, %v7484_v39 }
 0x3f4   : > { %5550 = vmatmul.msk.bf16.gmra.mxu3 %vm278_vm1, %v7060_v43 }
 0x3f6   : > { %v2819_v33 = vpop.f32.mrf.mxu2  ;;  %v3192_v53 = vpop.f32.mrf.mxu0 }
 0x3f7   : > { %v2820_v57 = vadd.f32 %v2819_v33, %v2679_v31  ;;  %v3007_v22 = vpop.f32.mrf.mxu3  ;;  %v2681_v52 = vpop.f32.mrf.mxu1  ;;  %v7495_v0 = vadd.f32 %v3192_v53, %v7353_v62 }
 0x3f9   : > { %v7492_v20 = vadd.f32 %v3007_v22, %v2820_v57  ;;  %5511 = vmatmul.msk.bf16.gmra.mxu0 %vm278_vm1, %v7497_v17 }
 0x3fe   : > { %v2821_v8 = vpop.f32.mrf.mxu2  ;;  %v3194_v29 = vpop.f32.mrf.mxu0 }
 0x3ff   : > { %v2822_v39 = vadd.f32 %v2821_v8, %v2681_v52  ;;  %v3009_v43 = vpop.f32.mrf.mxu3  ;;  %v2684_v30 = vpop.f32.mrf.mxu1  ;;  %v7504_v33 = vadd.f32 %v3194_v29, %v7362_v32 }
 0x401   : > { %v7501_v31 = vadd.f32 %v3009_v43, %v2822_v39 }
 0x402   : > { %5519 = vmatmul.msk.bf16.gmra.mxu1 %vm278_vm1, %v7058_v54 }
 0x403   : > { %5535 = vmatmul.msk.bf16.gmra.mxu2 %vm278_vm1, %v7062_v21 }
 0x404   : > { %5551 = vmatmul.msk.bf16.gmra.mxu3 %vm278_vm1, %v7099_v40  ;;  %v2752_v40 = vadd.f32 %v7087_v36, %v7077_v12 }
 0x406   : > { %v2824_v62 = vpop.f32.mrf.mxu2  ;;  %v3197_v52 = vpop.f32.mrf.mxu0 }
 0x407   : > { %v2825_v4 = vadd.f32 %v2824_v62, %v2684_v30  ;;  %v3012_v57 = vpop.f32.mrf.mxu3  ;;  %v2686_v22 = vpop.f32.mrf.mxu1  ;;  %v7515_v39 = vadd.f32 %v3197_v52, %v7368_v41  ;;  %v3018_v41 = vadd.f32 %v7090_v42, %v2752_v40 }
 0x409   : > { %v7512_v53 = vadd.f32 %v3012_v57, %v2825_v4  ;;  %5560 = vmatmul.msk.bf16.vlgmr.msra.gmra.mxu0 %vm278_vm1, %v7380_v45  ;;  %v3238_v12 = vadd.f32 %v7360_v37, %v3018_v41 }
 0x40e   : > { %v2826_v54 = vpop.f32.mrf.mxu2  ;;  %v3199_v21 = vpop.f32.mrf.mxu0 }
 0x40f   : > { %v2827_v32 = vadd.f32 %v2826_v54, %v2686_v22  ;;  %v3014_v29 = vpop.f32.mrf.mxu3  ;;  %v3377_v55 = vpop.f32.mrf.mxu1  ;;  %v7524_v8 = vadd.f32 %v3199_v21, %v7375_v35 }
 0x410   : > { %v3457_v43 = vadd.f32 %v3377_v55, %v7356_v46 }
 0x411   : > { %v7521_v30 = vadd.f32 %v3014_v29, %v2827_v32 }
 0x412   : > { %5520 = vmatmul.msk.bf16.gmra.mxu1 %vm278_vm1, %v7097_v49 }
 0x413   : > { %5536 = vmatmul.msk.bf16.gmra.mxu2 %vm278_vm1, %v7101_v60 }
 0x414   : > { %5552 = vmatmul.msk.bf16.gmra.mxu3 %vm278_vm1, %v7136_v27 }
 0x416   : > { %v3597_v45 = vpop.f32.mrf.mxu2  ;;  %v3202_v35 = vpop.f32.mrf.mxu0 }
 0x417   : > { %v3677_v36 = vadd.f32 %v3597_v45, %v3457_v43  ;;  %v3817_v62 = vpop.f32.mrf.mxu3  ;;  %v3379_v4 = vpop.f32.mrf.mxu1  ;;  %v7538_v46 = vadd.f32 %v3202_v35, %v7390_v19  ;;  %v3933_v43 = vld [vmem:[#allocation2 + $0x88] sm:$0xff] }
 0x418   : > { %v3458_v49 = vadd.f32 %v3379_v4, %v3238_v12 }
 0x419   : > { %v7535_v57 = vadd.f32 %v3817_v62, %v3677_v36  ;;  %5561 = vmatmul.msk.bf16.gmra.mxu0 %vm278_vm1, %v7402_v18  ;;  %v3934_v18 = vld [vmem:[#allocation2 + $0x90] sm:$0xff] }
 0x41a   : > { %v3963_v41 = vpack.c.bf16 %v3934_v18, %v3933_v43 }
 0x41e   : > { %v3599_v60 = vpop.f32.mrf.mxu2  ;;  %v3204_v42 = vpop.f32.mrf.mxu0 }
 0x41f   : > { %v3678_v27 = vadd.f32 %v3599_v60, %v3458_v49  ;;  %v3819_v22 = vpop.f32.mrf.mxu3  ;;  %v3382_v52 = vpop.f32.mrf.mxu1  ;;  %v7545_v37 = vadd.f32 %v3204_v42, %v7397_v3 }
 0x420   : > { %v3459_v32 = vadd.f32 %v3382_v52, %v7371_v26 }
 0x421   : > { %v7542_v54 = vadd.f32 %v3819_v22, %v3678_v27 }
 0x422   : > { %5521 = vmatmul.msk.bf16.gmra.mxu1 %vm278_vm1, %v7134_v23 }
 0x423   : > { %5537 = vmatmul.msk.bf16.gmra.mxu2 %vm278_vm1, %v7138_v38 }
 0x424   : > { %5553 = vmatmul.msk.bf16.gmra.mxu3 %vm278_vm1, %v7173_v34 }
 0x426   : > { %v3602_v19 = vpop.f32.mrf.mxu2  ;;  %v3207_v55 = vpop.f32.mrf.mxu0 }
 0x427   : > { %v3679_v29 = vadd.f32 %v3602_v19, %v3459_v32  ;;  %v3822_v21 = vpop.f32.mrf.mxu3  ;;  %v3384_v40 = vpop.f32.mrf.mxu1  ;;  %v7557_v26 = vadd.f32 %v3207_v55, %v7412_v5 }
 0x428   : > { %v3460_v23 = vadd.f32 %v3384_v40, %v7378_v2 }
 0x429   : > { %v7554_v3 = vadd.f32 %v3822_v21, %v3679_v29  ;;  %5562 = vmatmul.msk.bf16.gmra.mxu0 %vm278_vm1, %v3963_v41  ;;  %v8575_v29 = vld [vmem:[#allocation37_spill] sm:$0xff] }
 0x42e   : > { %v3604_v38 = vpop.f32.mrf.mxu2  ;;  %v3209_v12 = vpop.f32.mrf.mxu0 }
 0x42f   : > { %v3680_v45 = vadd.f32 %v3604_v38, %v3460_v23  ;;  %v3824_v34 = vpop.f32.mrf.mxu3  ;;  %v3387_v36 = vpop.f32.mrf.mxu1  ;;  %v7564_v35 = vadd.f32 %v3209_v12, %v7419_v56 }
 0x430   : > { %v3461_v4 = vadd.f32 %v3387_v36, %v7393_v59 }
 0x431   : > { %v7561_v62 = vadd.f32 %v3824_v34, %v3680_v45 }
 0x432   : > { %5522 = vmatmul.msk.bf16.gmra.mxu1 %vm278_vm1, %v7171_v7 }
 0x433   : > { %5538 = vmatmul.msk.bf16.gmra.mxu2 %vm278_vm1, %v7175_v1 }
 0x434   : > { %5554 = vmatmul.msk.bf16.gmra.mxu3 %vm278_vm1, %v7210_v61 }
 0x436   : > { %v3607_v2 = vpop.f32.mrf.mxu2  ;;  %v3212_v60 = vpop.f32.mrf.mxu0 }
 0x437   : > { %v3681_v5 = vadd.f32 %v3607_v2, %v3461_v4  ;;  %v3827_v49 = vpop.f32.mrf.mxu3  ;;  %v3389_v27 = vpop.f32.mrf.mxu1  ;;  %v7576_v56 = vadd.f32 %v3212_v60, %v7430_v6  ;;  %v8576_v6 = vld [vmem:[#allocation42_spill] sm:$0xff]  ;;  %v8578_v2 = vld [vmem:[#allocation55_spill] sm:$0xff]  ;;  %v8580_v60 = vld [vmem:[#allocation33_spill] sm:$0xff] }
 0x438   : > { %v3462_v59 = vadd.f32 %v3389_v27, %v7400_v14 }
 0x439   : > { %v7573_v22 = vadd.f32 %v3827_v49, %v3681_v5  ;;  %5563 = vmatmul.msk.bf16.gmra.mxu0 %vm278_vm1, %v7442_v44 }
 0x43e   : > { %v3609_v7 = vpop.f32.mrf.mxu2  ;;  %v3214_v52 = vpop.f32.mrf.mxu0 }
 0x43f   : > { %v3682_v1 = vadd.f32 %v3609_v7, %v3462_v59  ;;  %v3829_v42 = vpop.f32.mrf.mxu3  ;;  %v3392_v61 = vpop.f32.mrf.mxu1  ;;  %v7584_v19 = vadd.f32 %v3214_v52, %v7437_v50  ;;  %v3941_v59 = vld [vmem:[#allocation2 + $0x108] sm:$0xff] }
 0x440   : > { %v3463_v18 = vadd.f32 %v3392_v61, %v7415_v51 }
 0x441   : > { %v7581_v32 = vadd.f32 %v3829_v42, %v3682_v1 }
 0x442   : > { %5523 = vmatmul.msk.bf16.gmra.mxu1 %vm278_vm1, %v8575_v29  ;;  %v8583_v29 = vld [vmem:[#allocation60_spill] sm:$0xff] }
 0x443   : > { %5539 = vmatmul.msk.bf16.gmra.mxu2 %vm278_vm1, %v8576_v6  ;;  %v8584_v6 = vld [vmem:[#allocation34_spill] sm:$0xff] }
 0x444   : > { %5555 = vmatmul.msk.bf16.gmra.mxu3 %vm278_vm1, %v7247_v13 }
 0x446   : > { %v3612_v14 = vpop.f32.mrf.mxu2  ;;  %v3217_v55 = vpop.f32.mrf.mxu0 }
 0x447   : > { %v3683_v44 = vadd.f32 %v3612_v14, %v3463_v18  ;;  %v3832_v21 = vpop.f32.mrf.mxu3  ;;  %v3394_v40 = vpop.f32.mrf.mxu1  ;;  %v7596_v50 = vadd.f32 %v3217_v55, %v7450_v15  ;;  %v8582_v18 = vld [vmem:[#allocation6_spill] sm:$0xff] }
 0x448   : > { %v3464_v51 = vadd.f32 %v3394_v40, %v7422_v10  ;;  %v8577_v10 = vld [vmem:[#allocation32_spill] sm:$0xff] }
 0x449   : > { %v7593_v43 = vadd.f32 %v3832_v21, %v3683_v44  ;;  %5564 = vmatmul.msk.bf16.gmra.mxu0 %vm278_vm1, %v7462_v9  ;;  %v3943_v21 = vld [vmem:[#allocation2 + $0x128] sm:$0xff] }
 0x44e   : > { %v3614_v23 = vpop.f32.mrf.mxu2  ;;  %v3219_v45 = vpop.f32.mrf.mxu0 }
 0x44f   : > { %v3684_v41 = vadd.f32 %v3614_v23, %v3464_v51  ;;  %v3834_v38 = vpop.f32.mrf.mxu3  ;;  %v3397_v13 = vpop.f32.mrf.mxu1  ;;  %v7604_v12 = vadd.f32 %v3219_v45, %v7457_v11  ;;  %v3739_v23 = vld [vmem:[#allocation2 + $0x227] sm:$0xff] }
 0x450   : > { %v7607_v36 = vadd.f32 %v3397_v13, %v7433_v58  ;;  %v3519_v45 = vld [vmem:[#allocation2 + $0x209] sm:$0xff]  ;;  %v3520_v13 = vld [vmem:[#allocation2 + $0x211] sm:$0xff] }
 0x451   : > { %v7601_v34 = vadd.f32 %v3834_v38, %v3684_v41  ;;  %v3740_v41 = vld [vmem:[#allocation2 + $0x22f] sm:$0xff] }
 0x452   : > { %5524 = vmatmul.msk.bf16.gmra.mxu1 %vm278_vm1, %v7245_v24  ;;  %v3300_v38 = vld [vmem:[#allocation2 + $0x210] sm:$0xff] }
 0x453   : > { %5540 = vmatmul.msk.bf16.gmra.mxu2 %vm278_vm1, %v8577_v10 }
 0x454   : > { %5556 = vmatmul.msk.bf16.gmra.mxu3 %vm278_vm1, %v7292_v16  ;;  %v8579_v16 = vld [vmem:[#allocation57_spill] sm:$0xff] }
 0x456   : > { %v3222_v15 = vpop.f32.mrf.mxu0 }
 0x457   : > { %v3399_v9 = vpop.f32.mrf.mxu1  ;;  %v7616_v4 = vadd.f32 %v3222_v15, %v7470_v47  ;;  %v3942_v47 = vld [vmem:[#allocation2 + $0x110] sm:$0xff]  ;;  %v3299_v15 = vld [vmem:[#allocation2 + $0x208] sm:$0xff] }
 0x458   : > { %v7619_v11 = vadd.f32 %v3399_v9, %v8578_v2  ;;  %v3756_v9 = vpack.c.bf16 %v3740_v41, %v3739_v23  ;;  %v3949_v41 = vld [vmem:[#allocation2 + $0x188] sm:$0xff] }
 0x459   : > { %5565 = vmatmul.msk.bf16.gmra.mxu0 %vm278_vm1, %v7482_v25 }
 0x45e   : > { %v3224_v58 = vpop.f32.mrf.mxu0 }
 0x45f   : > { %v3402_v5 = vpop.f32.mrf.mxu1  ;;  %v7624_v24 = vadd.f32 %v3224_v58, %v7477_v48  ;;  %v8581_v48 = vld [vmem:[#allocation63_spill] sm:$0xff]  ;;  %v7667_v58 = vpack.c.bf16 %v3300_v38, %v3299_v15 }
 0x460   : > { %v7627_v49 = vadd.f32 %v3402_v5, %v7453_v63  ;;  %v3967_v63 = vpack.c.bf16 %v3942_v47, %v3941_v59  ;;  %v7669_v5 = vpack.c.bf16 %v3520_v13, %v3519_v45 }
 0x462   : > { %5525 = vmatmul.msk.bf16.gmra.mxu1 %vm278_vm1, %v8579_v16  ;;  %v3946_v16 = vld [vmem:[#allocation2 + $0x150] sm:$0xff] }
 0x463   : > { %5541 = vmatmul.msk.bf16.gmra.mxu2 %vm278_vm1, %v8580_v60 }
 0x464   : > { %5557 = vmatmul.msk.bf16.gmra.mxu3 %vm278_vm1, %v7338_v28 }
 0x466   : > { %v3227_v27 = vpop.f32.mrf.mxu0 }
 0x467   : > { %v3404_v25 = vpop.f32.mrf.mxu1  ;;  %v7636_v7 = vadd.f32 %v3227_v27, %v7492_v20  ;;  %v3944_v20 = vld [vmem:[#allocation2 + $0x130] sm:$0xff] }
 0x468   : > { %v7639_v1 = vadd.f32 %v3404_v25, %v8581_v48  ;;  %v3968_v51 = vpack.c.bf16 %v3944_v20, %v3943_v21 }
 0x469   : > { %5566 = vmatmul.msk.bf16.gmra.mxu0 %vm278_vm1, %v3967_v63 }
 0x46e   : > { %v3229_v42 = vpop.f32.mrf.mxu0 }
 0x46f   : > { %v3407_v52 = vpop.f32.mrf.mxu1  ;;  %v7643_v61 = vadd.f32 %v3229_v42, %v7501_v31  ;;  %v8585_v31 = vld [vmem:[#allocation58_spill] sm:$0xff] }
 0x470   : > { %v7646_v28 = vadd.f32 %v3407_v52, %v8582_v18  ;;  %v8586_v52 = vld [vmem:[#allocation35_spill] sm:$0xff]  ;;  %v3948_v18 = vld [vmem:[#allocation2 + $0x170] sm:$0xff] }
 0x472   : > { %5526 = vmatmul.msk.bf16.gmra.mxu1 %vm278_vm1, %v8583_v29 }
 0x473   : > { %5542 = vmatmul.msk.bf16.gmra.mxu2 %vm278_vm1, %v8584_v6  ;;  %v3947_v6 = vld [vmem:[#allocation2 + $0x168] sm:$0xff] }
 0x474   : > { %5558 = vmatmul.msk.bf16.gmra.mxu3 %vm278_vm1, %v7497_v17 }
 0x476   : > { %v3232_v14 = vpop.f32.mrf.mxu0 }
 0x477   : > { %v3409_v44 = vpop.f32.mrf.mxu1  ;;  %v7655_v55 = vadd.f32 %v3232_v14, %v7512_v53  ;;  %v3970_v14 = vpack.c.bf16 %v3948_v18, %v3947_v6 }
 0x478   : > { %v7658_v40 = vadd.f32 %v3409_v44, %v8585_v31  ;;  %v8587_v31 = vld [vmem:[#allocation48_spill] sm:$0xff] }
 0x479   : > { %5567 = vmatmul.msk.bf16.gmra.mxu0 %vm278_vm1, %v3968_v51  ;;  %v3950_v51 = vld [vmem:[#allocation2 + $0x190] sm:$0xff] }
 0x47a   : > { %v3971_v45 = vpack.c.bf16 %v3950_v51, %v3949_v41  ;;  %v7746_v41 = vpop.f32.mrf.mxu2 }
 0x47e   : > { %v3234_v10 = vpop.f32.mrf.mxu0 }
 0x47f   : > { %v3412_v17 = vpop.f32.mrf.mxu1  ;;  %v7662_v2 = vadd.f32 %v3234_v10, %v7521_v30  ;;  %v3945_v30 = vld [vmem:[#allocation2 + $0x148] sm:$0xff] }
 0x480   : > { %v7665_v53 = vadd.f32 %v3412_v17, %v7495_v0  ;;  %v3969_v25 = vpack.c.bf16 %v3946_v16, %v3945_v30 }
 0x482   : > { %5527 = vmatmul.msk.bf16.gmra.mxu1 %vm278_vm1, %v7667_v58 }
 0x483   : > { %5543 = vmatmul.msk.bf16.gmra.mxu2 %vm278_vm1, %v7669_v5 }
 0x484   : > { %5559 = vmatmul.msk.bf16.gmra.mxu3 %vm278_vm1, %v3756_v9 }
 0x486   : > { %v4037_v47 = vpop.f32.mrf.mxu0 }
 0x487   : > { %v3414_v60 = vpop.f32.mrf.mxu1  ;;  %v7680_v0 = vadd.f32 %v4037_v47, %v7535_v57  ;;  %v3952_v47 = vld [vmem:[#allocation2 + $0x1b0] sm:$0xff] }
 0x488   : > { %v7677_v27 = vadd.f32 %v3414_v60, %v7504_v33 }
 0x489   : > { %5568 = vmatmul.msk.bf16.gmra.mxu0 %vm278_vm1, %v3969_v25 }
 0x48e   : > { %v4039_v48 = vpop.f32.mrf.mxu0 }
 0x48f   : > { %v3417_v59 = vpop.f32.mrf.mxu1  ;;  %v7687_v42 = vadd.f32 %v4039_v48, %v7542_v54 }
 0x490   : > { %v7684_v63 = vadd.f32 %v3417_v59, %v7515_v39  ;;  %v3951_v59 = vld [vmem:[#allocation2 + $0x1a8] sm:$0xff] }
 0x491   : > { %v3972_v18 = vpack.c.bf16 %v3952_v47, %v3951_v59 }
 0x492   : > { %5576 = vmatmul.msk.bf16.vlgmr.msrb.gmra.mxu1 %vm278_vm1, %v8586_v52 }
 0x496   : > { %v4042_v29 = vpop.f32.mrf.mxu0 }
 0x497   : > { %v3419_v33 = vpop.f32.mrf.mxu1  ;;  %v7695_v20 = vadd.f32 %v4042_v29, %v7554_v3 }
 0x498   : > { %v7692_v57 = vadd.f32 %v3419_v33, %v7524_v8  ;;  %v4156_v33 = vld [vmem:[#allocation2 + $0xb1] sm:$0xff] }
 0x499   : > { %5569 = vmatmul.msk.bf16.gmra.mxu0 %vm278_vm1, %v3970_v14 }
 0x49e   : > { %v4044_v44 = vpop.f32.mrf.mxu0 }
 0x49f   : > { %v3422_v39 = vpop.f32.mrf.mxu1  ;;  %v7702_v21 = vadd.f32 %v4044_v44, %v7561_v62  ;;  %v4501_v62 = vld [vmem:[%s8292_s5] sm:$0x3] }
 0x4a0   : > { %v7699_v54 = vadd.f32 %v3422_v39, %v7538_v46  ;;  %v4502_v46 = vld [vmem:[%s8292_s5 + $0x2] sm:$0x3]  ;;  %v4607_v10 = vsel %vm538_vm0, %v4501_v62, 0  ;;  %v3956_v62 = vld [vmem:[#allocation2 + $0x1f0] sm:$0xff] }
 0x4a1   : > { %v4563_v13 = vsel %vm538_vm0, %v4502_v46, 0  ;;  %4616 = vmatpush.bf16.msrb.mxu3 %v4607_v10  ;;  %v7751_v46 = vpop.f32.mrf.mxu3 }
 0x4a2   : > { %5577 = vmatmul.msk.bf16.gmra.mxu1 %vm278_vm1, %v8587_v31  ;;  %4572 = vmatpush.bf16.msrb.mxu2 %v4563_v13 }
 0x4a6   : > { %v4047_v23 = vpop.f32.mrf.mxu0 }
 0x4a7   : > { %v3424_v8 = vpop.f32.mrf.mxu1  ;;  %v7710_v38 = vadd.f32 %v4047_v23, %v7573_v22  ;;  %v4154_v22 = vld [vmem:[#allocation2 + $0x91] sm:$0xff] }
 0x4a8   : > { %v7707_v3 = vadd.f32 %v3424_v8, %v7545_v37  ;;  %v4153_v37 = vld [vmem:[#allocation2 + $0x89] sm:$0xff]  ;;  %v4158_v23 = vld [vmem:[#allocation2 + $0xd1] sm:$0xff] }
 0x4a9   : > { %5570 = vmatmul.msk.bf16.gmra.mxu0 %vm278_vm1, %v3971_v45  ;;  %v4183_v60 = vpack.c.bf16 %v4154_v22, %v4153_v37  ;;  %v4157_v8 = vld [vmem:[#allocation2 + $0xc9] sm:$0xff]  ;;  %v7757_v22 = vpop.f32.mrf.mxu2 }
 0x4aa   : > { %v4185_v45 = vpack.c.bf16 %v4158_v23, %v4157_v8  ;;  %v4163_v8 = vld [vmem:[#allocation2 + $0x129] sm:$0xff]  ;;  %v4164_v23 = vld [vmem:[#allocation2 + $0x131] sm:$0xff] }
 0x4ae   : > { %v4049_v15 = vpop.f32.mrf.mxu0 }
 0x4af   : > { %v3427_v17 = vpop.f32.mrf.mxu1  ;;  %v7725_v16 = vadd.f32 %v4049_v15, %v7581_v32 }
 0x4b0   : > { %v7722_v9 = vadd.f32 %v3427_v17, %v7557_v26  ;;  %v4155_v26 = vld [vmem:[#allocation2 + $0xa9] sm:$0xff]  ;;  %v7760_v17 = vpop.f32.mrf.mxu3 }
 0x4b1   : > { %v4184_v39 = vpack.c.bf16 %v4156_v33, %v4155_v26  ;;  %v7767_v47 = vpop.f32.mrf.mxu2  ;;  %v4162_v26 = vld [vmem:[#allocation2 + $0x111] sm:$0xff] }
 0x4b2   : > { %5578 = vmatmul.msk.bf16.gmra.mxu1 %vm278_vm1, %v4183_v60  ;;  %v8590_v60 = vld [vmem:[#allocation65_spill] sm:$0xff] }
 0x4b6   : > { %v4052_v25 = vpop.f32.mrf.mxu0 }
 0x4b7   : > { %v3429_v30 = vpop.f32.mrf.mxu1  ;;  %v7732_v52 = vadd.f32 %v4052_v25, %v7593_v43  ;;  %v3953_v43 = vld [vmem:[#allocation2 + $0x1c8] sm:$0xff] }
 0x4b8   : > { %v7729_v48 = vadd.f32 %v3429_v30, %v7564_v35  ;;  %v3954_v35 = vld [vmem:[#allocation2 + $0x1d0] sm:$0xff]  ;;  %v7769_v30 = vpop.f32.mrf.mxu3 }
 0x4b9   : > { %5571 = vmatmul.msk.bf16.gmra.mxu0 %vm278_vm1, %v3972_v18  ;;  %v3973_v51 = vpack.c.bf16 %v3954_v35, %v3953_v43  ;;  %v7776_v59 = vpop.f32.mrf.mxu2  ;;  %v4161_v18 = vld [vmem:[#allocation2 + $0x109] sm:$0xff] }
 0x4ba   : > { %v3960_v35 = vld [vmem:[#allocation2 + $0x230] sm:$0xff] }
 0x4be   : > { %v4054_v29 = vpop.f32.mrf.mxu0 }
 0x4bf   : > { %v3432_v32 = vpop.f32.mrf.mxu1  ;;  %v7739_v14 = vadd.f32 %v4054_v29, %v7601_v34  ;;  %v4187_v29 = vpack.c.bf16 %v4162_v26, %v4161_v18 }
 0x4c0   : > { %v7736_v6 = vadd.f32 %v3432_v32, %v7576_v56 }
 0x4c2   : > { %5579 = vmatmul.msk.bf16.gmra.mxu1 %vm278_vm1, %v4184_v39  ;;  %v3959_v39 = vld [vmem:[#allocation2 + $0x228] sm:$0xff] }
 0x4c7   : > { %v3434_v44 = vpop.f32.mrf.mxu1 }
 0x4c8   : > { %v7743_v31 = vadd.f32 %v3434_v44, %v7584_v19  ;;  %v3955_v19 = vld [vmem:[#allocation2 + $0x1e8] sm:$0xff]  ;;  %v7784_v44 = vpop.f32.mrf.mxu2 }
 0x4c9   : > { %5572 = vmatmul.msk.bf16.gmra.mxu0 %vm278_vm1, %v3973_v51  ;;  %v3974_v37 = vpack.c.bf16 %v3956_v62, %v3955_v19 }
 0x4cf   : > { %v3437_v56 = vpop.f32.mrf.mxu1 }
 0x4d0   : > { %v7749_v34 = vadd.f32 %v3437_v56, %v7596_v50  ;;  %v7795_v62 = vpop.f32.mrf.mxu2 }
 0x4d2   : > { %5580 = vmatmul.msk.bf16.gmra.mxu1 %vm278_vm1, %v4185_v45  ;;  %v4188_v45 = vpack.c.bf16 %v4164_v23, %v4163_v8 }
 0x4d7   : > { %v3439_v13 = vpop.f32.mrf.mxu1 }
 0x4d8   : > { %v7755_v10 = vadd.f32 %v3439_v13, %v7604_v12 }
 0x4d9   : > { %5573 = vmatmul.msk.bf16.gmra.mxu0 %vm278_vm1, %v3974_v37  ;;  %v7803_v37 = vpop.f32.mrf.mxu2 }
 0x4da   : > { %8588 = vst [vmem:[#allocation7_spill] sm:$0xff] %v7755_v10  ;;  %v8601_v10 = vld [vmem:[#allocation17_spill] sm:$0xff] }
 0x4df   : > { %v3442_v50 = vpop.f32.mrf.mxu1 }
 0x4e0   : > { %v7763_v15 = vadd.f32 %v3442_v50, %v7616_v4  ;;  %v7778_v4 = vpop.f32.mrf.mxu3 }
 0x4e2   : > { %8589 = vst [vmem:[#allocation41_spill] sm:$0xff] %v7763_v15  ;;  %5581 = vmatmul.msk.bf16.gmra.mxu1 %vm278_vm1, %v8590_v60  ;;  %v4165_v60 = vld [vmem:[#allocation2 + $0x149] sm:$0xff] }
 0x4e7   : > { %v3444_v12 = vpop.f32.mrf.mxu1 }
 0x4e8   : > { %v7772_v25 = vadd.f32 %v3444_v12, %v7624_v24  ;;  %v3976_v24 = vpack.c.bf16 %v3960_v35, %v3959_v39  ;;  %v7789_v51 = vpop.f32.mrf.mxu3  ;;  %v4166_v12 = vld [vmem:[#allocation2 + $0x151] sm:$0xff]  ;;  %v7815_v39 = vpop.f32.mrf.mxu2 }
 0x4e9   : > { %5574 = vmatmul.msk.bf16.gmra.mxu0 %vm278_vm1, %v7667_v58  ;;  %v8596_v35 = vld [vmem:[#allocation12_spill] sm:$0xff] }
 0x4ea   : > { %8591 = vst [vmem:[#allocation59_spill] sm:$0xff] %v7772_v25 }
 0x4ef   : > { %v3447_v33 = vpop.f32.mrf.mxu1 }
 0x4f0   : > { %v7781_v32 = vadd.f32 %v3447_v33, %v7636_v7  ;;  %v7798_v13 = vpop.f32.mrf.mxu3  ;;  %v4189_v33 = vpack.c.bf16 %v4166_v12, %v4165_v60  ;;  %v4168_v60 = vld [vmem:[#allocation2 + $0x171] sm:$0xff] }
 0x4f1   : > { %v8597_v12 = vld [vmem:[#allocation13_spill] sm:$0xff] }
 0x4f2   : > { %8592 = vst [vmem:[#allocation66_spill] sm:$0xff] %v7781_v32  ;;  %5582 = vmatmul.msk.bf16.gmra.mxu1 %vm278_vm1, %v4187_v29 }
 0x4f7   : > { %v3449_v43 = vpop.f32.mrf.mxu1 }
 0x4f8   : > { %v7787_v58 = vadd.f32 %v3449_v43, %v7643_v61  ;;  %v7805_v50 = vpop.f32.mrf.mxu3 }
 0x4f9   : > { %5575 = vmatmul.msk.bf16.gmra.mxu0 %vm278_vm1, %v3976_v24 }
 0x4fa   : > { %8593 = vst [vmem:[#allocation8_spill] sm:$0xff] %v7787_v58  ;;  %v4511_v58 = vld [vmem:[#allocation2 + $0x7] ss:$2 sm:$0xff] }
 0x4ff   : > { %v3452_v7 = vpop.f32.mrf.mxu1 }
 0x500   : > { %v7793_v56 = vadd.f32 %v3452_v7, %v7655_v55  ;;  %v7810_v55 = vld [vmem:[%s8291_s4] ss:$0 sm:$0xff]  ;;  %v7818_v43 = vpop.f32.mrf.mxu3 }
 0x502   : > { %8594 = vst [vmem:[#allocation61_spill] sm:$0xff] %v7793_v56  ;;  %5583 = vmatmul.msk.bf16.gmra.mxu1 %vm278_vm1, %v4188_v45 }
 0x507   : > { %v3454_v19 = vpop.f32.mrf.mxu1 }
 0x508   : > { %v7801_v61 = vadd.f32 %v3454_v19, %v7662_v2  ;;  %v4167_v19 = vld [vmem:[#allocation2 + $0x169] sm:$0xff] }
 0x50a   : > { %8595 = vst [vmem:[#allocation9_spill] sm:$0xff] %v7801_v61 }
 0x50f   : > { %v4257_v18 = vpop.f32.mrf.mxu1 }
 0x510   : > { %v4337_v26 = vadd.f32 %v4257_v18, %v7680_v0  ;;  %v7823_v0 = vpop.f32.mrf.mxu0 }
 0x512   : > { %v4373_v29 = vadd.f32 %v7810_v55, %v4337_v26  ;;  %5584 = vmatmul.msk.bf16.gmra.mxu1 %vm278_vm1, %v4189_v33  ;;  %v7826_v26 = vpop.f32.mrf.mxu2 }
 0x514   : > { %v4405_v2 = vmax.f32 %v4373_v29, 0.0 }
 0x516   : > { %v4437_v24 = vadd.f32 %v4405_v2, %v8596_v35  ;;  %v4190_v2 = vpack.c.bf16 %v4168_v60, %v4167_v19  ;;  %v7830_v35 = vpop.f32.mrf.mxu3 }
 0x517   : > { %v4259_v8 = vpop.f32.mrf.mxu1 }
 0x518   : > { %4469 = vst.msk [vmem:[#allocation2 + $0x28] sm:$0xff] %vm278_vm1, %v4437_v24  ;;  %v4338_v23 = vadd.f32 %v4259_v8, %v7687_v42  ;;  %v7834_v8 = vpop.f32.mrf.mxu0 }
 0x51a   : > { %v4374_v7 = vadd.f32 %v7810_v55, %v4338_v23  ;;  %v8598_v23 = vld [vmem:[#allocation14_spill] sm:$0xff] }
 0x51c   : > { %v4406_v45 = vmax.f32 %v4374_v7, 0.0 }
 0x51e   : > { %v4438_v18 = vadd.f32 %v4406_v45, %v8597_v12  ;;  %v7842_v19 = vpop.f32.mrf.mxu3 }
 0x51f   : > { %v4262_v33 = vpop.f32.mrf.mxu1 }
 0x520   : > { %4470 = vst.msk [vmem:[#allocation2 + $0x30] sm:$0xff] %vm278_vm1, %v4438_v18  ;;  %v4339_v29 = vadd.f32 %v4262_v33, %v7695_v20  ;;  %v7839_v18 = vpop.f32.mrf.mxu2  ;;  %v4169_v33 = vld [vmem:[#allocation2 + $0x189] sm:$0xff]  ;;  %v7845_v56 = vpop.f32.mrf.mxu0 }
 0x522   : > { %v4375_v42 = vadd.f32 %v7810_v55, %v4339_v29  ;;  %5585 = vmatmul.msk.bf16.gmra.mxu1 %vm278_vm1, %v4190_v2  ;;  %v4170_v29 = vld [vmem:[#allocation2 + $0x191] sm:$0xff]  ;;  %v8599_v2 = vld [vmem:[#allocation15_spill] sm:$0xff] }
 0x524   : > { %v4407_v24 = vmax.f32 %v4375_v42, 0.0 }
 0x526   : > { %v4439_v7 = vadd.f32 %v4407_v24, %v8598_v23  ;;  %v4191_v23 = vpack.c.bf16 %v4170_v29, %v4169_v33 }
 0x527   : > { %v4264_v45 = vpop.f32.mrf.mxu1 }
 0x528   : > { %4471 = vst.msk [vmem:[#allocation2 + $0x48] sm:$0xff] %vm278_vm1, %v4439_v7  ;;  %v4340_v12 = vadd.f32 %v4264_v45, %v7702_v21  ;;  %v7851_v7 = vpop.f32.mrf.mxu2 }
 0x52a   : > { %v4376_v20 = vadd.f32 %v7810_v55, %v4340_v12  ;;  %v7853_v12 = vpop.f32.mrf.mxu3 }
 0x52c   : > { %v4408_v60 = vmax.f32 %v4376_v20, 0.0  ;;  %v4531_v20 = vld [vmem:[#allocation2 + $0x8] ss:$2 sm:$0xff] }
 0x52e   : > { %v4440_v42 = vadd.f32 %v4408_v60, %v8599_v2  ;;  %v8600_v60 = vld [vmem:[#allocation16_spill] sm:$0xff] }
 0x52f   : > { %v4267_v61 = vpop.f32.mrf.mxu1 }
 0x530   : > { %4472 = vst.msk [vmem:[#allocation2 + $0x50] sm:$0xff] %vm278_vm1, %v4440_v42  ;;  %v4341_v24 = vadd.f32 %v4267_v61, %v7710_v38  ;;  %v4509_v38 = vld [vmem:[%s8292_s5 + $0x10] sm:$0x3] }
 0x531   : > { %v5103_v42 = vsel %vm538_vm0, %v4509_v38, 0 }
 0x532   : > { %v4377_v21 = vadd.f32 %v7810_v55, %v4341_v24  ;;  %5586 = vmatmul.msk.bf16.gmra.mxu1 %vm278_vm1, %v4191_v23  ;;  %v7862_v24 = vpop.f32.mrf.mxu0  ;;  %5112 = vmatpush.bf16.msrb.mxu0 %v5103_v42 }
 0x534   : > { %v4409_v45 = vmax.f32 %v4377_v21, 0.0 }
 0x536   : > { %v4441_v2 = vadd.f32 %v4409_v45, %v8600_v60  ;;  %v7867_v45 = vpop.f32.mrf.mxu2  ;;  %v4171_v60 = vld [vmem:[#allocation2 + $0x1a9] sm:$0xff] }
 0x537   : > { %v4269_v32 = vpop.f32.mrf.mxu1  ;;  %v4533_v25 = vld [vmem:[#allocation2 + $0x48] ss:$2 sm:$0xff]  ;;  %v4513_v15 = vld [vmem:[#allocation2 + $0x47] ss:$2 sm:$0xff] }
 0x538   : > { %4473 = vst.msk [vmem:[#allocation2 + $0x68] sm:$0xff] %vm278_vm1, %v4441_v2  ;;  %v4342_v61 = vadd.f32 %v4269_v32, %v7725_v16  ;;  %v4546_v33 = vpack.c.bf16 %v4533_v25, %v4531_v20  ;;  %v4526_v29 = vpack.c.bf16 %v4513_v15, %v4511_v58  ;;  %v4172_v2 = vld [vmem:[#allocation2 + $0x1b1] sm:$0xff]  ;;  %v7870_v25 = vpop.f32.mrf.mxu3 }
 0x539   : > { %v4192_v58 = vpack.c.bf16 %v4172_v2, %v4171_v60 }
 0x53a   : > { %v4378_v23 = vadd.f32 %v7810_v55, %v4342_v61  ;;  %5592 = vmatmul.msk.bf16.vlgmr.msrb.gmra.mxu2 %vm278_vm1, %v4546_v33  ;;  %5596 = vmatmul.msk.bf16.vlgmr.msrb.gmra.mxu3 %vm278_vm1, %v4526_v29  ;;  %v7876_v38 = vpop.f32.mrf.mxu0  ;;  %v8602_v33 = vld [vmem:[#allocation18_spill] sm:$0xff] }
 0x53c   : > { %v4410_v21 = vmax.f32 %v4378_v23, 0.0  ;;  %v3685_v23 = vadd.f32 %v7746_v41, %v7607_v36  ;;  %v3686_v41 = vadd.f32 %v7757_v22, %v7619_v11  ;;  %v5071_v22 = vld [vmem:[#allocation2 + $0x49] ss:$2 sm:$0xff] }
 0x53e   : > { %v4442_v16 = vadd.f32 %v4410_v21, %v8601_v10  ;;  %v7879_v42 = vpop.f32.mrf.mxu2  ;;  %v3905_v2 = vadd.f32 %v7751_v46, %v3685_v23 }
 0x53f   : > { %v4272_v15 = vpop.f32.mrf.mxu1 }
 0x540   : > { %4474 = vst.msk [vmem:[#allocation2 + $0x70] sm:$0xff] %vm278_vm1, %v4442_v16  ;;  %v4343_v32 = vadd.f32 %v4272_v15, %v7732_v52  ;;  %v7885_v21 = vpop.f32.mrf.mxu3  ;;  %v4173_v15 = vld [vmem:[#allocation2 + $0x1c9] sm:$0xff] }
 0x542   : > { %v4379_v20 = vadd.f32 %v7810_v55, %v4343_v32  ;;  %5587 = vmatmul.msk.bf16.gmra.mxu1 %vm278_vm1, %v4192_v58  ;;  %v4174_v32 = vld [vmem:[#allocation2 + $0x1d1] sm:$0xff]  ;;  %v4125_v58 = vadd.f32 %v7823_v0, %v3905_v2  ;;  %v3906_v0 = vadd.f32 %v7760_v17, %v3686_v41 }
 0x543   : > { %v8604_v2 = vld [vmem:[#allocation20_spill] sm:$0xff] }
 0x544   : > { %v4411_v61 = vmax.f32 %v4379_v20, 0.0  ;;  %v7890_v20 = vpop.f32.mrf.mxu0 }
 0x546   : > { %v4443_v29 = vadd.f32 %v4411_v61, %v8602_v33  ;;  %v8603_v61 = vld [vmem:[#allocation19_spill] sm:$0xff] }
 0x547   : > { %v4274_v10 = vpop.f32.mrf.mxu1 }
 0x548   : > { %4475 = vst.msk [vmem:[#allocation2 + $0x88] sm:$0xff] %vm278_vm1, %v4443_v29  ;;  %v4344_v52 = vadd.f32 %v4274_v10, %v7739_v14  ;;  %v4193_v29 = vpack.c.bf16 %v4174_v32, %v4173_v15  ;;  %v7896_v10 = vpop.f32.mrf.mxu2  ;;  %v7900_v23 = vpop.f32.mrf.mxu3  ;;  %v3687_v15 = vadd.f32 %v7767_v47, %v7627_v49  ;;  %v8605_v47 = vld [vmem:[#allocation21_spill] sm:$0xff] }
 0x54a   : > { %v4380_v60 = vadd.f32 %v7810_v55, %v4344_v52 }
 0x54c   : > { %v4412_v16 = vmax.f32 %v4380_v60, 0.0  ;;  %v4126_v60 = vadd.f32 %v7834_v8, %v3906_v0  ;;  %v7907_v32 = vpop.f32.mrf.mxu0  ;;  %v3907_v8 = vadd.f32 %v7769_v30, %v3687_v15 }
 0x54e   : > { %v4444_v33 = vadd.f32 %v4412_v16, %v8603_v61  ;;  %v4127_v49 = vadd.f32 %v7845_v56, %v3907_v8 }
 0x54f   : > { %v4277_v36 = vpop.f32.mrf.mxu1 }
 0x550   : > { %4476 = vst.msk [vmem:[#allocation2 + $0x90] sm:$0xff] %vm278_vm1, %v4444_v33  ;;  %v4345_v14 = vadd.f32 %v4277_v36, %v4125_v58  ;;  %v7912_v17 = vpop.f32.mrf.mxu2 }
 0x552   : > { %v4381_v46 = vadd.f32 %v7810_v55, %v4345_v14  ;;  %5588 = vmatmul.msk.bf16.gmra.mxu1 %vm278_vm1, %v4193_v29  ;;  %v7915_v14 = vpop.f32.mrf.mxu3  ;;  %v4175_v29 = vld [vmem:[#allocation2 + $0x1e9] sm:$0xff] }
 0x554   : > { %v4413_v52 = vmax.f32 %v4381_v46, 0.0  ;;  %v4176_v46 = vld [vmem:[#allocation2 + $0x1f1] sm:$0xff] }
 0x556   : > { %v4445_v16 = vadd.f32 %v4413_v52, %v8604_v2 }
 0x557   : > { %v4279_v11 = vpop.f32.mrf.mxu1  ;;  %v5073_v61 = vld [vmem:[#allocation2 + $0x89] ss:$2 sm:$0xff] }
 0x558   : > { %4477 = vst.msk [vmem:[#allocation2 + $0xa8] sm:$0xff] %vm278_vm1, %v4445_v16  ;;  %v4346_v58 = vadd.f32 %v4279_v11, %v4126_v60  ;;  %v5086_v33 = vpack.c.bf16 %v5073_v61, %v5071_v22  ;;  %v3688_v60 = vadd.f32 %v7776_v59, %v7639_v1  ;;  %v4194_v16 = vpack.c.bf16 %v4176_v46, %v4175_v29  ;;  %v7922_v11 = vpop.f32.mrf.mxu0  ;;  %v7927_v56 = vpop.f32.mrf.mxu2 }
 0x55a   : > { %v4382_v36 = vadd.f32 %v7810_v55, %v4346_v58  ;;  %5624 = vmatmul.msk.bf16.vlgmr.msrb.gmra.mxu0 %vm278_vm1, %v5086_v33  ;;  %v3908_v22 = vadd.f32 %v7778_v4, %v3688_v60  ;;  %v8606_v58 = vld [vmem:[#allocation22_spill] sm:$0xff]  ;;  %v7931_v1 = vpop.f32.mrf.mxu3  ;;  %v3690_v60 = vadd.f32 %v7795_v62, %v7658_v40 }
 0x55c   : > { %v4414_v41 = vmax.f32 %v4382_v36, 0.0  ;;  %v4128_v15 = vadd.f32 %v7862_v24, %v3908_v22  ;;  %v3689_v36 = vadd.f32 %v7784_v44, %v7646_v28  ;;  %v8607_v24 = vld [vmem:[#allocation23_spill] sm:$0xff]  ;;  %v8608_v22 = vld [vmem:[#allocation24_spill] sm:$0xff] }
 0x55e   : > { %v4446_v0 = vadd.f32 %v4414_v41, %v8605_v47  ;;  %v3909_v4 = vadd.f32 %v7789_v51, %v3689_v36  ;;  %v3910_v51 = vadd.f32 %v7798_v13, %v3690_v60 }
 0x55f   : > { %v4282_v52 = vpop.f32.mrf.mxu1 }
 0x560   : > { %4478 = vst.msk [vmem:[#allocation2 + $0xb0] sm:$0xff] %vm278_vm1, %v4446_v0  ;;  %v4347_v2 = vadd.f32 %v4282_v52, %v4127_v49  ;;  %v4077_v29 = vpop.f32.mrf.mxu0  ;;  %v4129_v49 = vadd.f32 %v7876_v38, %v3909_v4  ;;  %v7940_v0 = vpop.f32.mrf.mxu2  ;;  %v4179_v4 = vld [vmem:[#allocation2 + $0x229] sm:$0xff] }
 0x562   : > { %v4383_v30 = vadd.f32 %v7810_v55, %v4347_v2  ;;  %5589 = vmatmul.msk.bf16.gmra.mxu1 %vm278_vm1, %v4194_v16  ;;  %v7945_v44 = vpop.f32.mrf.mxu3  ;;  %v4130_v16 = vadd.f32 %v7890_v20, %v3910_v51 }
 0x564   : > { %v4415_v61 = vmax.f32 %v4383_v30, 0.0 }
 0x566   : > { %v4447_v33 = vadd.f32 %v4415_v61, %v8606_v58  ;;  %v4515_v58 = vld [vmem:[#allocation2 + $0x87] ss:$2 sm:$0xff] }
 0x567   : > { %v4284_v59 = vpop.f32.mrf.mxu1 }
 0x568   : > { %4479 = vst.msk [vmem:[#allocation2 + $0xc8] sm:$0xff] %vm278_vm1, %v4447_v33  ;;  %v4348_v8 = vadd.f32 %v4284_v59, %v4128_v15  ;;  %v4079_v30 = vpop.f32.mrf.mxu0  ;;  %v4535_v15 = vld [vmem:[#allocation2 + $0x88] ss:$2 sm:$0xff]  ;;  %v3691_v59 = vadd.f32 %v7803_v37, %v7665_v53  ;;  %v7956_v13 = vpop.f32.mrf.mxu2 }
 0x56a   : > { %v4384_v41 = vadd.f32 %v7810_v55, %v4348_v8 }
 0x56c   : > { %v4416_v46 = vmax.f32 %v4384_v41, 0.0  ;;  %v7961_v41 = vpop.f32.mrf.mxu3 }
 0x56e   : > { %v4448_v47 = vadd.f32 %v4416_v46, %v8607_v24  ;;  %v4180_v46 = vld [vmem:[#allocation2 + $0x231] sm:$0xff] }
 0x56f   : > { %v4287_v52 = vpop.f32.mrf.mxu1  ;;  %v8609_v24 = vld [vmem:[#allocation25_spill] sm:$0xff] }
 0x570   : > { %4480 = vst.msk [vmem:[#allocation2 + $0xd0] sm:$0xff] %vm278_vm1, %v4448_v47  ;;  %v4349_v28 = vadd.f32 %v4287_v52, %v4129_v49  ;;  %v3911_v49 = vadd.f32 %v7805_v50, %v3691_v59  ;;  %v4196_v52 = vpack.c.bf16 %v4180_v46, %v4179_v4 }
 0x572   : > { %v4385_v2 = vadd.f32 %v7810_v55, %v4349_v28  ;;  %5590 = vmatmul.msk.bf16.gmra.mxu1 %vm278_vm1, %v7669_v5  ;;  %v4131_v37 = vadd.f32 %v7907_v32, %v3911_v49  ;;  %v3692_v28 = vadd.f32 %v7815_v39, %v7677_v27  ;;  %v3693_v39 = vadd.f32 %v7826_v26, %v7684_v63 }
 0x573   : > { %v3694_v63 = vadd.f32 %v7839_v18, %v7692_v57  ;;  %v3695_v57 = vadd.f32 %v7851_v7, %v7699_v54  ;;  %v3696_v54 = vadd.f32 %v7867_v45, %v7707_v3 }
 0x574   : > { %v4417_v38 = vmax.f32 %v4385_v2, 0.0  ;;  %v4082_v2 = vpop.f32.mrf.mxu0  ;;  %v3912_v50 = vadd.f32 %v7818_v43, %v3692_v28  ;;  %v3913_v59 = vadd.f32 %v7830_v35, %v3693_v39 }
 0x575   : > { %v3914_v49 = vadd.f32 %v7842_v19, %v3694_v63 }
 0x576   : > { %v4449_v61 = vadd.f32 %v4417_v38, %v8608_v22  ;;  %v7974_v22 = vpop.f32.mrf.mxu3 }
 0x577   : > { %v4289_v40 = vpop.f32.mrf.mxu1  ;;  %v4537_v62 = vld [vmem:[#allocation2 + $0xc8] ss:$2 sm:$0xff]  ;;  %v4517_v33 = vld [vmem:[#allocation2 + $0xc7] ss:$2 sm:$0xff] }
 0x578   : > { %4481 = vst.msk [vmem:[#allocation2 + $0xe8] sm:$0xff] %vm278_vm1, %v4449_v61  ;;  %v4350_v36 = vadd.f32 %v4289_v40, %v4130_v16  ;;  %v4547_v5 = vpack.c.bf16 %v4537_v62, %v4535_v15  ;;  %v4527_v8 = vpack.c.bf16 %v4517_v33, %v4515_v58  ;;  %v7971_v16 = vpop.f32.mrf.mxu2  ;;  %v4132_v61 = vadd.f32 %v7922_v11, %v3912_v50  ;;  %v8610_v15 = vld [vmem:[#allocation26_spill] sm:$0xff] }
 0x57a   : > { %v4386_v20 = vadd.f32 %v7810_v55, %v4350_v36  ;;  %5593 = vmatmul.msk.bf16.gmra.mxu2 %vm278_vm1, %v4547_v5  ;;  %5597 = vmatmul.msk.bf16.gmra.mxu3 %vm278_vm1, %v4527_v8  ;;  %v4133_v5 = vadd.f32 %v4077_v29, %v3913_v59  ;;  %v8611_v8 = vld [vmem:[#allocation27_spill] sm:$0xff] }
 0x57c   : > { %v4418_v53 = vmax.f32 %v4386_v20, 0.0  ;;  %v4084_v58 = vpop.f32.mrf.mxu0 }
 0x57e   : > { %v4450_v47 = vadd.f32 %v4418_v53, %v8609_v24  ;;  %v7986_v20 = vpop.f32.mrf.mxu3  ;;  %v8612_v24 = vld [vmem:[#allocation49_spill] sm:$0xff] }
 0x57f   : > { %v4292_v60 = vpop.f32.mrf.mxu1 }
 0x580   : > { %4482 = vst.msk [vmem:[#allocation2 + $0xf0] sm:$0xff] %vm278_vm1, %v4450_v47  ;;  %v4351_v51 = vadd.f32 %v4292_v60, %v4131_v37  ;;  %v7983_v36 = vpop.f32.mrf.mxu2  ;;  %v4134_v37 = vadd.f32 %v4079_v30, %v3914_v49  ;;  %v5075_v60 = vld [vmem:[#allocation2 + $0xc9] ss:$2 sm:$0xff]  ;;  %v3915_v30 = vadd.f32 %v7853_v12, %v3695_v57  ;;  %v3916_v12 = vadd.f32 %v7870_v25, %v3696_v54  ;;  %v8615_v49 = vld [vmem:[#allocation38_spill] sm:$0xff] }
 0x582   : > { %v4387_v38 = vadd.f32 %v7810_v55, %v4351_v51  ;;  %5591 = vmatmul.msk.bf16.gmra.mxu1 %vm278_vm1, %v4196_v52 }
 0x584   : > { %v4419_v32 = vmax.f32 %v4387_v38, 0.0  ;;  %v4087_v35 = vpop.f32.mrf.mxu0 }
 0x586   : > { %v4451_v40 = vadd.f32 %v4419_v32, %v8610_v15  ;;  %v7999_v38 = vpop.f32.mrf.mxu3  ;;  %v4135_v32 = vadd.f32 %v4082_v2, %v3915_v30  ;;  %v8613_v15 = vld [vmem:[#allocation40_spill] sm:$0xff]  ;;  %v4136_v2 = vadd.f32 %v4084_v58, %v3916_v12 }
 0x587   : > { %v4294_v27 = vpop.f32.mrf.mxu1 }
 0x588   : > { %4483 = vst.msk [vmem:[#allocation2 + $0x108] sm:$0xff] %vm278_vm1, %v4451_v40  ;;  %v4352_v62 = vadd.f32 %v4294_v27, %v4132_v61  ;;  %v7994_v47 = vpop.f32.mrf.mxu2 }
 0x58a   : > { %v4388_v33 = vadd.f32 %v7810_v55, %v4352_v62 }
 0x58c   : > { %v4420_v43 = vmax.f32 %v4388_v33, 0.0  ;;  %v4089_v61 = vpop.f32.mrf.mxu0 }
 0x58e   : > { %v4452_v11 = vadd.f32 %v4420_v43, %v8611_v8  ;;  %v8011_v33 = vpop.f32.mrf.mxu3  ;;  %v8614_v43 = vld [vmem:[#allocation28_spill] sm:$0xff] }
 0x58f   : > { %v4297_v4 = vpop.f32.mrf.mxu1 }
 0x590   : > { %4484 = vst.msk [vmem:[#allocation2 + $0x110] sm:$0xff] %vm278_vm1, %v4452_v11  ;;  %v4353_v26 = vadd.f32 %v4297_v4, %v4133_v5  ;;  %v8008_v39 = vpop.f32.mrf.mxu2  ;;  %v3697_v11 = vadd.f32 %v7879_v42, %v7722_v9  ;;  %v3698_v9 = vadd.f32 %v7896_v10, %v7729_v48 }
 0x592   : > { %v4389_v46 = vadd.f32 %v7810_v55, %v4353_v26  ;;  %v3917_v25 = vadd.f32 %v7885_v21, %v3697_v11  ;;  %v3918_v48 = vadd.f32 %v7900_v23, %v3698_v9  ;;  %v3701_v9 = vadd.f32 %v7940_v0, %v7749_v34 }
 0x594   : > { %v4421_v53 = vmax.f32 %v4389_v46, 0.0  ;;  %v4092_v3 = vpop.f32.mrf.mxu0  ;;  %v4137_v58 = vadd.f32 %v4087_v35, %v3917_v25 }
 0x596   : > { %v4453_v29 = vadd.f32 %v4421_v53, %v8612_v24  ;;  %v8021_v26 = vpop.f32.mrf.mxu3  ;;  %v4503_v24 = vld [vmem:[%s8292_s5 + $0x4] sm:$0x3] }
 0x597   : > { %v4299_v52 = vpop.f32.mrf.mxu1  ;;  %v5077_v28 = vld [vmem:[#allocation2 + $0x109] ss:$2 sm:$0xff]  ;;  %v4671_v21 = vsel %vm538_vm0, %v4503_v24, 0  ;;  %v4539_v30 = vld [vmem:[#allocation2 + $0x108] ss:$2 sm:$0xff] }
 0x598   : > { %4485 = vst.msk [vmem:[#allocation2 + $0x128] sm:$0xff] %vm278_vm1, %v4453_v29  ;;  %v4354_v18 = vadd.f32 %v4299_v52, %v4134_v37  ;;  %v5087_v51 = vpack.c.bf16 %v5077_v28, %v5075_v60  ;;  %v8019_v63 = vpop.f32.mrf.mxu2  ;;  %v4504_v29 = vld [vmem:[%s8292_s5 + $0x6] sm:$0x3]  ;;  %4680 = vmatpush.bf16.msra.mxu2 %v4671_v21 }
 0x599   : > { %v4743_v35 = vsel %vm538_vm0, %v4504_v29, 0  ;;  %v8619_v21 = vld [vmem:[#allocation30_spill] sm:$0xff] }
 0x59a   : > { %v4390_v19 = vadd.f32 %v7810_v55, %v4354_v18  ;;  %5625 = vmatmul.msk.bf16.gmra.mxu0 %vm278_vm1, %v5087_v51  ;;  %4752 = vmatpush.bf16.msra.mxu3 %v4743_v35  ;;  %v4138_v18 = vadd.f32 %v4089_v61, %v3918_v48  ;;  %v8616_v51 = vld [vmem:[#allocation29_spill] sm:$0xff] }
 0x59c   : > { %v4422_v50 = vmax.f32 %v4390_v19, 0.0  ;;  %v4094_v52 = vpop.f32.mrf.mxu0 }
 0x59e   : > { %v4454_v40 = vadd.f32 %v4422_v50, %v8613_v15  ;;  %v8040_v57 = vpop.f32.mrf.mxu3  ;;  %v4519_v15 = vld [vmem:[#allocation2 + $0x107] ss:$2 sm:$0xff] }
 0x59f   : > { %v4302_v27 = vpop.f32.mrf.mxu1 }
 0x5a0   : > { %4486 = vst.msk [vmem:[#allocation2 + $0x130] sm:$0xff] %vm278_vm1, %v4454_v40  ;;  %v4355_v7 = vadd.f32 %v4302_v27, %v4135_v32  ;;  %v8038_v28 = vpop.f32.mrf.mxu2  ;;  %v3699_v27 = vadd.f32 %v7912_v17, %v7736_v6 }
 0x5a2   : > { %v4391_v62 = vadd.f32 %v7810_v55, %v4355_v7  ;;  %v3919_v61 = vadd.f32 %v7915_v14, %v3699_v27 }
 0x5a4   : > { %v4423_v59 = vmax.f32 %v4391_v62, 0.0  ;;  %v4097_v12 = vpop.f32.mrf.mxu0 }
 0x5a6   : > { %v4455_v5 = vadd.f32 %v4423_v59, %v8614_v43 }
 0x5a7   : > { %v4304_v8 = vpop.f32.mrf.mxu1 }
 0x5a8   : > { %4487 = vst.msk [vmem:[#allocation2 + $0x148] sm:$0xff] %vm278_vm1, %v4455_v5  ;;  %v4356_v45 = vadd.f32 %v4304_v8, %v4136_v2  ;;  %v4139_v5 = vadd.f32 %v4092_v3, %v3919_v61  ;;  %v8617_v8 = vld [vmem:[#allocation36_spill] sm:$0xff]  ;;  %v8623_v61 = vld [vmem:[#allocation53_spill] sm:$0xff] }
 0x5aa   : > { %v4392_v4 = vadd.f32 %v7810_v55, %v4356_v45  ;;  %v3700_v45 = vadd.f32 %v7927_v56, %v7743_v31  ;;  %v3921_v56 = vadd.f32 %v7945_v44, %v3701_v9 }
 0x5ac   : > { %v4424_v46 = vmax.f32 %v4392_v4, 0.0  ;;  %v3920_v14 = vadd.f32 %v7931_v1, %v3700_v45  ;;  %v4099_v3 = vpop.f32.mrf.mxu0  ;;  %v4141_v29 = vadd.f32 %v4097_v12, %v3921_v56 }
 0x5ae   : > { %v4456_v53 = vadd.f32 %v4424_v46, %v8615_v49  ;;  %v8618_v49 = vld [vmem:[#allocation39_spill] sm:$0xff] }
 0x5af   : > { %v4307_v37 = vpop.f32.mrf.mxu1 }
 0x5b0   : > { %4488 = vst.msk [vmem:[#allocation2 + $0x150] sm:$0xff] %vm278_vm1, %v4456_v53  ;;  %v4357_v42 = vadd.f32 %v4307_v37, %v4137_v58  ;;  %v4140_v58 = vadd.f32 %v4094_v52, %v3920_v14  ;;  %v8620_v52 = vld [vmem:[#allocation7_spill] sm:$0xff]  ;;  %v8626_v14 = vld [vmem:[#allocation66_spill] sm:$0xff] }
 0x5b2   : > { %v4393_v60 = vadd.f32 %v7810_v55, %v4357_v42 }
 0x5b4   : > { %v4425_v10 = vmax.f32 %v4393_v60, 0.0  ;;  %v3702_v60 = vadd.f32 %v7956_v13, %v8620_v52 }
 0x5b6   : > { %v4457_v19 = vadd.f32 %v4425_v10, %v8616_v51  ;;  %v4102_v10 = vpop.f32.mrf.mxu0  ;;  %v3922_v0 = vadd.f32 %v7961_v41, %v3702_v60 }
 0x5b7   : > { %v4309_v50 = vpop.f32.mrf.mxu1  ;;  %v4541_v32 = vld [vmem:[#allocation2 + $0x148] ss:$2 sm:$0xff]  ;;  %v4521_v40 = vld [vmem:[#allocation2 + $0x147] ss:$2 sm:$0xff] }
 0x5b8   : > { %4489 = vst.msk [vmem:[#allocation2 + $0x168] sm:$0xff] %vm278_vm1, %v4457_v19  ;;  %v4358_v54 = vadd.f32 %v4309_v50, %v4138_v18  ;;  %v4548_v23 = vpack.c.bf16 %v4541_v32, %v4539_v30  ;;  %v4528_v7 = vpack.c.bf16 %v4521_v40, %v4519_v15  ;;  %v4142_v51 = vadd.f32 %v4099_v3, %v3922_v0  ;;  %v8621_v19 = vld [vmem:[#allocation31_spill] sm:$0xff]  ;;  %v8622_v15 = vld [vmem:[#allocation41_spill] sm:$0xff] }
 0x5b9   : > { %v5079_v50 = vld [vmem:[#allocation2 + $0x149] ss:$2 sm:$0xff]  ;;  %v3703_v40 = vadd.f32 %v7971_v16, %v8622_v15 }
 0x5ba   : > { %v4394_v62 = vadd.f32 %v7810_v55, %v4358_v54  ;;  %5594 = vmatmul.msk.bf16.gmra.mxu2 %vm278_vm1, %v4548_v23  ;;  %5598 = vmatmul.msk.bf16.gmra.mxu3 %vm278_vm1, %v4528_v7 }
 0x5bb   : > { %v3923_v41 = vadd.f32 %v7974_v22, %v3703_v40 }
 0x5bc   : > { %v4426_v59 = vmax.f32 %v4394_v62, 0.0 }
 0x5bd   : > { %v4574_v2 = vpop.f32.mrf.mxu2  ;;  %v4618_v43 = vpop.f32.mrf.mxu3  ;;  %v4143_v62 = vadd.f32 %v4102_v10, %v3923_v41  ;;  %v8629_v10 = vld [vmem:[#allocation56_spill] sm:$0xff] }
 0x5be   : > { %v4458_v6 = vadd.f32 %v4426_v59, %v8617_v8  ;;  %v8051_v17 = vadd.f32 %v4618_v43, %v4574_v2  ;;  %v4104_v23 = vpop.f32.mrf.mxu0  ;;  %v8624_v2 = vld [vmem:[#allocation59_spill] sm:$0xff] }
 0x5bf   : > { %v4312_v11 = vpop.f32.mrf.mxu1  ;;  %v3704_v43 = vadd.f32 %v7983_v36, %v8624_v2 }
 0x5c0   : > { %4490 = vst.msk [vmem:[#allocation2 + $0x170] sm:$0xff] %vm278_vm1, %v4458_v6  ;;  %v4359_v4 = vadd.f32 %v4312_v11, %v4139_v5 }
 0x5c1   : > { %v3924_v8 = vadd.f32 %v7986_v20, %v3704_v43 }
 0x5c2   : > { %v4395_v25 = vadd.f32 %v7810_v55, %v4359_v4  ;;  %v8625_v4 = vld [vmem:[#allocation54_spill] sm:$0xff] }
 0x5c3   : > { %v4144_v45 = vadd.f32 %v4104_v23, %v3924_v8 }
 0x5c4   : > { %v4427_v46 = vmax.f32 %v4395_v25, 0.0 }
 0x5c5   : > { %v8103_v52 = vpop.f32.mrf.mxu2  ;;  %v8105_v60 = vpop.f32.mrf.mxu3 }
 0x5c6   : > { %v4459_v53 = vadd.f32 %v4427_v46, %v8618_v49  ;;  %v4107_v11 = vpop.f32.mrf.mxu0  ;;  %v3705_v46 = vadd.f32 %v7994_v47, %v8626_v14  ;;  %v4505_v47 = vld [vmem:[%s8292_s5 + $0x8] sm:$0x3] }
 0x5c7   : > { %v4314_v37 = vpop.f32.mrf.mxu1 }
 0x5c8   : > { %4491 = vst.msk [vmem:[#allocation2 + $0x188] sm:$0xff] %vm278_vm1, %v4459_v53  ;;  %v4360_v42 = vadd.f32 %v4314_v37, %v4140_v58  ;;  %v3925_v49 = vadd.f32 %v7999_v38, %v3705_v46  ;;  %v8627_v37 = vld [vmem:[#allocation47_spill] sm:$0xff] }
 0x5c9   : > { %v4506_v38 = vld [vmem:[%s8292_s5 + $0xa] sm:$0x3] }
 0x5ca   : > { %v4396_v31 = vadd.f32 %v7810_v55, %v4360_v42  ;;  %v4145_v3 = vadd.f32 %v4107_v11, %v3925_v49  ;;  %v4641_v11 = vld [vmem:[#allocation2 + $0x49] ss:$2 sm:$0xff] }
 0x5cb   : > { %v4711_v46 = vld [vmem:[#allocation2 + $0x27] ss:$2 sm:$0xff] }
 0x5cc   : > { %v4428_v24 = vmax.f32 %v4396_v31, 0.0  ;;  %v8628_v31 = vld [vmem:[#allocation8_spill] sm:$0xff] }
 0x5cd   : > { %v3706_v56 = vadd.f32 %v8008_v39, %v8628_v31 }
 0x5ce   : > { %v4460_v1 = vadd.f32 %v4428_v24, %v8619_v21  ;;  %v4109_v9 = vpop.f32.mrf.mxu0  ;;  %v4887_v21 = vsel %vm538_vm0, %v4506_v38, 0 }
 0x5cf   : > { %v4317_v35 = vpop.f32.mrf.mxu1  ;;  %4896 = vmatpush.bf16.msrb.mxu3 %v4887_v21  ;;  %v3926_v39 = vadd.f32 %v8011_v33, %v3706_v56  ;;  %v4647_v21 = vld [vmem:[#allocation2 + $0x109] ss:$2 sm:$0xff] }
 0x5d0   : > { %4492 = vst.msk [vmem:[#allocation2 + $0x190] sm:$0xff] %vm278_vm1, %v4460_v1  ;;  %v4361_v48 = vadd.f32 %v4317_v35, %v4141_v29  ;;  %v4815_v29 = vsel %vm538_vm0, %v4505_v47, 0 }
 0x5d1   : > { %4824 = vmatpush.bf16.msrb.mxu2 %v4815_v29  ;;  %v4721_v29 = vld [vmem:[#allocation2 + $0x167] ss:$2 sm:$0xff] }
 0x5d2   : > { %v4397_v34 = vadd.f32 %v7810_v55, %v4361_v48  ;;  %v4146_v48 = vadd.f32 %v4109_v9, %v3926_v39  ;;  %v4643_v9 = vld [vmem:[#allocation2 + $0x89] ss:$2 sm:$0xff] }
 0x5d4   : > { %v4429_v18 = vmax.f32 %v4397_v34, 0.0 }
 0x5d6   : > { %v4461_v44 = vadd.f32 %v4429_v18, %v8621_v19  ;;  %v4112_v40 = vpop.f32.mrf.mxu0 }
 0x5d7   : > { %v4319_v30 = vpop.f32.mrf.mxu1  ;;  %v5081_v32 = vld [vmem:[#allocation2 + $0x189] ss:$2 sm:$0xff]  ;;  %v4543_v0 = vld [vmem:[#allocation2 + $0x188] ss:$2 sm:$0xff] }
 0x5d8   : > { %4493 = vst.msk [vmem:[#allocation2 + $0x1a8] sm:$0xff] %vm278_vm1, %v4461_v44  ;;  %v4362_v13 = vadd.f32 %v4319_v30, %v4142_v51  ;;  %v5088_v27 = vpack.c.bf16 %v5081_v32, %v5079_v50  ;;  %v4523_v19 = vld [vmem:[#allocation2 + $0x187] ss:$2 sm:$0xff]  ;;  %v8630_v30 = vld [vmem:[#allocation61_spill] sm:$0xff] }
 0x5d9   : > { %v3707_v50 = vadd.f32 %v8019_v63, %v8630_v30  ;;  %v4651_v30 = vld [vmem:[#allocation2 + $0x189] ss:$2 sm:$0xff] }
 0x5da   : > { %v4398_v54 = vadd.f32 %v7810_v55, %v4362_v13  ;;  %5626 = vmatmul.msk.bf16.gmra.mxu0 %vm278_vm1, %v5088_v27 }
 0x5db   : > { %v3927_v27 = vadd.f32 %v8021_v26, %v3707_v50 }
 0x5dc   : > { %v4430_v7 = vmax.f32 %v4398_v54, 0.0 }
 0x5de   : > { %v4462_v12 = vadd.f32 %v4430_v7, %v8623_v61  ;;  %v4147_v7 = vadd.f32 %v4112_v40, %v3927_v27  ;;  %v4785_v27 = vld [vmem:[#allocation2 + $0x68] ss:$2 sm:$0xff] }
 0x5df   : > { %v4322_v59 = vpop.f32.mrf.mxu1 }
 0x5e0   : > { %4494 = vst.msk [vmem:[#allocation2 + $0x1b0] sm:$0xff] %vm278_vm1, %v4462_v12  ;;  %v4363_v16 = vadd.f32 %v4322_v59, %v4143_v62  ;;  %v8631_v62 = vld [vmem:[#allocation46_spill] sm:$0xff]  ;;  %v8632_v59 = vld [vmem:[#allocation9_spill] sm:$0xff] }
 0x5e1   : > { %v3708_v2 = vadd.f32 %v8038_v28, %v8632_v59  ;;  %v4787_v59 = vld [vmem:[#allocation2 + $0xa8] ss:$2 sm:$0xff] }
 0x5e2   : > { %v4399_v5 = vadd.f32 %v7810_v55, %v4363_v16 }
 0x5e3   : > { %v3928_v26 = vadd.f32 %v8040_v57, %v3708_v2  ;;  %v4859_v2 = vld [vmem:[#allocation2 + $0xa9] ss:$2 sm:$0xff] }
 0x5e4   : > { %v4431_v6 = vmax.f32 %v4399_v5, 0.0  ;;  %v4114_v5 = vpop.f32.mrf.mxu0 }
 0x5e6   : > { %v4463_v22 = vadd.f32 %v4431_v6, %v8625_v4  ;;  %v4639_v6 = vld [vmem:[#allocation2 + $0x9] ss:$2 sm:$0xff]  ;;  %v4148_v4 = vadd.f32 %v4114_v5, %v3928_v26  ;;  %v4793_v5 = vld [vmem:[#allocation2 + $0x168] ss:$2 sm:$0xff] }
 0x5e7   : > { %v4324_v25 = vpop.f32.mrf.mxu1  ;;  %v4723_v50 = vld [vmem:[#allocation2 + $0x1a7] ss:$2 sm:$0xff] }
 0x5e8   : > { %4495 = vst.msk [vmem:[#allocation2 + $0x1c8] sm:$0xff] %vm278_vm1, %v4463_v22  ;;  %v4364_v58 = vadd.f32 %v4324_v25, %v4144_v45  ;;  %v4713_v45 = vld [vmem:[#allocation2 + $0x67] ss:$2 sm:$0xff] }
 0x5e9   : > { %v8633_v22 = vld [vmem:[#allocation50_spill] sm:$0xff]  ;;  %v4865_v26 = vld [vmem:[#allocation2 + $0x169] ss:$2 sm:$0xff] }
 0x5ea   : > { %v4400_v36 = vadd.f32 %v7810_v55, %v4364_v58  ;;  %v4654_v58 = vpack.c.bf16 %v4641_v11, %v4639_v6  ;;  %v4863_v6 = vld [vmem:[#allocation2 + $0x129] ss:$2 sm:$0xff] }
 0x5ec   : > { %v4432_v53 = vmax.f32 %v4400_v36, 0.0  ;;  %v4726_v36 = vpack.c.bf16 %v4713_v45, %v4711_v46  ;;  %v4872_v45 = vpack.c.bf16 %v4865_v26, %v4863_v6  ;;  %v4795_v46 = vld [vmem:[#allocation2 + $0x1a8] ss:$2 sm:$0xff] }
 0x5ee   : > { %v4464_v20 = vadd.f32 %v4432_v53, %v8627_v37  ;;  %v8634_v53 = vld [vmem:[#allocation52_spill] sm:$0xff] }
 0x5ef   : > { %v4327_v42 = vpop.f32.mrf.mxu1  ;;  %v4645_v37 = vld [vmem:[#allocation2 + $0xc9] ss:$2 sm:$0xff] }
 0x5f0   : > { %4496 = vst.msk [vmem:[#allocation2 + $0x1d0] sm:$0xff] %vm278_vm1, %v4464_v20  ;;  %v4365_v24 = vadd.f32 %v4327_v42, %v4145_v3  ;;  %v4717_v20 = vld [vmem:[#allocation2 + $0xe7] ss:$2 sm:$0xff] }
 0x5f1   : > { %v4715_v42 = vld [vmem:[#allocation2 + $0xa7] ss:$2 sm:$0xff] }
 0x5f2   : > { %v4401_v1 = vadd.f32 %v7810_v55, %v4365_v24  ;;  %v4655_v24 = vpack.c.bf16 %v4645_v37, %v4643_v9  ;;  %v4727_v47 = vpack.c.bf16 %v4717_v20, %v4715_v42  ;;  %v4929_v20 = vld [vmem:[#allocation2 + $0x87] ss:$2 sm:$0xff]  ;;  %v5001_v9 = vld [vmem:[#allocation2 + $0x88] ss:$2 sm:$0xff] }
 0x5f4   : > { %v4433_v35 = vmax.f32 %v4401_v1, 0.0  ;;  %v4719_v1 = vld [vmem:[#allocation2 + $0x127] ss:$2 sm:$0xff] }
 0x5f6   : > { %v4465_v34 = vadd.f32 %v4433_v35, %v8629_v10  ;;  %v4728_v35 = vpack.c.bf16 %v4721_v29, %v4719_v1  ;;  %v4508_v10 = vld [vmem:[%s8292_s5 + $0xe] sm:$0x3]  ;;  %v4621_v1 = vadd.f32 %v8105_v60, %v8103_v52 }
 0x5f7   : > { %v4329_v18 = vpop.f32.mrf.mxu1  ;;  %v4545_v51 = vld [vmem:[#allocation2 + $0x1c8] ss:$2 sm:$0xff]  ;;  %v4525_v44 = vld [vmem:[#allocation2 + $0x1c7] ss:$2 sm:$0xff] }
 0x5f8   : > { %4497 = vst.msk [vmem:[#allocation2 + $0x1e8] sm:$0xff] %vm278_vm1, %v4465_v34  ;;  %v4366_v32 = vadd.f32 %v4329_v18, %v4146_v48  ;;  %v4549_v33 = vpack.c.bf16 %v4545_v51, %v4543_v0  ;;  %v4529_v15 = vpack.c.bf16 %v4525_v44, %v4523_v19  ;;  %v5083_v31 = vld [vmem:[#allocation2 + $0x1c9] ss:$2 sm:$0xff]  ;;  %v5031_v0 = vsel %vm538_vm0, %v4508_v10, 0  ;;  %v5005_v10 = vld [vmem:[#allocation2 + $0x108] ss:$2 sm:$0xff] }
 0x5f9   : > { %v4507_v48 = vld [vmem:[%s8292_s5 + $0xc] sm:$0x3] }
 0x5fa   : > { %v4402_v13 = vadd.f32 %v7810_v55, %v4366_v32  ;;  %5595 = vmatmul.msk.bf16.gmra.mxu2 %vm278_vm1, %v4549_v33  ;;  %5599 = vmatmul.msk.bf16.gmra.mxu3 %vm278_vm1, %v4529_v15  ;;  %v4959_v34 = vsel %vm538_vm0, %v4507_v48, 0  ;;  %v4653_v19 = vld [vmem:[#allocation2 + $0x1c9] ss:$2 sm:$0xff] }
 0x5fb   : > { %v4657_v32 = vpack.c.bf16 %v4653_v19, %v4651_v30  ;;  %v4933_v48 = vld [vmem:[#allocation2 + $0x107] ss:$2 sm:$0xff]  ;;  %v5003_v19 = vld [vmem:[#allocation2 + $0xc8] ss:$2 sm:$0xff] }
 0x5fc   : > { %v4434_v54 = vmax.f32 %v4402_v13, 0.0  ;;  %v4939_v6 = vld [vmem:[#allocation2 + $0x1c7] ss:$2 sm:$0xff] }
 0x5fd   : > { %v4579_v23 = vpop.f32.mrf.mxu2  ;;  %v4623_v41 = vpop.f32.mrf.mxu3 }
 0x5fe   : > { %v4466_v63 = vadd.f32 %v4434_v54, %v8631_v62  ;;  %v8116_v61 = vadd.f32 %v4623_v41, %v4579_v23  ;;  %v4857_v54 = vld [vmem:[#allocation2 + $0x69] ss:$2 sm:$0xff]  ;;  %v4783_v23 = vld [vmem:[#allocation2 + $0x28] ss:$2 sm:$0xff] }
 0x5ff   : > { %v4332_v12 = vpop.f32.mrf.mxu1  ;;  %v4855_v41 = vld [vmem:[#allocation2 + $0x29] ss:$2 sm:$0xff] }
 0x600   : > { %4498 = vst.msk [vmem:[#allocation2 + $0x1f0] sm:$0xff] %vm278_vm1, %v4466_v63  ;;  %v4367_v43 = vadd.f32 %v4332_v12, %v4147_v7  ;;  %v4798_v7 = vpack.c.bf16 %v4785_v27, %v4783_v23  ;;  %v4870_v62 = vpack.c.bf16 %v4857_v54, %v4855_v41  ;;  %v4789_v63 = vld [vmem:[#allocation2 + $0xe8] ss:$2 sm:$0xff]  ;;  %v4861_v12 = vld [vmem:[#allocation2 + $0xe9] ss:$2 sm:$0xff] }
 0x601   : > { %v4937_v27 = vld [vmem:[#allocation2 + $0x187] ss:$2 sm:$0xff]  ;;  %v5009_v54 = vld [vmem:[#allocation2 + $0x188] ss:$2 sm:$0xff] }
 0x602   : > { %v4403_v16 = vadd.f32 %v7810_v55, %v4367_v43  ;;  %v4799_v43 = vpack.c.bf16 %v4789_v63, %v4787_v59  ;;  %v4935_v41 = vld [vmem:[#allocation2 + $0x147] ss:$2 sm:$0xff] }
 0x603   : > { %v4944_v63 = vpack.c.bf16 %v4937_v27, %v4935_v41 }
 0x604   : > { %v4435_v8 = vmax.f32 %v4403_v16, 0.0  ;;  %v4871_v16 = vpack.c.bf16 %v4861_v12, %v4859_v2 }
 0x605   : > { %v8143_v18 = vpop.f32.mrf.mxu2  ;;  %v8145_v51 = vpop.f32.mrf.mxu3 }
 0x606   : > { %v4467_v25 = vadd.f32 %v4435_v8, %v8633_v22  ;;  %v4791_v8 = vld [vmem:[#allocation2 + $0x128] ss:$2 sm:$0xff]  ;;  %v4626_v60 = vadd.f32 %v8145_v51, %v8143_v18 }
 0x607   : > { %v4334_v14 = vpop.f32.mrf.mxu1  ;;  %v4725_v44 = vld [vmem:[#allocation2 + $0x1e7] ss:$2 sm:$0xff]  ;;  %v4800_v11 = vpack.c.bf16 %v4793_v5, %v4791_v8 }
 0x608   : > { %4499 = vst.msk [vmem:[#allocation2 + $0x208] sm:$0xff] %vm278_vm1, %v4467_v25  ;;  %v4368_v28 = vadd.f32 %v4334_v14, %v4148_v4  ;;  %v4729_v33 = vpack.c.bf16 %v4725_v44, %v4723_v50  ;;  %v4797_v25 = vld [vmem:[#allocation2 + $0x1e8] ss:$2 sm:$0xff]  ;;  %v4869_v14 = vld [vmem:[#allocation2 + $0x1e9] ss:$2 sm:$0xff]  ;;  %v5015_v50 = vpack.c.bf16 %v5005_v10, %v5003_v19 }
 0x60a   : > { %v4404_v49 = vadd.f32 %v7810_v55, %v4368_v28  ;;  %5600 = vmatmul.msk.bf16.vlgmr.msra.gmra.mxu2 %vm278_vm1, %v4654_v58  ;;  %5604 = vmatmul.msk.bf16.vlgmr.msra.gmra.mxu3 %vm278_vm1, %v4726_v36  ;;  %v4649_v55 = vld [vmem:[#allocation2 + $0x149] ss:$2 sm:$0xff]  ;;  %v4801_v58 = vpack.c.bf16 %v4797_v25, %v4795_v46 }
 0x60b   : > { %v4656_v39 = vpack.c.bf16 %v4649_v55, %v4647_v21  ;;  %4968 = vmatpush.bf16.msra.mxu2 %v4959_v34  ;;  %5040 = vmatpush.bf16.msra.mxu3 %v5031_v0  ;;  %v4867_v28 = vld [vmem:[#allocation2 + $0x1a9] ss:$2 sm:$0xff] }
 0x60c   : > { %v4436_v57 = vmax.f32 %v4404_v49, 0.0  ;;  %v4873_v36 = vpack.c.bf16 %v4869_v14, %v4867_v28  ;;  %v4931_v0 = vld [vmem:[#allocation2 + $0xc7] ss:$2 sm:$0xff] }
 0x60d   : > { %v4943_v30 = vpack.c.bf16 %v4933_v48, %v4931_v0 }
 0x60e   : > { %v4468_v3 = vadd.f32 %v4436_v57, %v8634_v53 }
 0x610   : > { %4500 = vst.msk [vmem:[#allocation2 + $0x210] sm:$0xff] %vm278_vm1, %v4468_v3 }
 0x617   : > { %v5085_v56 = vld [vmem:[#allocation2 + $0x209] ss:$2 sm:$0xff]  ;;  %v5013_v26 = vld [vmem:[#allocation2 + $0x208] ss:$2 sm:$0xff] }
 0x618   : > { %v5089_v38 = vpack.c.bf16 %v5085_v56, %v5083_v31  ;;  %v4927_v31 = vld [vmem:[#allocation2 + $0x47] ss:$2 sm:$0xff]  ;;  %v4999_v56 = vld [vmem:[#allocation2 + $0x48] ss:$2 sm:$0xff] }
 0x619   : > { %v4941_v5 = vld [vmem:[#allocation2 + $0x207] ss:$2 sm:$0xff] }
 0x61a   : > { %5601 = vmatmul.msk.bf16.gmra.mxu2 %vm278_vm1, %v4655_v24  ;;  %5605 = vmatmul.msk.bf16.gmra.mxu3 %vm278_vm1, %v4727_v47  ;;  %v4942_v24 = vpack.c.bf16 %v4929_v20, %v4927_v31  ;;  %v5014_v47 = vpack.c.bf16 %v5001_v9, %v4999_v56  ;;  %v4945_v25 = vpack.c.bf16 %v4941_v5, %v4939_v6 }
 0x61b   : > { %5627 = vmatmul.msk.bf16.gmra.mxu0 %vm278_vm1, %v5089_v38 }
 0x62a   : > { %5602 = vmatmul.msk.bf16.gmra.mxu2 %vm278_vm1, %v4656_v39  ;;  %5606 = vmatmul.msk.bf16.gmra.mxu3 %vm278_vm1, %v4728_v35 }
 0x63a   : > { %5603 = vmatmul.msk.bf16.gmra.mxu2 %vm278_vm1, %v4657_v32  ;;  %5607 = vmatmul.msk.bf16.gmra.mxu3 %vm278_vm1, %v4729_v33 }
 0x63d   : > { %v4584_v15 = vpop.f32.mrf.mxu2  ;;  %v4628_v40 = vpop.f32.mrf.mxu3 }
 0x63e   : > { %v8149_v13 = vadd.f32 %v4628_v40, %v4584_v15 }
 0x645   : > { %v4586_v4 = vpop.f32.mrf.mxu2  ;;  %v4630_v22 = vpop.f32.mrf.mxu3 }
 0x646   : > { %v4631_v51 = vadd.f32 %v4630_v22, %v4586_v4 }
 0x64a   : > { %5608 = vmatmul.msk.bf16.vlgmr.msrb.gmra.mxu2 %vm278_vm1, %v4798_v7  ;;  %5612 = vmatmul.msk.bf16.vlgmr.msrb.gmra.mxu3 %vm278_vm1, %v4870_v62  ;;  %v5007_v7 = vld [vmem:[#allocation2 + $0x148] ss:$2 sm:$0xff] }
 0x64b   : > { %v5016_v12 = vpack.c.bf16 %v5009_v54, %v5007_v7 }
 0x65a   : > { %5609 = vmatmul.msk.bf16.gmra.mxu2 %vm278_vm1, %v4799_v43  ;;  %5613 = vmatmul.msk.bf16.gmra.mxu3 %vm278_vm1, %v4871_v16 }
 0x66a   : > { %5610 = vmatmul.msk.bf16.gmra.mxu2 %vm278_vm1, %v4800_v11  ;;  %5614 = vmatmul.msk.bf16.gmra.mxu3 %vm278_vm1, %v4872_v45  ;;  %v5011_v11 = vld [vmem:[#allocation2 + $0x1c8] ss:$2 sm:$0xff] }
 0x66b   : > { %v5017_v14 = vpack.c.bf16 %v5013_v26, %v5011_v11 }
 0x67a   : > { %5611 = vmatmul.msk.bf16.gmra.mxu2 %vm278_vm1, %v4801_v58  ;;  %5615 = vmatmul.msk.bf16.gmra.mxu3 %vm278_vm1, %v4873_v36 }
 0x67d   : > { %v4589_v49 = vpop.f32.mrf.mxu2  ;;  %v4633_v57 = vpop.f32.mrf.mxu3 }
 0x67e   : > { %v8159_v53 = vadd.f32 %v4633_v57, %v4589_v49 }
 0x685   : > { %v4591_v3 = vpop.f32.mrf.mxu2  ;;  %v4635_v37 = vpop.f32.mrf.mxu3 }
 0x686   : > { %v8161_v42 = vadd.f32 %v4635_v37, %v4591_v3 }
 0x68a   : > { %5616 = vmatmul.msk.bf16.vlgmr.msra.gmra.mxu2 %vm278_vm1, %v4942_v24  ;;  %5620 = vmatmul.msk.bf16.vlgmr.msra.gmra.mxu3 %vm278_vm1, %v5014_v47 }
 0x68d   : > { %v4682_v38 = vpop.f32.mrf.mxu2  ;;  %v4754_v55 = vpop.f32.mrf.mxu3 }
 0x68e   : > { %v4702_v29 = vadd.f32 %v4682_v38, %v8051_v17 }
 0x690   : > { %v8166_v21 = vadd.f32 %v4754_v55, %v4702_v29 }
 0x695   : > { %v4684_v39 = vpop.f32.mrf.mxu2  ;;  %v4756_v35 = vpop.f32.mrf.mxu3 }
 0x696   : > { %v4703_v34 = vadd.f32 %v4684_v39, %v4621_v1 }
 0x698   : > { %v8170_v44 = vadd.f32 %v4756_v35, %v4703_v34  ;;  %v5114_v35 = vpop.f32.mrf.mxu0 }
 0x69a   : > { %5617 = vmatmul.msk.bf16.gmra.mxu2 %vm278_vm1, %v4943_v30  ;;  %5621 = vmatmul.msk.bf16.gmra.mxu3 %vm278_vm1, %v5015_v50 }
 0x69d   : > { %v4687_v17 = vpop.f32.mrf.mxu2  ;;  %v4759_v32 = vpop.f32.mrf.mxu3 }
 0x69e   : > { %v4704_v33 = vadd.f32 %v4687_v17, %v8116_v61  ;;  %v8212_v17 = vld [vmem:[%s8293_s6] ss:$0 sm:$0xff] }
 0x6a0   : > { %v8175_v52 = vadd.f32 %v4759_v32, %v4704_v33  ;;  %v5116_v32 = vpop.f32.mrf.mxu0 }
 0x6a5   : > { %v4689_v15 = vpop.f32.mrf.mxu2  ;;  %v4761_v40 = vpop.f32.mrf.mxu3 }
 0x6a6   : > { %v4705_v23 = vadd.f32 %v4689_v15, %v4626_v60 }
 0x6a8   : > { %v8179_v62 = vadd.f32 %v4761_v40, %v4705_v23  ;;  %v5119_v41 = vpop.f32.mrf.mxu0 }
 0x6aa   : > { %5618 = vmatmul.msk.bf16.gmra.mxu2 %vm278_vm1, %v4944_v63  ;;  %5622 = vmatmul.msk.bf16.gmra.mxu3 %vm278_vm1, %v5016_v12 }
 0x6ad   : > { %v4692_v61 = vpop.f32.mrf.mxu2  ;;  %v4764_v59 = vpop.f32.mrf.mxu3 }
 0x6ae   : > { %v4706_v2 = vadd.f32 %v4692_v61, %v8149_v13 }
 0x6b0   : > { %v8184_v18 = vadd.f32 %v4764_v59, %v4706_v2  ;;  %v5121_v5 = vpop.f32.mrf.mxu0 }
 0x6b5   : > { %v4694_v43 = vpop.f32.mrf.mxu2  ;;  %v4766_v16 = vpop.f32.mrf.mxu3 }
 0x6b6   : > { %v4707_v8 = vadd.f32 %v4694_v43, %v4631_v51 }
 0x6b8   : > { %v8186_v45 = vadd.f32 %v4766_v16, %v4707_v8 }
 0x6ba   : > { %5619 = vmatmul.msk.bf16.gmra.mxu2 %vm278_vm1, %v4945_v25  ;;  %5623 = vmatmul.msk.bf16.gmra.mxu3 %vm278_vm1, %v5017_v14 }
 0x6bd   : > { %v4697_v46 = vpop.f32.mrf.mxu2  ;;  %v4769_v13 = vpop.f32.mrf.mxu3 }
 0x6be   : > { %v4708_v28 = vadd.f32 %v4697_v46, %v8159_v53 }
 0x6c0   : > { %v8191_v4 = vadd.f32 %v4769_v13, %v4708_v28 }
 0x6c5   : > { %v4699_v22 = vpop.f32.mrf.mxu2  ;;  %v4771_v58 = vpop.f32.mrf.mxu3 }
 0x6c6   : > { %v4709_v36 = vadd.f32 %v4699_v22, %v8161_v42 }
 0x6c8   : > { %v8194_v49 = vadd.f32 %v4771_v58, %v4709_v36 }
 0x6cd   : > { %v4826_v57 = vpop.f32.mrf.mxu2  ;;  %v4898_v3 = vpop.f32.mrf.mxu3 }
 0x6ce   : > { %v4846_v48 = vadd.f32 %v4826_v57, %v8166_v21 }
 0x6d0   : > { %v4918_v10 = vadd.f32 %v4898_v3, %v4846_v48 }
 0x6d5   : > { %v4828_v37 = vpop.f32.mrf.mxu2  ;;  %v4900_v20 = vpop.f32.mrf.mxu3 }
 0x6d6   : > { %v4847_v30 = vadd.f32 %v4828_v37, %v8170_v44 }
 0x6d8   : > { %v4919_v60 = vadd.f32 %v4900_v20, %v4847_v30 }
 0x6dd   : > { %v4831_v9 = vpop.f32.mrf.mxu2  ;;  %v4903_v31 = vpop.f32.mrf.mxu3 }
 0x6de   : > { %v4848_v44 = vadd.f32 %v4831_v9, %v8175_v52 }
 0x6e0   : > { %v4920_v63 = vadd.f32 %v4903_v31, %v4848_v44 }
 0x6e5   : > { %v4833_v56 = vpop.f32.mrf.mxu2  ;;  %v4905_v24 = vpop.f32.mrf.mxu3 }
 0x6e6   : > { %v4849_v43 = vadd.f32 %v4833_v56, %v8179_v62  ;;  %v5124_v62 = vpop.f32.mrf.mxu0 }
 0x6e8   : > { %v4921_v26 = vadd.f32 %v4905_v24, %v4849_v43 }
 0x6ed   : > { %v4836_v47 = vpop.f32.mrf.mxu2  ;;  %v4908_v38 = vpop.f32.mrf.mxu3 }
 0x6ee   : > { %v4850_v46 = vadd.f32 %v4836_v47, %v8184_v18  ;;  %v5126_v48 = vpop.f32.mrf.mxu0 }
 0x6f0   : > { %v4922_v22 = vadd.f32 %v4908_v38, %v4850_v46 }
 0x6f5   : > { %v4838_v53 = vpop.f32.mrf.mxu2  ;;  %v8196_v55 = vpop.f32.mrf.mxu3 }
 0x6f6   : > { %v4851_v20 = vadd.f32 %v4838_v53, %v8186_v45 }
 0x6f8   : > { %v4923_v18 = vadd.f32 %v8196_v55, %v4851_v20 }
 0x6fd   : > { %v8198_v29 = vpop.f32.mrf.mxu2  ;;  %v8200_v42 = vpop.f32.mrf.mxu3 }
 0x705   : > { %v8202_v1 = vpop.f32.mrf.mxu2  ;;  %v8204_v39 = vpop.f32.mrf.mxu3 }
 0x70d   : > { %v4970_v34 = vpop.f32.mrf.mxu2  ;;  %v5042_v0 = vpop.f32.mrf.mxu3 }
 0x70e   : > { %v4990_v19 = vadd.f32 %v4970_v34, %v4918_v10  ;;  %v4852_v10 = vadd.f32 %v8198_v29, %v8191_v4 }
 0x710   : > { %v5062_v50 = vadd.f32 %v5042_v0, %v4990_v19  ;;  %v4924_v34 = vadd.f32 %v8200_v42, %v4852_v10 }
 0x712   : > { %v5134_v33 = vadd.f32 %v5114_v35, %v5062_v50 }
 0x714   : > { %v5146_v21 = vadd.f32 %v8212_v17, %v5134_v33  ;;  %v4853_v33 = vadd.f32 %v8202_v1, %v8194_v49 }
 0x715   : > { %v4972_v15 = vpop.f32.mrf.mxu2  ;;  %v5044_v40 = vpop.f32.mrf.mxu3 }
 0x716   : > { %v5154_v27 = vmax.f32 %v5146_v21, 0.0  ;;  %v4991_v54 = vadd.f32 %v4972_v15, %v4919_v60  ;;  %v4925_v60 = vadd.f32 %v8204_v39, %v4853_v33 }
 0x718   : > { %5163 = vst.msk [vmem:[%s8218_s9] sm:$0xff] %vm5162_vm4, %v5154_v27  ;;  %v5063_v23 = vadd.f32 %v5044_v40, %v4991_v54 }
 0x71a   : > { %v5135_v7 = vadd.f32 %v5116_v32, %v5063_v23  ;;  %v5129_v32 = vpop.f32.mrf.mxu0 }
 0x71c   : > { %v5147_v12 = vadd.f32 %v8212_v17, %v5135_v7 }
 0x71d   : > { %v4975_v61 = vpop.f32.mrf.mxu2  ;;  %v5047_v59 = vpop.f32.mrf.mxu3 }
 0x71e   : > { %v5155_v2 = vmax.f32 %v5147_v12, 0.0  ;;  %v4992_v51 = vadd.f32 %v4975_v61, %v4920_v63 }
 0x720   : > { %5164 = vst.msk [vmem:[%s8218_s9 + $0x8] sm:$0xff] %vm5162_vm4, %v5155_v2  ;;  %v5064_v52 = vadd.f32 %v5047_v59, %v4992_v51 }
 0x722   : > { %v5136_v16 = vadd.f32 %v5119_v41, %v5064_v52  ;;  %v5131_v1 = vpop.f32.mrf.mxu0 }
 0x724   : > { %v5148_v8 = vadd.f32 %v8212_v17, %v5136_v16 }
 0x725   : > { %v4977_v6 = vpop.f32.mrf.mxu2  ;;  %v5049_v11 = vpop.f32.mrf.mxu3 }
 0x726   : > { %v5156_v25 = vmax.f32 %v5148_v8, 0.0  ;;  %v4993_v14 = vadd.f32 %v4977_v6, %v4921_v26 }
 0x728   : > { %5165 = vst.msk [vmem:[%s8218_s9 + $0x10] sm:$0xff] %vm5162_vm4, %v5156_v25  ;;  %v5065_v13 = vadd.f32 %v5049_v11, %v4993_v14 }
 0x72a   : > { %v5137_v28 = vadd.f32 %v5121_v5, %v5065_v13 }
 0x72c   : > { %v5149_v58 = vadd.f32 %v8212_v17, %v5137_v28 }
 0x72d   : > { %v4980_v36 = vpop.f32.mrf.mxu2  ;;  %v5052_v57 = vpop.f32.mrf.mxu3 }
 0x72e   : > { %v5157_v3 = vmax.f32 %v5149_v58, 0.0  ;;  %v4994_v37 = vadd.f32 %v4980_v36, %v4922_v22 }
 0x730   : > { %5166 = vst.msk [vmem:[%s8218_s9 + $0x18] sm:$0xff] %vm5162_vm4, %v5157_v3  ;;  %v5066_v9 = vadd.f32 %v5052_v57, %v4994_v37 }
 0x732   : > { %v5138_v31 = vadd.f32 %v5124_v62, %v5066_v9 }
 0x734   : > { %v5150_v56 = vadd.f32 %v8212_v17, %v5138_v31 }
 0x735   : > { %v4982_v24 = vpop.f32.mrf.mxu2  ;;  %v5054_v47 = vpop.f32.mrf.mxu3 }
 0x736   : > { %v5158_v38 = vmax.f32 %v5150_v56, 0.0  ;;  %v4995_v35 = vadd.f32 %v4982_v24, %v4923_v18 }
 0x738   : > { %5167 = vst.msk [vmem:[%s8218_s9 + $0x20] sm:$0xff] %vm5162_vm4, %v5158_v38  ;;  %v5067_v45 = vadd.f32 %v5054_v47, %v4995_v35 }
 0x73a   : > { %v5139_v53 = vadd.f32 %v5126_v48, %v5067_v45 }
 0x73c   : > { %v5151_v55 = vadd.f32 %v8212_v17, %v5139_v53 }
 0x73d   : > { %v4985_v0 = vpop.f32.mrf.mxu2  ;;  %v5057_v19 = vpop.f32.mrf.mxu3 }
 0x73e   : > { %v5159_v30 = vmax.f32 %v5151_v55, 0.0  ;;  %v4996_v50 = vadd.f32 %v4985_v0, %v4924_v34 }
 0x740   : > { %5168 = vst.msk [vmem:[%s8218_s9 + $0x28] sm:$0xff] %vm5162_vm4, %v5159_v30  ;;  %v5068_v4 = vadd.f32 %v5057_v19, %v4996_v50 }
 0x742   : > { %v5140_v29 = vadd.f32 %v5129_v32, %v5068_v4 }
 0x744   : > { %v5152_v42 = vadd.f32 %v8212_v17, %v5140_v29 }
 0x745   : > { %v4987_v21 = vpop.f32.mrf.mxu2  ;;  %v5059_v27 = vpop.f32.mrf.mxu3 }
 0x746   : > { %v5160_v15 = vmax.f32 %v5152_v42, 0.0  ;;  %v4997_v40 = vadd.f32 %v4987_v21, %v4925_v60 }
 0x748   : > { %5169 = vst.msk [vmem:[%s8218_s9 + $0x30] sm:$0xff] %vm5162_vm4, %v5160_v15  ;;  %v5069_v49 = vadd.f32 %v5059_v27, %v4997_v40 }
 0x74a   : > { %v5141_v54 = vadd.f32 %v5131_v1, %v5069_v49 }
 0x74c   : > { %v5153_v39 = vadd.f32 %v8212_v17, %v5141_v54 }
 0x74e   : > { %v5161_v44 = vmax.f32 %v5153_v39, 0.0 }
 0x750   : > { %5170 = vst.msk [vmem:[%s8218_s9 + $0x38] sm:$0xff] %vm5162_vm4, %v5161_v44 }
 0x751   : > { %5711 = shalt.err (!%p5708_p3)
}
 0x752   : > { %s5749_s22 = smov 128   ;;  %s5750_s9 = smov 8  }
 0x753   : > { %5638 = dma.vmem_to_hbm [thread:$0]  (%p5829_p5), %s5185_s17, 1024, %s5187_s18, %s5172_s28, %s5749_s22, %s5749_s22, %s5750_s9  }
 0x754 PF: > { %p5644_p4 = scmp.ge.s32.totalorder %s5746_s27, 2  ;;  %s5201_s14 = sand.u32 1, %s5734_s24  }
 0x755   : > { %s5202_s15 = scalar_lea.sflag [#allocation4], %s5201_s14 }
 0x756   : > { %p5641_p7 = pnand %p5644_p4, %p5833_p6 }
 0x758   : > { %p5642_p8 = pneg %p5641_p7 }
 0x75a   : > { %5729 = dma.done.wait (%p5642_p8), %s5202_s15, 1024  }
 0x75b   : > { %5731 = vsyncadd (%p5642_p8), %s5202_s15, 4294966272  ;;  %p17_p9 = scmp.ge.s32.totalorder %s5816_s30, 4   ;;  %s8635_s24 = smov %s5738_s25 }
 0x75c   : > { %s8636_s25 = smov %s5742_s26  ;;  %s8637_s26 = smov %s5827_s10 }
 0x75d   : > { %s8638_s27 = smov %s5816_s30  ;;  %19 = sbr.rel (!%p17_p9) target bundleno = 3 (0x3), region = 158 }
 0x762   :  { %5208 = vsyncpa [#allocation4], 1 }
 0x763   :  { %5210 = vsyncpa [#allocation4 + $0x1], 1 }

</bundles_post_ra>
